<compile_context>
chip_gen: v7x
topology: tpu7x:2x2x1
jax: 0.10.0
libtpu: 0.0.40
codegen_flags: <defaults>
</compile_context>

<pallas_src>
import functools

import jax
import jax.numpy as jnp
from jax.experimental import pallas as pl
from jax.experimental.pallas import tpu as pltpu


# ----------------------------------------------------------------------------
# Per-generation tiling budgets
# ----------------------------------------------------------------------------
@functools.lru_cache(maxsize=None)
def _budgets():
    """(vmem_limit_bytes, per-step tile budget, max row tile).
    v5e/v6e have 128 MiB VMEM -> bigger blocks; v7x has 64 MiB -> keep 32/20."""
    cap = None
    try:
        cap = int(pltpu.get_tpu_info().vmem_capacity_bytes)
    except Exception:
        cap = None
    if cap is not None and cap >= 96 * 1024 * 1024:
        return 64 * 1024 * 1024, 40 * 1024 * 1024, 2048
    return 32 * 1024 * 1024, 20 * 1024 * 1024, 1024


def _pick_row_tile(m, bytes_per_row, *, tile_budget, max_rows,
                   min_rows_for_split=128):
    """Largest row tile dividing m that fits the VMEM budget (double-buffered)
    and leaves >=2 grid steps once m is large enough (v7x: 2 TensorCores).
    Prefers multiples of 8 (sublane tile)."""
    cap = max(1, min(m, max_rows, tile_budget // max(1, bytes_per_row)))
    if m >= min_rows_for_split:
        cap = min(cap, max(8, (m // 2) // 8 * 8))
    if m <= cap:
        return m
    t = (cap // 8) * 8
    while t >= 8:
        if m % t == 0:
            return t
        t -= 8
    return m  # fallback (not reached for the shapes used here)


# ----------------------------------------------------------------------------
# Kernels
# ----------------------------------------------------------------------------
def _conv_prelu_pool_kernel(p_ref, w_ref, b_ref, a_ref, o_ref, *, group, merged):
    # p_ref: (4, group, tm, K)   4 maxpool taps x `group` lane-groups of rows
    # w_ref: (K, Cout)  b_ref: (1, Cout)  a_ref: (1,) SMEM (PReLU slope)
    # o_ref: (tm, group*Cout)    lane-dense pooled output
    w = w_ref[...]
    b = b_ref[...]
    a = a_ref[0]
    K = w_ref.shape[0]
    cout = w_ref.shape[1]
    tm = o_ref.shape[0]
    if merged:
        # Single MXU dot over all 4 taps and all lane-groups (leading-dim
        # merge/split is a layout no-op since tm % 8 == 0).
        p = p_ref[...].reshape(4 * group * tm, K)
        y = jnp.dot(p, w, preferred_element_type=jnp.float32) + b
        y = jnp.where(y >= 0.0, y, a * y)                        # PReLU
        y = y.reshape(4, group, tm, cout)
        pooled = jnp.maximum(jnp.maximum(y[0], y[1]),
                             jnp.maximum(y[2], y[3]))            # 2x2 maxpool
        parts = [pooled[g] for g in range(group)]
    else:
        # Fallback for tm not a multiple of 8: per-(tap, group) dots.
        parts = []
        for g in range(group):
            pooled = None
            for t in range(4):
                y = jnp.dot(p_ref[t, g], w, preferred_element_type=jnp.float32) + b
                y = jnp.where(y >= 0.0, y, a * y)
                pooled = y if pooled is None else jnp.maximum(pooled, y)
            parts.append(pooled)
    o_ref[...] = parts[0] if group == 1 else jnp.concatenate(parts, axis=-1)


def _mlp_prelu_kernel(x_ref, w1_ref, b1_ref, w2_ref, b2_ref, a_ref, o_ref):
    # x:(tm,K1) w1:(K1,H) b1:(1,H) w2:(H,N) b2:(1,N) a:(2,) SMEM
    h = jnp.dot(x_ref[...], w1_ref[...], preferred_element_type=jnp.float32)
    h = h + b1_ref[...]
    h = jnp.where(h >= 0.0, h, a_ref[0] * h)
    y = jnp.dot(h, w2_ref[...], preferred_element_type=jnp.float32)
    y = y + b2_ref[...]
    o_ref[...] = jnp.where(y >= 0.0, y, a_ref[1] * y)


# ----------------------------------------------------------------------------
# Wrappers
# ----------------------------------------------------------------------------
def conv2d_prelu_maxpool(x, wg, bg, alpha, *, k):
    """Fused valid kxk conv (stride 1) + PReLU + 2x2/stride-2 maxpool.
    x : (B,H,W,Cin) NHWC
    wg: (k*k*Cin, Cout), rows ordered (di, dj, cin)   (prepared once)
    bg: (1, Cout) f32."""
    B, H, W, Cin = x.shape
    K, Cout = wg.shape
    Ho, Wo = H - k + 1, W - k + 1
    Hp, Wp = Ho // 2, Wo // 2
    M = B * Hp * Wp

    # lane grouping: pack G pooled columns into lanes so each stored row is
    # >=128 lanes wide (dense vst instead of masked 32/64-lane stores)
    G = max(1, 128 // Cout)
    while G > 1 and Wp % G != 0:
        G -= 1
    Wg = Wp // G
    Mg = M // G

    # im2col, emitted directly in (tap, lane-group, row, K) order (no wrapper
    # transpose).  Row (b, po, jh) of tap (u,v), group g, column (di,dj,cin):
    #   x[b, 2*po + u + di, 2*(jh*G + g) + v + dj, cin]
    # Distinct strided slices are deduplicated across taps/groups/offsets.
    cache = {}

    def shifted(r0, c0):
        if (r0, c0) not in cache:
            cache[(r0, c0)] = jax.lax.slice(
                x, (0, r0, c0, 0),
                (B, r0 + 2 * (Hp - 1) + 1, c0 + 2 * G * (Wg - 1) + 1, Cin),
                (1, 2, 2 * G, 1))                              # (B, Hp, Wg, Cin)
        return cache[(r0, c0)]

    taps = []
    for u in range(2):
        for v in range(2):
            groups = []
            for g in range(G):
                cols = [shifted(u + di, v + dj + 2 * g)
                        for di in range(k) for dj in range(k)]
                pg = jnp.stack(cols, axis=3)                   # (B,Hp,Wg,k*k,Cin)
                groups.append(pg.reshape(Mg, K))
            taps.append(jnp.stack(groups, axis=0))             # (G, Mg, K)
    p = jnp.stack(taps, axis=0)                                 # (4, G, Mg, K)

    vmem_limit, tile_budget, max_rows = _budgets()
    bytes_per_row = 8 * (4 * G * K + G * Cout)                  # f32, dbl-buffered
    tm = _pick_row_tile(Mg, bytes_per_row, tile_budget=tile_budget,
                        max_rows=max_rows)
    grid = (Mg // tm,)
    ag = jnp.asarray(alpha, jnp.float32).reshape(1)

    out = pl.pallas_call(
        functools.partial(_conv_prelu_pool_kernel, group=G, merged=(tm % 8 == 0)),
        out_shape=jax.ShapeDtypeStruct((Mg, G * Cout), jnp.float32),
        grid_spec=pltpu.PrefetchScalarGridSpec(
            num_scalar_prefetch=0,
            grid=grid,
            in_specs=[
                pl.BlockSpec((4, G, tm, K), lambda i: (0, 0, i, 0)),
                pl.BlockSpec((K, Cout), lambda i: (0, 0)),
                pl.BlockSpec((1, Cout), lambda i: (0, 0)),
                pl.BlockSpec(memory_space=pltpu.MemorySpace.SMEM),
            ],
            out_specs=pl.BlockSpec((tm, G * Cout), lambda i: (i, 0)),
        ),
        compiler_params=pltpu.CompilerParams(
            dimension_semantics=("parallel",),
            vmem_limit_bytes=vmem_limit),
    )(p, wg, bg, ag)

    # undo lane grouping (free, row-major): row=(b,po,jh), lanes=(g,cout)
    return out.reshape(B, Hp, Wg, G, Cout).reshape(B, Hp, Wp, Cout)


def mlp_prelu_head(x, w1, b1, w2, b2, alphas):
    """PReLU(PReLU(x @ w1 + b1) @ w2 + b2), both layers fused in one kernel.
    Weights are pre-transposed (in, out); fc1's rows are already permuted to
    consume the NHWC-flattened conv output."""
    M, K1 = x.shape
    Hd = w1.shape[1]
    N = w2.shape[1]
    vmem_limit, tile_budget, max_rows = _budgets()
    bytes_per_row = 8 * (K1 + Hd + N)
    tm = _pick_row_tile(M, bytes_per_row, tile_budget=tile_budget,
                        max_rows=max_rows)
    grid = (M // tm,)
    return pl.pallas_call(
        _mlp_prelu_kernel,
        out_shape=jax.ShapeDtypeStruct((M, N), jnp.float32),
        grid_spec=pltpu.PrefetchScalarGridSpec(
            num_scalar_prefetch=0,
            grid=grid,
            in_specs=[
                pl.BlockSpec((tm, K1), lambda i: (i, 0)),
                pl.BlockSpec((K1, Hd), lambda i: (0, 0)),
                pl.BlockSpec((1, Hd), lambda i: (0, 0)),
                pl.BlockSpec((Hd, N), lambda i: (0, 0)),
                pl.BlockSpec((1, N), lambda i: (0, 0)),
                pl.BlockSpec(memory_space=pltpu.MemorySpace.SMEM),
            ],
            out_specs=pl.BlockSpec((tm, N), lambda i: (i, 0)),
        ),
        compiler_params=pltpu.CompilerParams(
            dimension_semantics=("parallel",),
            vmem_limit_bytes=vmem_limit),
    )(x, w1, b1, w2, b2, alphas)


# ----------------------------------------------------------------------------
# Model: parameters + forward
# ----------------------------------------------------------------------------
def init_params_torch(key):
    """Parameters in PyTorch layouts (Conv2d: (Cout,Cin,k,k); Linear: (out,in))."""
    ks = jax.random.split(key, 8)

    def u(kk, shape, fan_in):
        bound = 1.0 / jnp.sqrt(jnp.float32(fan_in))
        return jax.random.uniform(kk, shape, jnp.float32, -bound, bound)

    return dict(
        conv1_w=u(ks[0], (32, 1, 5, 5), 1 * 25),
        conv1_b=u(ks[1], (32,), 1 * 25),
        conv2_w=u(ks[2], (64, 32, 5, 5), 32 * 25),
        conv2_b=u(ks[3], (64,), 32 * 25),
        fc1_w=u(ks[4], (256, 64 * 4 * 4), 64 * 4 * 4),
        fc1_b=u(ks[5], (256,), 64 * 4 * 4),
        fc2_w=u(ks[6], (256, 256), 256),
        fc2_b=u(ks[7], (256,), 256),
        prelu1=jnp.float32(0.25),   # nn.PReLU() default init
        prelu2=jnp.float32(0.25),
        prelu3=jnp.float32(0.25),
        prelu4=jnp.float32(0.25),
    )


def prepare_params(p):
    """One-time repack of PyTorch-layout params into kernel-friendly layouts:
      * conv weights -> (k*k*Cin, Cout) with rows ordered (di, dj, cin)
      * fc1 weight   -> (1024, 256), transposed AND row-permuted from the
        NCHW flatten order (c,h,w) to NHWC (h,w,c) so the conv2 output feeds
        it via a free reshape (no runtime transpose)
      * fc2 weight   -> (256, 256) transposed to (in, out)
      * biases as (1, N) f32; fc PReLU slopes stacked for SMEM."""
    def conv_w(w):
        cout, cin, k, _ = w.shape
        return w.transpose(2, 3, 1, 0).reshape(k * k * cin, cout).astype(jnp.float32)

    fc1 = (p["fc1_w"].T.reshape(64, 4, 4, 256)
           .transpose(1, 2, 0, 3).reshape(64 * 4 * 4, 256))
    return dict(
        conv1_w=conv_w(p["conv1_w"]),
        conv1_b=p["conv1_b"].reshape(1, -1).astype(jnp.float32),
        conv2_w=conv_w(p["conv2_w"]),
        conv2_b=p["conv2_b"].reshape(1, -1).astype(jnp.float32),
        fc1_w=fc1.astype(jnp.float32),
        fc1_b=p["fc1_b"].reshape(1, -1).astype(jnp.float32),
        fc2_w=p["fc2_w"].T.astype(jnp.float32),
        fc2_b=p["fc2_b"].reshape(1, -1).astype(jnp.float32),
        prelu1=jnp.asarray(p["prelu1"], jnp.float32),
        prelu2=jnp.asarray(p["prelu2"], jnp.float32),
        prelu_fc=jnp.stack([jnp.asarray(p["prelu3"], jnp.float32),
                            jnp.asarray(p["prelu4"], jnp.float32)]),
    )


def embedding_net_forward(kparams, x_nchw):
    # (B, 1, 28, 28) NCHW -> NHWC for the conv path (Cin=1: pure reshape)
    x = jnp.transpose(x_nchw, (0, 2, 3, 1)).astype(jnp.float32)
    x = conv2d_prelu_maxpool(x, kparams["conv1_w"], kparams["conv1_b"],
                             kparams["prelu1"], k=5)              # (B,12,12,32)
    x = conv2d_prelu_maxpool(x, kparams["conv2_w"], kparams["conv2_b"],
                             kparams["prelu2"], k=5)              # (B, 4, 4,64)
    B = x.shape[0]
    # NHWC flatten feeds fc1 directly (the PyTorch NCHW `.view(B,-1)` ordering
    # is folded into fc1_w's rows in prepare_params) -- free reshape.
    x = x.reshape(B, -1)                                          # (B, 1024)
    return mlp_prelu_head(x, kparams["fc1_w"], kparams["fc1_b"],
                          kparams["fc2_w"], kparams["fc2_b"],
                          kparams["prelu_fc"])


if __name__ == "__main__":
    key = jax.random.PRNGKey(0)
    pkey, xkey = jax.random.split(key)
    params = prepare_params(init_params_torch(pkey))
    # batch=2, 1 channel, 28x28 (the size implied by 64*4*4 after two conv+pool)
    x = jax.random.normal(xkey, (2, 1, 28, 28), jnp.float32)

    fwd = jax.jit(embedding_net_forward)
    out = jax.block_until_ready(fwd(params, x))
    assert out.shape == (2, 256), out.shape
    assert out.dtype == jnp.float32
    assert bool(jnp.all(jnp.isfinite(out)))
    print("KERNEL_OK")
</pallas_src>

<mosaic_0001>
module attributes {stable_mosaic.version = 11 : i64} {
  func.func @_conv_prelu_pool_kernel(%arg0: i32, %arg1: memref<4x4x72x25xf32, #tpu.memory_space<vmem>>, %arg2: memref<25x32xf32, #tpu.memory_space<vmem>>, %arg3: memref<1x32xf32, #tpu.memory_space<vmem>>, %arg4: memref<1xf32, #tpu.memory_space<smem>>, %arg5: memref<72x128xf32, #tpu.memory_space<vmem>>) attributes {dimension_semantics = [#tpu.dimension_semantics<parallel>], iteration_bounds = array<i64: 1>, scalar_prefetch = 0 : i64, scratch_operands = 0 : i64, tpu.core_type = #tpu.core_type<tc>, window_params = [{transform_indices = @transform_0, window_bounds = array<i64: 4, 4, 72, 25>}, {pipeline_mode = #tpu.pipeline_mode<synchronous>, transform_indices = @transform_1, window_bounds = array<i64: 25, 32>}, {pipeline_mode = #tpu.pipeline_mode<synchronous>, transform_indices = @transform_2, window_bounds = array<i64: 1, 32>}, {transform_indices = @transform_3, window_bounds = array<i64: 1>}, {transform_indices = @transform_4, window_bounds = array<i64: 72, 128>}]} {
    %c0 = arith.constant 0 : index
    %c0_0 = arith.constant 0 : index
    %0 = vector.load %arg2[%c0, %c0_0] : memref<25x32xf32, #tpu.memory_space<vmem>>, vector<25x32xf32>
    %c0_1 = arith.constant 0 : index
    %c0_2 = arith.constant 0 : index
    %1 = vector.load %arg3[%c0_1, %c0_2] : memref<1x32xf32, #tpu.memory_space<vmem>>, vector<1x32xf32>
    %c0_3 = arith.constant 0 : index
    %2 = memref.load %arg4[%c0_3] : memref<1xf32, #tpu.memory_space<smem>>
    %c0_4 = arith.constant 0 : index
    %c0_5 = arith.constant 0 : index
    %c0_6 = arith.constant 0 : index
    %c0_7 = arith.constant 0 : index
    %3 = vector.load %arg1[%c0_4, %c0_5, %c0_6, %c0_7] : memref<4x4x72x25xf32, #tpu.memory_space<vmem>>, vector<4x4x72x25xf32>
    %4 = vector.shape_cast %3 : vector<4x4x72x25xf32> to vector<1152x25xf32>
    %cst = arith.constant dense<0.000000e+00> : vector<1152x32xf32>
    %5 = tpu.matmul %4, %0, %cst {dimension_numbers = #tpu.dot_dimension_numbers<[1], [0], [0], [1], [0, 0, 1, 1], [], []>} : vector<1152x25xf32>, vector<25x32xf32>, vector<1152x32xf32> -> vector<1152x32xf32>
    %6 = vector.broadcast %1 : vector<1x32xf32> to vector<1152x32xf32>
    %7 = arith.addf %5, %6 : vector<1152x32xf32>
    %cst_8 = arith.constant 0.000000e+00 : f32
    %8 = vector.broadcast %cst_8 : f32 to vector<1152x32xf32>
    %9 = arith.cmpf oge, %7, %8 : vector<1152x32xf32>
    %10 = vector.broadcast %2 : f32 to vector<1152x32xf32>
    %11 = arith.mulf %10, %7 : vector<1152x32xf32>
    %12 = arith.select %9, %7, %11 : vector<1152x32xi1>, vector<1152x32xf32>
    %13 = vector.shape_cast %12 : vector<1152x32xf32> to vector<4x4x72x32xf32>
    %14 = vector.extract_strided_slice %13 {offsets = [0, 0, 0, 0], sizes = [1, 4, 72, 32], strides = [1, 1, 1, 1]} : vector<4x4x72x32xf32> to vector<1x4x72x32xf32>
    %15 = vector.shape_cast %14 : vector<1x4x72x32xf32> to vector<4x72x32xf32>
    %16 = vector.extract_strided_slice %13 {offsets = [1, 0, 0, 0], sizes = [1, 4, 72, 32], strides = [1, 1, 1, 1]} : vector<4x4x72x32xf32> to vector<1x4x72x32xf32>
    %17 = vector.shape_cast %16 : vector<1x4x72x32xf32> to vector<4x72x32xf32>
    %18 = arith.maximumf %15, %17 : vector<4x72x32xf32>
    %19 = vector.extract_strided_slice %13 {offsets = [2, 0, 0, 0], sizes = [1, 4, 72, 32], strides = [1, 1, 1, 1]} : vector<4x4x72x32xf32> to vector<1x4x72x32xf32>
    %20 = vector.shape_cast %19 : vector<1x4x72x32xf32> to vector<4x72x32xf32>
    %21 = vector.extract_strided_slice %13 {offsets = [3, 0, 0, 0], sizes = [1, 4, 72, 32], strides = [1, 1, 1, 1]} : vector<4x4x72x32xf32> to vector<1x4x72x32xf32>
    %22 = vector.shape_cast %21 : vector<1x4x72x32xf32> to vector<4x72x32xf32>
    %23 = arith.maximumf %20, %22 : vector<4x72x32xf32>
    %24 = arith.maximumf %18, %23 : vector<4x72x32xf32>
    %25 = vector.extract_strided_slice %24 {offsets = [0, 0, 0], sizes = [1, 72, 32], strides = [1, 1, 1]} : vector<4x72x32xf32> to vector<1x72x32xf32>
    %26 = vector.shape_cast %25 : vector<1x72x32xf32> to vector<72x32xf32>
    %27 = vector.extract_strided_slice %24 {offsets = [1, 0, 0], sizes = [1, 72, 32], strides = [1, 1, 1]} : vector<4x72x32xf32> to vector<1x72x32xf32>
    %28 = vector.shape_cast %27 : vector<1x72x32xf32> to vector<72x32xf32>
    %29 = vector.extract_strided_slice %24 {offsets = [2, 0, 0], sizes = [1, 72, 32], strides = [1, 1, 1]} : vector<4x72x32xf32> to vector<1x72x32xf32>
    %30 = vector.shape_cast %29 : vector<1x72x32xf32> to vector<72x32xf32>
    %31 = vector.extract_strided_slice %24 {offsets = [3, 0, 0], sizes = [1, 72, 32], strides = [1, 1, 1]} : vector<4x72x32xf32> to vector<1x72x32xf32>
    %32 = vector.shape_cast %31 : vector<1x72x32xf32> to vector<72x32xf32>
    %33 = tpu.concatenate %26, %28, %30, %32 in 1 : vector<72x32xf32>, vector<72x32xf32>, vector<72x32xf32>, vector<72x32xf32> -> vector<72x128xf32>
    %c0_9 = arith.constant 0 : index
    %c0_10 = arith.constant 0 : index
    %34 = vector.load %arg5[%c0_9, %c0_10] : memref<72x128xf32, #tpu.memory_space<vmem>>, vector<72x128xf32>
    tpu.vector_store %arg5[%c0_9, %c0_10], %33 {strides = array<i32>} : memref<72x128xf32, #tpu.memory_space<vmem>>, vector<72x128xf32>,
    return
  }
  func.func @transform_0(%arg0: i32) -> (i32, i32, i32, i32) {
    %c0_i32 = arith.constant 0 : i32
    %c0_i32_0 = arith.constant 0 : i32
    %c0_i32_1 = arith.constant 0 : i32
    %c0_i32_2 = arith.constant 0 : i32
    return %c0_i32, %c0_i32_0, %arg0, %c0_i32_1 : i32, i32, i32, i32
  }
  func.func @transform_1(%arg0: i32) -> (i32, i32) {
    %c0_i32 = arith.constant 0 : i32
    %c0_i32_0 = arith.constant 0 : i32
    %c0_i32_1 = arith.constant 0 : i32
    return %c0_i32, %c0_i32_0 : i32, i32
  }
  func.func @transform_2(%arg0: i32) -> (i32, i32) {
    %c0_i32 = arith.constant 0 : i32
    %c0_i32_0 = arith.constant 0 : i32
    %c0_i32_1 = arith.constant 0 : i32
    return %c0_i32, %c0_i32_0 : i32, i32
  }
  func.func @transform_3(%arg0: i32) -> i32 {
    %c0_i32 = arith.constant 0 : i32
    %c0_i32_0 = arith.constant 0 : i32
    return %c0_i32 : i32
  }
  func.func @transform_4(%arg0: i32) -> (i32, i32) {
    %c0_i32 = arith.constant 0 : i32
    %c0_i32_0 = arith.constant 0 : i32
    return %arg0, %c0_i32 : i32, i32
  }
}

module attributes {stable_mosaic.version = 11 : i64} {
  func.func @_mlp_prelu_kernel(%arg0: i32, %arg1: memref<2x1024xf32, #tpu.memory_space<vmem>>, %arg2: memref<1024x256xf32, #tpu.memory_space<vmem>>, %arg3: memref<1x256xf32, #tpu.memory_space<vmem>>, %arg4: memref<256x256xf32, #tpu.memory_space<vmem>>, %arg5: memref<1x256xf32, #tpu.memory_space<vmem>>, %arg6: memref<2xf32, #tpu.memory_space<smem>>, %arg7: memref<2x256xf32, #tpu.memory_space<vmem>>) attributes {dimension_semantics = [#tpu.dimension_semantics<parallel>], iteration_bounds = array<i64: 1>, scalar_prefetch = 0 : i64, scratch_operands = 0 : i64, tpu.core_type = #tpu.core_type<tc>, window_params = [{transform_indices = @transform_0, window_bounds = array<i64: 2, 1024>}, {pipeline_mode = #tpu.pipeline_mode<synchronous>, transform_indices = @transform_1, window_bounds = array<i64: 1024, 256>}, {pipeline_mode = #tpu.pipeline_mode<synchronous>, transform_indices = @transform_2, window_bounds = array<i64: 1, 256>}, {pipeline_mode = #tpu.pipeline_mode<synchronous>, transform_indices = @transform_3, window_bounds = array<i64: 256, 256>}, {pipeline_mode = #tpu.pipeline_mode<synchronous>, transform_indices = @transform_4, window_bounds = array<i64: 1, 256>}, {transform_indices = @transform_5, window_bounds = array<i64: 2>}, {transform_indices = @transform_6, window_bounds = array<i64: 2, 256>}]} {
    %c0 = arith.constant 0 : index
    %c0_0 = arith.constant 0 : index
    %0 = vector.load %arg1[%c0, %c0_0] : memref<2x1024xf32, #tpu.memory_space<vmem>>, vector<2x1024xf32>
    %c0_1 = arith.constant 0 : index
    %c0_2 = arith.constant 0 : index
    %1 = vector.load %arg2[%c0_1, %c0_2] : memref<1024x256xf32, #tpu.memory_space<vmem>>, vector<1024x256xf32>
    %cst = arith.constant dense<0.000000e+00> : vector<2x256xf32>
    %2 = tpu.matmul %0, %1, %cst {dimension_numbers = #tpu.dot_dimension_numbers<[1], [0], [0], [1], [0, 0, 1, 1], [], []>} : vector<2x1024xf32>, vector<1024x256xf32>, vector<2x256xf32> -> vector<2x256xf32>
    %c0_3 = arith.constant 0 : index
    %c0_4 = arith.constant 0 : index
    %3 = vector.load %arg3[%c0_3, %c0_4] : memref<1x256xf32, #tpu.memory_space<vmem>>, vector<1x256xf32>
    %4 = vector.broadcast %3 : vector<1x256xf32> to vector<2x256xf32>
    %5 = arith.addf %2, %4 : vector<2x256xf32>
    %cst_5 = arith.constant 0.000000e+00 : f32
    %6 = vector.broadcast %cst_5 : f32 to vector<2x256xf32>
    %7 = arith.cmpf oge, %5, %6 : vector<2x256xf32>
    %c0_6 = arith.constant 0 : index
    %8 = memref.load %arg6[%c0_6] : memref<2xf32, #tpu.memory_space<smem>>
    %9 = vector.broadcast %8 : f32 to vector<2x256xf32>
    %10 = arith.mulf %9, %5 : vector<2x256xf32>
    %11 = arith.select %7, %5, %10 : vector<2x256xi1>, vector<2x256xf32>
    %c0_7 = arith.constant 0 : index
    %c0_8 = arith.constant 0 : index
    %12 = vector.load %arg4[%c0_7, %c0_8] : memref<256x256xf32, #tpu.memory_space<vmem>>, vector<256x256xf32>
    %cst_9 = arith.constant dense<0.000000e+00> : vector<2x256xf32>
    %13 = tpu.matmul %11, %12, %cst_9 {dimension_numbers = #tpu.dot_dimension_numbers<[1], [0], [0], [1], [0, 0, 1, 1], [], []>} : vector<2x256xf32>, vector<256x256xf32>, vector<2x256xf32> -> vector<2x256xf32>
    %c0_10 = arith.constant 0 : index
    %c0_11 = arith.constant 0 : index
    %14 = vector.load %arg5[%c0_10, %c0_11] : memref<1x256xf32, #tpu.memory_space<vmem>>, vector<1x256xf32>
    %15 = vector.broadcast %14 : vector<1x256xf32> to vector<2x256xf32>
    %16 = arith.addf %13, %15 : vector<2x256xf32>
    %cst_12 = arith.constant 0.000000e+00 : f32
    %17 = vector.broadcast %cst_12 : f32 to vector<2x256xf32>
    %18 = arith.cmpf oge, %16, %17 : vector<2x256xf32>
    %c1 = arith.constant 1 : index
    %19 = memref.load %arg6[%c1] : memref<2xf32, #tpu.memory_space<smem>>
    %20 = vector.broadcast %19 : f32 to vector<2x256xf32>
    %21 = arith.mulf %20, %16 : vector<2x256xf32>
    %22 = arith.select %18, %16, %21 : vector<2x256xi1>, vector<2x256xf32>
    %c0_13 = arith.constant 0 : index
    %c0_14 = arith.constant 0 : index
    %23 = vector.load %arg7[%c0_13, %c0_14] : memref<2x256xf32, #tpu.memory_space<vmem>>, vector<2x256xf32>
    tpu.vector_store %arg7[%c0_13, %c0_14], %22 {strides = array<i32>} : memref<2x256xf32, #tpu.memory_space<vmem>>, vector<2x256xf32>,
    return
  }
  func.func @transform_0(%arg0: i32) -> (i32, i32) {
    %c0_i32 = arith.constant 0 : i32
    %c0_i32_0 = arith.constant 0 : i32
    return %arg0, %c0_i32 : i32, i32
  }
  func.func @transform_1(%arg0: i32) -> (i32, i32) {
    %c0_i32 = arith.constant 0 : i32
    %c0_i32_0 = arith.constant 0 : i32
    %c0_i32_1 = arith.constant 0 : i32
    return %c0_i32, %c0_i32_0 : i32, i32
  }
  func.func @transform_2(%arg0: i32) -> (i32, i32) {
    %c0_i32 = arith.constant 0 : i32
    %c0_i32_0 = arith.constant 0 : i32
    %c0_i32_1 = arith.constant 0 : i32
    return %c0_i32, %c0_i32_0 : i32, i32
  }
  func.func @transform_3(%arg0: i32) -> (i32, i32) {
    %c0_i32 = arith.constant 0 : i32
    %c0_i32_0 = arith.constant 0 : i32
    %c0_i32_1 = arith.constant 0 : i32
    return %c0_i32, %c0_i32_0 : i32, i32
  }
  func.func @transform_4(%arg0: i32) -> (i32, i32) {
    %c0_i32 = arith.constant 0 : i32
    %c0_i32_0 = arith.constant 0 : i32
    %c0_i32_1 = arith.constant 0 : i32
    return %c0_i32, %c0_i32_0 : i32, i32
  }
  func.func @transform_5(%arg0: i32) -> i32 {
    %c0_i32 = arith.constant 0 : i32
    %c0_i32_0 = arith.constant 0 : i32
    return %c0_i32 : i32
  }
  func.func @transform_6(%arg0: i32) -> (i32, i32) {
    %c0_i32 = arith.constant 0 : i32
    %c0_i32_0 = arith.constant 0 : i32
    return %arg0, %c0_i32 : i32, i32
  }
}

module attributes {stable_mosaic.version = 11 : i64} {
  func.func @_conv_prelu_pool_kernel(%arg0: i32, %arg1: memref<4x2x16x800xf32, #tpu.memory_space<vmem>>, %arg2: memref<800x64xf32, #tpu.memory_space<vmem>>, %arg3: memref<1x64xf32, #tpu.memory_space<vmem>>, %arg4: memref<1xf32, #tpu.memory_space<smem>>, %arg5: memref<16x128xf32, #tpu.memory_space<vmem>>) attributes {dimension_semantics = [#tpu.dimension_semantics<parallel>], iteration_bounds = array<i64: 1>, scalar_prefetch = 0 : i64, scratch_operands = 0 : i64, tpu.core_type = #tpu.core_type<tc>, window_params = [{transform_indices = @transform_0, window_bounds = array<i64: 4, 2, 16, 800>}, {pipeline_mode = #tpu.pipeline_mode<synchronous>, transform_indices = @transform_1, window_bounds = array<i64: 800, 64>}, {pipeline_mode = #tpu.pipeline_mode<synchronous>, transform_indices = @transform_2, window_bounds = array<i64: 1, 64>}, {transform_indices = @transform_3, window_bounds = array<i64: 1>}, {transform_indices = @transform_4, window_bounds = array<i64: 16, 128>}]} {
    %c0 = arith.constant 0 : index
    %c0_0 = arith.constant 0 : index
    %0 = vector.load %arg2[%c0, %c0_0] : memref<800x64xf32, #tpu.memory_space<vmem>>, vector<800x64xf32>
    %c0_1 = arith.constant 0 : index
    %c0_2 = arith.constant 0 : index
    %1 = vector.load %arg3[%c0_1, %c0_2] : memref<1x64xf32, #tpu.memory_space<vmem>>, vector<1x64xf32>
    %c0_3 = arith.constant 0 : index
    %2 = memref.load %arg4[%c0_3] : memref<1xf32, #tpu.memory_space<smem>>
    %c0_4 = arith.constant 0 : index
    %c0_5 = arith.constant 0 : index
    %c0_6 = arith.constant 0 : index
    %c0_7 = arith.constant 0 : index
    %3 = vector.load %arg1[%c0_4, %c0_5, %c0_6, %c0_7] : memref<4x2x16x800xf32, #tpu.memory_space<vmem>>, vector<4x2x16x800xf32>
    %4 = vector.shape_cast %3 : vector<4x2x16x800xf32> to vector<128x800xf32>
    %cst = arith.constant dense<0.000000e+00> : vector<128x64xf32>
    %5 = tpu.matmul %4, %0, %cst {dimension_numbers = #tpu.dot_dimension_numbers<[1], [0], [0], [1], [0, 0, 1, 1], [], []>} : vector<128x800xf32>, vector<800x64xf32>, vector<128x64xf32> -> vector<128x64xf32>
    %6 = vector.broadcast %1 : vector<1x64xf32> to vector<128x64xf32>
    %7 = arith.addf %5, %6 : vector<128x64xf32>
    %cst_8 = arith.constant 0.000000e+00 : f32
    %8 = vector.broadcast %cst_8 : f32 to vector<128x64xf32>
    %9 = arith.cmpf oge, %7, %8 : vector<128x64xf32>
    %10 = vector.broadcast %2 : f32 to vector<128x64xf32>
    %11 = arith.mulf %10, %7 : vector<128x64xf32>
    %12 = arith.select %9, %7, %11 : vector<128x64xi1>, vector<128x64xf32>
    %13 = vector.shape_cast %12 : vector<128x64xf32> to vector<4x2x16x64xf32>
    %14 = vector.extract_strided_slice %13 {offsets = [0, 0, 0, 0], sizes = [1, 2, 16, 64], strides = [1, 1, 1, 1]} : vector<4x2x16x64xf32> to vector<1x2x16x64xf32>
    %15 = vector.shape_cast %14 : vector<1x2x16x64xf32> to vector<2x16x64xf32>
    %16 = vector.extract_strided_slice %13 {offsets = [1, 0, 0, 0], sizes = [1, 2, 16, 64], strides = [1, 1, 1, 1]} : vector<4x2x16x64xf32> to vector<1x2x16x64xf32>
    %17 = vector.shape_cast %16 : vector<1x2x16x64xf32> to vector<2x16x64xf32>
    %18 = arith.maximumf %15, %17 : vector<2x16x64xf32>
    %19 = vector.extract_strided_slice %13 {offsets = [2, 0, 0, 0], sizes = [1, 2, 16, 64], strides = [1, 1, 1, 1]} : vector<4x2x16x64xf32> to vector<1x2x16x64xf32>
    %20 = vector.shape_cast %19 : vector<1x2x16x64xf32> to vector<2x16x64xf32>
    %21 = vector.extract_strided_slice %13 {offsets = [3, 0, 0, 0], sizes = [1, 2, 16, 64], strides = [1, 1, 1, 1]} : vector<4x2x16x64xf32> to vector<1x2x16x64xf32>
    %22 = vector.shape_cast %21 : vector<1x2x16x64xf32> to vector<2x16x64xf32>
    %23 = arith.maximumf %20, %22 : vector<2x16x64xf32>
    %24 = arith.maximumf %18, %23 : vector<2x16x64xf32>
    %25 = vector.extract_strided_slice %24 {offsets = [0, 0, 0], sizes = [1, 16, 64], strides = [1, 1, 1]} : vector<2x16x64xf32> to vector<1x16x64xf32>
    %26 = vector.shape_cast %25 : vector<1x16x64xf32> to vector<16x64xf32>
    %27 = vector.extract_strided_slice %24 {offsets = [1, 0, 0], sizes = [1, 16, 64], strides = [1, 1, 1]} : vector<2x16x64xf32> to vector<1x16x64xf32>
    %28 = vector.shape_cast %27 : vector<1x16x64xf32> to vector<16x64xf32>
    %29 = tpu.concatenate %26, %28 in 1 : vector<16x64xf32>, vector<16x64xf32> -> vector<16x128xf32>
    %c0_9 = arith.constant 0 : index
    %c0_10 = arith.constant 0 : index
    %30 = vector.load %arg5[%c0_9, %c0_10] : memref<16x128xf32, #tpu.memory_space<vmem>>, vector<16x128xf32>
    tpu.vector_store %arg5[%c0_9, %c0_10], %29 {strides = array<i32>} : memref<16x128xf32, #tpu.memory_space<vmem>>, vector<16x128xf32>,
    return
  }
  func.func @transform_0(%arg0: i32) -> (i32, i32, i32, i32) {
    %c0_i32 = arith.constant 0 : i32
    %c0_i32_0 = arith.constant 0 : i32
    %c0_i32_1 = arith.constant 0 : i32
    %c0_i32_2 = arith.constant 0 : i32
    return %c0_i32, %c0_i32_0, %arg0, %c0_i32_1 : i32, i32, i32, i32
  }
  func.func @transform_1(%arg0: i32) -> (i32, i32) {
    %c0_i32 = arith.constant 0 : i32
    %c0_i32_0 = arith.constant 0 : i32
    %c0_i32_1 = arith.constant 0 : i32
    return %c0_i32, %c0_i32_0 : i32, i32
  }
  func.func @transform_2(%arg0: i32) -> (i32, i32) {
    %c0_i32 = arith.constant 0 : i32
    %c0_i32_0 = arith.constant 0 : i32
    %c0_i32_1 = arith.constant 0 : i32
    return %c0_i32, %c0_i32_0 : i32, i32
  }
  func.func @transform_3(%arg0: i32) -> i32 {
    %c0_i32 = arith.constant 0 : i32
    %c0_i32_0 = arith.constant 0 : i32
    return %c0_i32 : i32
  }
  func.func @transform_4(%arg0: i32) -> (i32, i32) {
    %c0_i32 = arith.constant 0 : i32
    %c0_i32_0 = arith.constant 0 : i32
    return %arg0, %c0_i32 : i32, i32
  }
}

</mosaic_0001>

<bundles_post_ra>
// kernel: embedding_net_forward.3
= control target key start
LH: loop header
LB: loop body
LE: loop exit
PB: predicated region body
PF: predicated region fallthrough
CT: control target
= control target key end

     0   :  { %vm607_vm0 = vcmask 1040384   ;;  %vm174_vm1 = vcmask 203776   ;;  %vm2625_vm2 = vmmov 1   ;;  %s2627_s18 = smov 64   ;;  %s2628_s19 = smov 96   ;;  %s4167_s1 = inlined_call_operand.vmem [shape: f32[25,32], index: 1, kind: input, shape index: {}]   ;;  %s4168_s0 = inlined_call_operand.vmem [shape: f32[4,4,72,25], index: 0, kind: input, shape index: {}]   ;;  %s4169_s2 = inlined_call_operand.vmem [shape: f32[1,32], index: 2, kind: input, shape index: {}]   ;;  %s4170_s3 = inlined_call_operand.<no memory space> [shape: f32[1], index: 3, kind: input, shape index: {}]   ;;  %s4171_s4 = inlined_call_operand.vmem [shape: f32[72,128], index: 4, kind: output, shape index: {}]  }
   0x1   :  { %v18_v0 = vld [vmem:[%s4167_s1] sm:$0xff]  ;;  %v19_v1 = vld [vmem:[%s4167_s1 + $0x8] sm:$0xff]  ;;  %v20_v2 = vld [vmem:[%s4167_s1 + $0x10] sm:$0xff] }
   0x2   :  { %v2606_v3 = vpack.c.bf16 %v19_v1, %v18_v0  ;;  %v21_v4 = vld [vmem:[%s4167_s1 + $0x18] sm:$0x1]  ;;  %v24_v5 = vld [vmem:[%s4168_s0] sm:$0xff]  ;;  %vm2611_vm3 = vmpackc.low %vm607_vm0, %vm2625_vm2 }
   0x3   :  { %v2610_v6 = vpack.c.bf16 %v21_v4, %v20_v2  ;;  %2390 = vmatprep.mubr.msk.f32.mxu0 %vm174_vm1, %v24_v5  ;;  %v96_v7 = vld [vmem:[%s4168_s0 + $0x240] sm:$0xff]  ;;  %v25_v8 = vld [vmem:[%s4168_s0 + $0x8] sm:$0xff]  ;;  %v26_v10 = vld [vmem:[%s4168_s0 + $0x10] sm:$0xff] }
   0x4   :  { %2607 = vmatprep.subr.bf16.mxu0 %v2606_v3  ;;  %2616 = vmatprep.subr.bf16.mxu1 %v2606_v3  ;;  %v97_v9 = vld [vmem:[%s4168_s0 + $0x248] sm:$0xff]  ;;  %v98_v11 = vld [vmem:[%s4168_s0 + $0x250] sm:$0xff]  ;;  %v27_v12 = vld [vmem:[%s4168_s0 + $0x18] sm:$0xff] }
   0x5   :  { %2609 = vmatpush3.bf16.msra.mxu0 %v2606_v3  ;;  %2618 = vmatpush3.bf16.msra.mxu1 %v2606_v3  ;;  %v99_v13 = vld [vmem:[%s4168_s0 + $0x258] sm:$0xff]  ;;  %v28_v14 = vld [vmem:[%s4168_s0 + $0x20] sm:$0xff]  ;;  %v29_v16 = vld [vmem:[%s4168_s0 + $0x28] sm:$0xff] }
   0x6   :  { %2612 = vmatprep.subr.msk.bf16.mxu0 %vm2611_vm3, %v2610_v6  ;;  %2617 = vmatprep.subr.msk.bf16.mxu1 %vm2611_vm3, %v2610_v6  ;;  %v100_v15 = vld [vmem:[%s4168_s0 + $0x260] sm:$0xff]  ;;  %v101_v17 = vld [vmem:[%s4168_s0 + $0x268] sm:$0xff]  ;;  %v30_v18 = vld [vmem:[%s4168_s0 + $0x30] sm:$0xff] }
   0x7   :  { %2498 = vmatprep.mubr.msk.f32.mxu1 %vm174_vm1, %v96_v7  ;;  %v102_v19 = vld [vmem:[%s4168_s0 + $0x270] sm:$0xff]  ;;  %v31_v20 = vld [vmem:[%s4168_s0 + $0x38] sm:$0xff]  ;;  %v32_v22 = vld [vmem:[%s4168_s0 + $0x40] sm:$0xff] }
   0x8   :  { %v103_v21 = vld [vmem:[%s4168_s0 + $0x278] sm:$0xff]  ;;  %v104_v23 = vld [vmem:[%s4168_s0 + $0x280] sm:$0xff]  ;;  %v33_v24 = vld [vmem:[%s4168_s0 + $0x48] sm:$0xff] }
   0x9   :  { %2615 = vmatpush3.bf16.msk.msra.mxu0 %vm2611_vm3, %v2610_v6  ;;  %2619 = vmatpush3.bf16.msk.msra.mxu1 %vm2611_vm3, %v2610_v6  ;;  %v105_v25 = vld [vmem:[%s4168_s0 + $0x288] sm:$0xff]  ;;  %v34_v26 = vld [vmem:[%s4168_s0 + $0x50] sm:$0xff]  ;;  %v35_v28 = vld [vmem:[%s4168_s0 + $0x58] sm:$0xff] }
   0xa   :  { %v106_v27 = vld [vmem:[%s4168_s0 + $0x290] sm:$0xff]  ;;  %v107_v29 = vld [vmem:[%s4168_s0 + $0x298] sm:$0xff]  ;;  %v36_v30 = vld [vmem:[%s4168_s0 + $0x60] sm:$0xff] }
   0xb   :  { %v108_v31 = vld [vmem:[%s4168_s0 + $0x2a0] sm:$0xff]  ;;  %v37_v32 = vld [vmem:[%s4168_s0 + $0x68] sm:$0xff]  ;;  %v38_v34 = vld [vmem:[%s4168_s0 + $0x70] sm:$0xff] }
   0xc   :  { %2391 = vmatmul.mubr.msk.f32.vlgmr.msra.gmra.mrb[0].mxu0 %vm174_vm1, %v25_v8  ;;  %2499 = vmatmul.mubr.msk.f32.vlgmr.msra.gmra.mrb[0].mxu1 %vm174_vm1, %v97_v9  ;;  %v109_v33 = vld [vmem:[%s4168_s0 + $0x2a8] sm:$0xff]  ;;  %v110_v35 = vld [vmem:[%s4168_s0 + $0x2b0] sm:$0xff]  ;;  %v39_v36 = vld [vmem:[%s4168_s0 + $0x78] sm:$0xff] }
   0xd   :  { %2393 = vmatprep.mubr.msk.f32.mxu0 %vm174_vm1, %v26_v10  ;;  %2501 = vmatprep.mubr.msk.f32.mxu1 %vm174_vm1, %v98_v11  ;;  %v111_v37 = vld [vmem:[%s4168_s0 + $0x2b8] sm:$0xff]  ;;  %v40_v38 = vld [vmem:[%s4168_s0 + $0x80] sm:$0xff]  ;;  %v41_v40 = vld [vmem:[%s4168_s0 + $0x88] sm:$0xff] }
   0xe   :  { %v112_v39 = vld [vmem:[%s4168_s0 + $0x2c0] sm:$0xff]  ;;  %v113_v41 = vld [vmem:[%s4168_s0 + $0x2c8] sm:$0xff]  ;;  %v42_v42 = vld [vmem:[%s4168_s0 + $0x90] sm:$0xff] }
   0xf   :  { %v114_v43 = vld [vmem:[%s4168_s0 + $0x2d0] sm:$0xff]  ;;  %v43_v44 = vld [vmem:[%s4168_s0 + $0x98] sm:$0xff]  ;;  %v44_v46 = vld [vmem:[%s4168_s0 + $0xa0] sm:$0xff] }
  0x10   :  { %2394 = vmatmul.mubr.msk.f32.gmra.mrb[2].mxu0 %vm174_vm1, %v27_v12  ;;  %2502 = vmatmul.mubr.msk.f32.gmra.mrb[2].mxu1 %vm174_vm1, %v99_v13  ;;  %v115_v45 = vld [vmem:[%s4168_s0 + $0x2d8] sm:$0xff]  ;;  %v116_v47 = vld [vmem:[%s4168_s0 + $0x2e0] sm:$0xff]  ;;  %v45_v48 = vld [vmem:[%s4168_s0 + $0xa8] sm:$0xff] }
  0x11   :  { %2396 = vmatprep.mubr.msk.f32.mxu0 %vm174_vm1, %v28_v14  ;;  %2504 = vmatprep.mubr.msk.f32.mxu1 %vm174_vm1, %v100_v15  ;;  %v117_v49 = vld [vmem:[%s4168_s0 + $0x2e8] sm:$0xff]  ;;  %v46_v50 = vld [vmem:[%s4168_s0 + $0xb0] sm:$0xff]  ;;  %v47_v52 = vld [vmem:[%s4168_s0 + $0xb8] sm:$0xff] }
  0x12   :  { %v118_v51 = vld [vmem:[%s4168_s0 + $0x2f0] sm:$0xff]  ;;  %v119_v53 = vld [vmem:[%s4168_s0 + $0x2f8] sm:$0xff]  ;;  %v48_v54 = vld [vmem:[%s4168_s0 + $0xc0] sm:$0xff] }
  0x13   :  { %v120_v55 = vld [vmem:[%s4168_s0 + $0x300] sm:$0xff]  ;;  %v49_v56 = vld [vmem:[%s4168_s0 + $0xc8] sm:$0xff]  ;;  %v50_v58 = vld [vmem:[%s4168_s0 + $0xd0] sm:$0xff] }
  0x14   :  { %2397 = vmatmul.mubr.msk.f32.gmra.mrb[4].mxu0 %vm174_vm1, %v29_v16  ;;  %2505 = vmatmul.mubr.msk.f32.gmra.mrb[4].mxu1 %vm174_vm1, %v101_v17  ;;  %v121_v57 = vld [vmem:[%s4168_s0 + $0x308] sm:$0xff]  ;;  %v122_v59 = vld [vmem:[%s4168_s0 + $0x310] sm:$0xff]  ;;  %v51_v60 = vld [vmem:[%s4168_s0 + $0xd8] sm:$0xff] }
  0x15   :  { %2399 = vmatprep.mubr.msk.f32.mxu0 %vm174_vm1, %v30_v18  ;;  %2507 = vmatprep.mubr.msk.f32.mxu1 %vm174_vm1, %v102_v19  ;;  %v123_v61 = vld [vmem:[%s4168_s0 + $0x318] sm:$0xff]  ;;  %v52_v62 = vld [vmem:[%s4168_s0 + $0xe0] sm:$0xff]  ;;  %v53_v0 = vld [vmem:[%s4168_s0 + $0xe8] sm:$0xff] }
  0x16   :  { %v124_v63 = vld [vmem:[%s4168_s0 + $0x320] sm:$0xff]  ;;  %v125_v1 = vld [vmem:[%s4168_s0 + $0x328] sm:$0xff]  ;;  %v54_v2 = vld [vmem:[%s4168_s0 + $0xf0] sm:$0xff] }
  0x17   :  { %v126_v3 = vld [vmem:[%s4168_s0 + $0x330] sm:$0xff]  ;;  %v55_v4 = vld [vmem:[%s4168_s0 + $0xf8] sm:$0xff]  ;;  %v56_v6 = vld [vmem:[%s4168_s0 + $0x100] sm:$0xff] }
  0x18   :  { %2400 = vmatmul.mubr.msk.f32.gmra.mrb[6].mxu0 %vm174_vm1, %v31_v20  ;;  %2508 = vmatmul.mubr.msk.f32.gmra.mrb[6].mxu1 %vm174_vm1, %v103_v21  ;;  %v127_v5 = vld [vmem:[%s4168_s0 + $0x338] sm:$0xff]  ;;  %v128_v7 = vld [vmem:[%s4168_s0 + $0x340] sm:$0xff]  ;;  %v57_v8 = vld [vmem:[%s4168_s0 + $0x108] sm:$0xff] }
  0x19   :  { %2402 = vmatprep.mubr.msk.f32.mxu0 %vm174_vm1, %v32_v22  ;;  %2510 = vmatprep.mubr.msk.f32.mxu1 %vm174_vm1, %v104_v23  ;;  %v129_v9 = vld [vmem:[%s4168_s0 + $0x348] sm:$0xff]  ;;  %v58_v10 = vld [vmem:[%s4168_s0 + $0x110] sm:$0xff]  ;;  %v59_v12 = vld [vmem:[%s4168_s0 + $0x118] sm:$0xff] }
  0x1a   :  { %v130_v11 = vld [vmem:[%s4168_s0 + $0x350] sm:$0xff]  ;;  %v131_v13 = vld [vmem:[%s4168_s0 + $0x358] sm:$0xff]  ;;  %v60_v14 = vld [vmem:[%s4168_s0 + $0x120] sm:$0xff] }
  0x1b   :  { %v132_v15 = vld [vmem:[%s4168_s0 + $0x360] sm:$0xff]  ;;  %v61_v16 = vld [vmem:[%s4168_s0 + $0x128] sm:$0xff]  ;;  %v62_v18 = vld [vmem:[%s4168_s0 + $0x130] sm:$0xff] }
  0x1c   :  { %2403 = vmatmul.mubr.msk.f32.gmra.mrb[8].mxu0 %vm174_vm1, %v33_v24  ;;  %2511 = vmatmul.mubr.msk.f32.gmra.mrb[8].mxu1 %vm174_vm1, %v105_v25  ;;  %v133_v17 = vld [vmem:[%s4168_s0 + $0x368] sm:$0xff]  ;;  %v134_v19 = vld [vmem:[%s4168_s0 + $0x370] sm:$0xff]  ;;  %v63_v20 = vld [vmem:[%s4168_s0 + $0x138] sm:$0xff] }
  0x1d   :  { %2405 = vmatprep.mubr.msk.f32.mxu0 %vm174_vm1, %v34_v26  ;;  %2513 = vmatprep.mubr.msk.f32.mxu1 %vm174_vm1, %v106_v27  ;;  %v135_v21 = vld [vmem:[%s4168_s0 + $0x378] sm:$0xff]  ;;  %v64_v22 = vld [vmem:[%s4168_s0 + $0x140] sm:$0xff]  ;;  %v65_v24 = vld [vmem:[%s4168_s0 + $0x148] sm:$0xff] }
  0x1e   :  { %v136_v23 = vld [vmem:[%s4168_s0 + $0x380] sm:$0xff]  ;;  %v137_v25 = vld [vmem:[%s4168_s0 + $0x388] sm:$0xff]  ;;  %v66_v26 = vld [vmem:[%s4168_s0 + $0x150] sm:$0xff] }
  0x1f   :  { %v138_v27 = vld [vmem:[%s4168_s0 + $0x390] sm:$0xff] }
  0x20   :  { %2406 = vmatmul.mubr.msk.f32.gmra.mrb[10].mxu0 %vm174_vm1, %v35_v28  ;;  %2514 = vmatmul.mubr.msk.f32.gmra.mrb[10].mxu1 %vm174_vm1, %v107_v29  ;;  %v67_v28 = vld [vmem:[%s4168_s0 + $0x158] sm:$0xff] }
  0x21   :  { %2408 = vmatprep.mubr.msk.f32.mxu0 %vm174_vm1, %v36_v30  ;;  %2516 = vmatprep.mubr.msk.f32.mxu1 %vm174_vm1, %v108_v31  ;;  %v139_v29 = vld [vmem:[%s4168_s0 + $0x398] sm:$0xff]  ;;  %v68_v30 = vld [vmem:[%s4168_s0 + $0x160] sm:$0xff] }
  0x22   :  { %v140_v31 = vld [vmem:[%s4168_s0 + $0x3a0] sm:$0xff] }
  0x24   :  { %2409 = vmatmul.mubr.msk.f32.gmra.mrb[12].mxu0 %vm174_vm1, %v37_v32  ;;  %2517 = vmatmul.mubr.msk.f32.gmra.mrb[12].mxu1 %vm174_vm1, %v109_v33  ;;  %v69_v32 = vld [vmem:[%s4168_s0 + $0x168] sm:$0xff] }
  0x25   :  { %2411 = vmatprep.mubr.msk.f32.mxu0 %vm174_vm1, %v38_v34  ;;  %2519 = vmatprep.mubr.msk.f32.mxu1 %vm174_vm1, %v110_v35  ;;  %v141_v33 = vld [vmem:[%s4168_s0 + $0x3a8] sm:$0xff]  ;;  %v70_v34 = vld [vmem:[%s4168_s0 + $0x170] sm:$0xff] }
  0x26   :  { %v142_v35 = vld [vmem:[%s4168_s0 + $0x3b0] sm:$0xff] }
  0x28   :  { %2412 = vmatmul.mubr.msk.f32.gmra.mrb[14].mxu0 %vm174_vm1, %v39_v36  ;;  %2520 = vmatmul.mubr.msk.f32.gmra.mrb[14].mxu1 %vm174_vm1, %v111_v37  ;;  %v71_v36 = vld [vmem:[%s4168_s0 + $0x178] sm:$0xff] }
  0x29   :  { %2414 = vmatprep.mubr.msk.f32.mxu0 %vm174_vm1, %v40_v38  ;;  %2522 = vmatprep.mubr.msk.f32.mxu1 %vm174_vm1, %v112_v39  ;;  %v143_v37 = vld [vmem:[%s4168_s0 + $0x3b8] sm:$0xff]  ;;  %v72_v38 = vld [vmem:[%s4168_s0 + $0x180] sm:$0xff] }
  0x2a   :  { %v144_v39 = vld [vmem:[%s4168_s0 + $0x3c0] sm:$0xff] }
  0x2c   :  { %2415 = vmatmul.mubr.msk.f32.gmra.mrb[16].mxu0 %vm174_vm1, %v41_v40  ;;  %2523 = vmatmul.mubr.msk.f32.gmra.mrb[16].mxu1 %vm174_vm1, %v113_v41  ;;  %v73_v40 = vld [vmem:[%s4168_s0 + $0x188] sm:$0xff] }
  0x2d   :  { %2417 = vmatprep.mubr.msk.f32.mxu0 %vm174_vm1, %v42_v42  ;;  %2525 = vmatprep.mubr.msk.f32.mxu1 %vm174_vm1, %v114_v43  ;;  %v145_v41 = vld [vmem:[%s4168_s0 + $0x3c8] sm:$0xff]  ;;  %v74_v42 = vld [vmem:[%s4168_s0 + $0x190] sm:$0xff] }
  0x2e   :  { %v146_v43 = vld [vmem:[%s4168_s0 + $0x3d0] sm:$0xff] }
  0x30   :  { %2418 = vmatmul.mubr.msk.f32.gmra.mrb[18].mxu0 %vm174_vm1, %v43_v44  ;;  %2526 = vmatmul.mubr.msk.f32.gmra.mrb[18].mxu1 %vm174_vm1, %v115_v45  ;;  %v75_v44 = vld [vmem:[%s4168_s0 + $0x198] sm:$0xff] }
  0x31   :  { %2420 = vmatprep.mubr.msk.f32.mxu0 %vm174_vm1, %v44_v46  ;;  %2528 = vmatprep.mubr.msk.f32.mxu1 %vm174_vm1, %v116_v47  ;;  %v147_v45 = vld [vmem:[%s4168_s0 + $0x3d8] sm:$0xff]  ;;  %v76_v46 = vld [vmem:[%s4168_s0 + $0x1a0] sm:$0xff] }
  0x32   :  { %v148_v47 = vld [vmem:[%s4168_s0 + $0x3e0] sm:$0xff] }
  0x34   :  { %2421 = vmatmul.mubr.msk.f32.gmra.mrb[20].mxu0 %vm174_vm1, %v45_v48  ;;  %2529 = vmatmul.mubr.msk.f32.gmra.mrb[20].mxu1 %vm174_vm1, %v117_v49  ;;  %v77_v48 = vld [vmem:[%s4168_s0 + $0x1a8] sm:$0xff] }
  0x35   :  { %2423 = vmatprep.mubr.msk.f32.mxu0 %vm174_vm1, %v46_v50  ;;  %2531 = vmatprep.mubr.msk.f32.mxu1 %vm174_vm1, %v118_v51  ;;  %v149_v49 = vld [vmem:[%s4168_s0 + $0x3e8] sm:$0xff]  ;;  %v78_v50 = vld [vmem:[%s4168_s0 + $0x1b0] sm:$0xff] }
  0x36   :  { %v150_v51 = vld [vmem:[%s4168_s0 + $0x3f0] sm:$0xff] }
  0x38   :  { %2424 = vmatmul.mubr.msk.f32.gmra.mrb[22].mxu0 %vm174_vm1, %v47_v52  ;;  %2532 = vmatmul.mubr.msk.f32.gmra.mrb[22].mxu1 %vm174_vm1, %v119_v53  ;;  %v79_v52 = vld [vmem:[%s4168_s0 + $0x1b8] sm:$0xff] }
  0x39   :  { %2426 = vmatprep.mubr.msk.f32.mxu0 %vm174_vm1, %v48_v54  ;;  %2534 = vmatprep.mubr.msk.f32.mxu1 %vm174_vm1, %v120_v55  ;;  %v151_v53 = vld [vmem:[%s4168_s0 + $0x3f8] sm:$0xff]  ;;  %v80_v54 = vld [vmem:[%s4168_s0 + $0x1c0] sm:$0xff] }
  0x3a   :  { %v152_v55 = vld [vmem:[%s4168_s0 + $0x400] sm:$0xff] }
  0x3c   :  { %2427 = vmatmul.mubr.msk.f32.gmra.mrb[24].mxu0 %vm174_vm1, %v49_v56  ;;  %2535 = vmatmul.mubr.msk.f32.gmra.mrb[24].mxu1 %vm174_vm1, %v121_v57  ;;  %v81_v56 = vld [vmem:[%s4168_s0 + $0x1c8] sm:$0xff] }
  0x3d   :  { %2429 = vmatprep.mubr.msk.f32.mxu0 %vm174_vm1, %v50_v58  ;;  %2537 = vmatprep.mubr.msk.f32.mxu1 %vm174_vm1, %v122_v59  ;;  %v153_v57 = vld [vmem:[%s4168_s0 + $0x408] sm:$0xff]  ;;  %v82_v58 = vld [vmem:[%s4168_s0 + $0x1d0] sm:$0xff] }
  0x3e   :  { %v154_v59 = vld [vmem:[%s4168_s0 + $0x410] sm:$0xff] }
  0x40   :  { %2430 = vmatmul.mubr.msk.f32.gmra.mrb[26].mxu0 %vm174_vm1, %v51_v60  ;;  %2538 = vmatmul.mubr.msk.f32.gmra.mrb[26].mxu1 %vm174_vm1, %v123_v61  ;;  %v83_v60 = vld [vmem:[%s4168_s0 + $0x1d8] sm:$0xff] }
  0x41   :  { %2432 = vmatprep.mubr.msk.f32.mxu0 %vm174_vm1, %v52_v62  ;;  %2540 = vmatprep.mubr.msk.f32.mxu1 %vm174_vm1, %v124_v63  ;;  %v155_v61 = vld [vmem:[%s4168_s0 + $0x418] sm:$0xff]  ;;  %v84_v62 = vld [vmem:[%s4168_s0 + $0x1e0] sm:$0xff] }
  0x42   :  { %v156_v63 = vld [vmem:[%s4168_s0 + $0x420] sm:$0xff] }
  0x44   :  { %2433 = vmatmul.mubr.msk.f32.gmra.mrb[28].mxu0 %vm174_vm1, %v53_v0  ;;  %2541 = vmatmul.mubr.msk.f32.gmra.mrb[28].mxu1 %vm174_vm1, %v125_v1  ;;  %v85_v0 = vld [vmem:[%s4168_s0 + $0x1e8] sm:$0xff] }
  0x45   :  { %2435 = vmatprep.mubr.msk.f32.mxu0 %vm174_vm1, %v54_v2  ;;  %2543 = vmatprep.mubr.msk.f32.mxu1 %vm174_vm1, %v126_v3  ;;  %v157_v1 = vld [vmem:[%s4168_s0 + $0x428] sm:$0xff]  ;;  %v86_v2 = vld [vmem:[%s4168_s0 + $0x1f0] sm:$0xff] }
  0x46   :  { %v158_v3 = vld [vmem:[%s4168_s0 + $0x430] sm:$0xff] }
  0x48   :  { %2436 = vmatmul.mubr.msk.f32.gmra.mrb[30].mxu0 %vm174_vm1, %v55_v4  ;;  %2544 = vmatmul.mubr.msk.f32.gmra.mrb[30].mxu1 %vm174_vm1, %v127_v5  ;;  %v87_v4 = vld [vmem:[%s4168_s0 + $0x1f8] sm:$0xff] }
  0x49   :  { %2438 = vmatprep.mubr.msk.f32.mxu0 %vm174_vm1, %v56_v6  ;;  %2546 = vmatprep.mubr.msk.f32.mxu1 %vm174_vm1, %v128_v7  ;;  %v159_v5 = vld [vmem:[%s4168_s0 + $0x438] sm:$0xff]  ;;  %v88_v6 = vld [vmem:[%s4168_s0 + $0x200] sm:$0xff] }
  0x4a   :  { %v160_v7 = vld [vmem:[%s4168_s0 + $0x440] sm:$0xff] }
  0x4c   :  { %2439 = vmatmul.mubr.msk.f32.gmra.mrb[32].mxu0 %vm174_vm1, %v57_v8  ;;  %2547 = vmatmul.mubr.msk.f32.gmra.mrb[32].mxu1 %vm174_vm1, %v129_v9  ;;  %v89_v8 = vld [vmem:[%s4168_s0 + $0x208] sm:$0xff] }
  0x4d   :  { %2441 = vmatprep.mubr.msk.f32.mxu0 %vm174_vm1, %v58_v10  ;;  %2549 = vmatprep.mubr.msk.f32.mxu1 %vm174_vm1, %v130_v11  ;;  %v161_v9 = vld [vmem:[%s4168_s0 + $0x448] sm:$0xff]  ;;  %v90_v10 = vld [vmem:[%s4168_s0 + $0x210] sm:$0xff] }
  0x4e   :  { %v162_v11 = vld [vmem:[%s4168_s0 + $0x450] sm:$0xff] }
  0x50   :  { %2442 = vmatmul.mubr.msk.f32.gmra.mrb[34].mxu0 %vm174_vm1, %v59_v12  ;;  %2550 = vmatmul.mubr.msk.f32.gmra.mrb[34].mxu1 %vm174_vm1, %v131_v13  ;;  %v91_v12 = vld [vmem:[%s4168_s0 + $0x218] sm:$0xff] }
  0x51   :  { %2444 = vmatprep.mubr.msk.f32.mxu0 %vm174_vm1, %v60_v14  ;;  %2552 = vmatprep.mubr.msk.f32.mxu1 %vm174_vm1, %v132_v15  ;;  %v163_v13 = vld [vmem:[%s4168_s0 + $0x458] sm:$0xff]  ;;  %v92_v14 = vld [vmem:[%s4168_s0 + $0x220] sm:$0xff] }
  0x52   :  { %v164_v15 = vld [vmem:[%s4168_s0 + $0x460] sm:$0xff] }
  0x54   :  { %2445 = vmatmul.mubr.msk.f32.gmra.mrb[36].mxu0 %vm174_vm1, %v61_v16  ;;  %2553 = vmatmul.mubr.msk.f32.gmra.mrb[36].mxu1 %vm174_vm1, %v133_v17  ;;  %v93_v16 = vld [vmem:[%s4168_s0 + $0x228] sm:$0xff] }
  0x55   :  { %2447 = vmatprep.mubr.msk.f32.mxu0 %vm174_vm1, %v62_v18  ;;  %2555 = vmatprep.mubr.msk.f32.mxu1 %vm174_vm1, %v134_v19  ;;  %v165_v17 = vld [vmem:[%s4168_s0 + $0x468] sm:$0xff]  ;;  %v94_v18 = vld [vmem:[%s4168_s0 + $0x230] sm:$0xff] }
  0x56   :  { %v166_v19 = vld [vmem:[%s4168_s0 + $0x470] sm:$0xff] }
  0x58   :  { %2448 = vmatmul.mubr.msk.f32.gmra.mrb[38].mxu0 %vm174_vm1, %v63_v20  ;;  %2556 = vmatmul.mubr.msk.f32.gmra.mrb[38].mxu1 %vm174_vm1, %v135_v21  ;;  %v95_v20 = vld [vmem:[%s4168_s0 + $0x238] sm:$0xff] }
  0x59   :  { %2450 = vmatprep.mubr.msk.f32.mxu0 %vm174_vm1, %v64_v22  ;;  %2558 = vmatprep.mubr.msk.f32.mxu1 %vm174_vm1, %v136_v23  ;;  %v167_v21 = vld [vmem:[%s4168_s0 + $0x478] sm:$0xff]  ;;  %v3245_v22 = vld [vmem:[%s4169_s2] ss:$0 sm:$0xff] }
  0x5c   :  { %2451 = vmatmul.mubr.msk.f32.gmra.mrb[40].mxu0 %vm174_vm1, %v65_v24  ;;  %2559 = vmatmul.mubr.msk.f32.gmra.mrb[40].mxu1 %vm174_vm1, %v137_v25  ;;  %v3250_v24 = vstv %s4170_s3 }
  0x5d   :  { %2453 = vmatprep.mubr.msk.f32.mxu0 %vm174_vm1, %v66_v26  ;;  %2561 = vmatprep.mubr.msk.f32.mxu1 %vm174_vm1, %v138_v27 }
  0x60   :  { %2454 = vmatmul.mubr.msk.f32.gmra.mrb[42].mxu0 %vm174_vm1, %v67_v28  ;;  %2562 = vmatmul.mubr.msk.f32.gmra.mrb[42].mxu1 %vm174_vm1, %v139_v29 }
  0x61   :  { %2456 = vmatprep.mubr.msk.f32.mxu0 %vm174_vm1, %v68_v30  ;;  %2564 = vmatprep.mubr.msk.f32.mxu1 %vm174_vm1, %v140_v31 }
  0x64   :  { %2457 = vmatmul.mubr.msk.f32.gmra.mrb[44].mxu0 %vm174_vm1, %v69_v32  ;;  %2565 = vmatmul.mubr.msk.f32.gmra.mrb[44].mxu1 %vm174_vm1, %v141_v33 }
  0x65   :  { %2459 = vmatprep.mubr.msk.f32.mxu0 %vm174_vm1, %v70_v34  ;;  %2567 = vmatprep.mubr.msk.f32.mxu1 %vm174_vm1, %v142_v35 }
  0x68   :  { %2460 = vmatmul.mubr.msk.f32.gmra.mrb[46].mxu0 %vm174_vm1, %v71_v36  ;;  %2568 = vmatmul.mubr.msk.f32.gmra.mrb[46].mxu1 %vm174_vm1, %v143_v37 }
  0x69   :  { %2462 = vmatprep.mubr.msk.f32.mxu0 %vm174_vm1, %v72_v38  ;;  %2570 = vmatprep.mubr.msk.f32.mxu1 %vm174_vm1, %v144_v39 }
  0x6c   :  { %2463 = vmatmul.mubr.msk.f32.gmra.mrb[48].mxu0 %vm174_vm1, %v73_v40  ;;  %2571 = vmatmul.mubr.msk.f32.gmra.mrb[48].mxu1 %vm174_vm1, %v145_v41 }
  0x6d   :  { %2465 = vmatprep.mubr.msk.f32.mxu0 %vm174_vm1, %v74_v42  ;;  %2573 = vmatprep.mubr.msk.f32.mxu1 %vm174_vm1, %v146_v43 }
  0x70   :  { %2466 = vmatmul.mubr.msk.f32.gmra.mrb[50].mxu0 %vm174_vm1, %v75_v44  ;;  %2574 = vmatmul.mubr.msk.f32.gmra.mrb[50].mxu1 %vm174_vm1, %v147_v45 }
  0x71   :  { %2468 = vmatprep.mubr.msk.f32.mxu0 %vm174_vm1, %v76_v46  ;;  %2576 = vmatprep.mubr.msk.f32.mxu1 %vm174_vm1, %v148_v47 }
  0x74   :  { %2469 = vmatmul.mubr.msk.f32.gmra.mrb[52].mxu0 %vm174_vm1, %v77_v48  ;;  %2577 = vmatmul.mubr.msk.f32.gmra.mrb[52].mxu1 %vm174_vm1, %v149_v49 }
  0x75   :  { %2471 = vmatprep.mubr.msk.f32.mxu0 %vm174_vm1, %v78_v50  ;;  %2579 = vmatprep.mubr.msk.f32.mxu1 %vm174_vm1, %v150_v51 }
  0x78   :  { %2472 = vmatmul.mubr.msk.f32.gmra.mrb[54].mxu0 %vm174_vm1, %v79_v52  ;;  %2580 = vmatmul.mubr.msk.f32.gmra.mrb[54].mxu1 %vm174_vm1, %v151_v53 }
  0x79   :  { %2474 = vmatprep.mubr.msk.f32.mxu0 %vm174_vm1, %v80_v54  ;;  %2582 = vmatprep.mubr.msk.f32.mxu1 %vm174_vm1, %v152_v55 }
  0x7c   :  { %2475 = vmatmul.mubr.msk.f32.gmra.mrb[56].mxu0 %vm174_vm1, %v81_v56  ;;  %2583 = vmatmul.mubr.msk.f32.gmra.mrb[56].mxu1 %vm174_vm1, %v153_v57 }
  0x7d   :  { %2477 = vmatprep.mubr.msk.f32.mxu0 %vm174_vm1, %v82_v58  ;;  %2585 = vmatprep.mubr.msk.f32.mxu1 %vm174_vm1, %v154_v59 }
  0x80   :  { %2478 = vmatmul.mubr.msk.f32.gmra.mrb[58].mxu0 %vm174_vm1, %v83_v60  ;;  %2586 = vmatmul.mubr.msk.f32.gmra.mrb[58].mxu1 %vm174_vm1, %v155_v61 }
  0x81   :  { %2480 = vmatprep.mubr.msk.f32.mxu0 %vm174_vm1, %v84_v62  ;;  %2588 = vmatprep.mubr.msk.f32.mxu1 %vm174_vm1, %v156_v63 }
  0x84   :  { %2481 = vmatmul.mubr.msk.f32.gmra.mrb[60].mxu0 %vm174_vm1, %v85_v0  ;;  %2589 = vmatmul.mubr.msk.f32.gmra.mrb[60].mxu1 %vm174_vm1, %v157_v1 }
  0x85   :  { %2483 = vmatprep.mubr.msk.f32.mxu0 %vm174_vm1, %v86_v2  ;;  %2591 = vmatprep.mubr.msk.f32.mxu1 %vm174_vm1, %v158_v3 }
  0x88   :  { %2484 = vmatmul.mubr.msk.f32.gmra.mrb[62].mxu0 %vm174_vm1, %v87_v4  ;;  %2592 = vmatmul.mubr.msk.f32.gmra.mrb[62].mxu1 %vm174_vm1, %v159_v5 }
  0x89   :  { %2486 = vmatprep.mubr.msk.f32.mxu0 %vm174_vm1, %v88_v6  ;;  %2594 = vmatprep.mubr.msk.f32.mxu1 %vm174_vm1, %v160_v7 }
  0x8c   :  { %2487 = vmatmul.mubr.msk.f32.gmra.mrb[64].mxu0 %vm174_vm1, %v89_v8  ;;  %2595 = vmatmul.mubr.msk.f32.gmra.mrb[64].mxu1 %vm174_vm1, %v161_v9 }
  0x8d   :  { %2489 = vmatprep.mubr.msk.f32.mxu0 %vm174_vm1, %v90_v10  ;;  %2597 = vmatprep.mubr.msk.f32.mxu1 %vm174_vm1, %v162_v11 }
  0x90   :  { %2490 = vmatmul.mubr.msk.f32.gmra.mrb[66].mxu0 %vm174_vm1, %v91_v12  ;;  %2598 = vmatmul.mubr.msk.f32.gmra.mrb[66].mxu1 %vm174_vm1, %v163_v13 }
  0x91   :  { %2492 = vmatprep.mubr.msk.f32.mxu0 %vm174_vm1, %v92_v14  ;;  %2600 = vmatprep.mubr.msk.f32.mxu1 %vm174_vm1, %v164_v15 }
  0x94   :  { %2493 = vmatmul.mubr.msk.f32.gmra.mrb[68].mxu0 %vm174_vm1, %v93_v16  ;;  %2601 = vmatmul.mubr.msk.f32.gmra.mrb[68].mxu1 %vm174_vm1, %v165_v17 }
  0x95   :  { %2495 = vmatprep.mubr.msk.f32.mxu0 %vm174_vm1, %v94_v18  ;;  %2603 = vmatprep.mubr.msk.f32.mxu1 %vm174_vm1, %v166_v19 }
  0x98   :  { %2496 = vmatmul.mubr.msk.f32.gmra.mrb[70].mxu0 %vm174_vm1, %v95_v20  ;;  %2604 = vmatmul.mubr.msk.f32.gmra.mrb[70].mxu1 %vm174_vm1, %v167_v21 }
  0xdf   :  { %v2392_v23 = vpop.f32.mrb[0].mxu0  ;;  %v2500_v25 = vpop.f32.mrb[0].mxu1 }
  0xe0   :  { %v683_v26 = vadd.f32 %v2392_v23, %v3245_v22  ;;  %v1043_v27 = vadd.f32 %v2500_v25, %v3245_v22  ;;  %v677_v28 = vpop.f32.mrb[1].mxu0  ;;  %v1037_v29 = vpop.f32.mrb[1].mxu1 }
  0xe1   :  { %v678_v30 = vadd.f32 %v3245_v22, %v677_v28  ;;  %v1038_v31 = vadd.f32 %v3245_v22, %v1037_v29 }
  0xe2   :  { %vm1397_vm4 = vcmp.ge.f32.partialorder %v683_v26, 0.0  ;;  %v1542_v32 = vmul.f32 %v3250_v24, %v683_v26  ;;  %v1614_v33 = vmul.f32 %v3250_v24, %v1043_v27  ;;  %vm1469_vm5 = vcmp.ge.f32.partialorder %v1043_v27, 0.0 }
  0xe3   :  { %v1541_v34 = vmul.f32 %v3250_v24, %v678_v30  ;;  %v2395_v35 = vpop.f32.mrb[2].mxu0  ;;  %v2503_v36 = vpop.f32.mrb[2].mxu1  ;;  %vm1396_vm6 = vcmp.ge.f32.partialorder %v678_v30, 0.0  ;;  %vm1468_vm7 = vcmp.ge.f32.partialorder %v1038_v31, 0.0  ;;  %v1613_v42 = vmul.f32 %v3250_v24, %v1038_v31 }
  0xe4   :  { %v693_v37 = vadd.f32 %v2395_v35, %v3245_v22  ;;  %v1053_v38 = vadd.f32 %v2503_v36, %v3245_v22  ;;  %v687_v39 = vpop.f32.mrb[3].mxu0  ;;  %v1047_v40 = vpop.f32.mrb[3].mxu1  ;;  %v3261_v41 = vsel %vm1397_vm4, %v683_v26, %v1542_v32  ;;  %v3266_v45 = vsel %vm1469_vm5, %v1043_v27, %v1614_v33 }
  0xe5   :  { %4200 = vst [vmem:[#allocation3_spill] sm:$0xff] %v3261_v41  ;;  %v688_v43 = vadd.f32 %v3245_v22, %v687_v39  ;;  %v1048_v44 = vadd.f32 %v3245_v22, %v1047_v40  ;;  %4201 = vst [vmem:[#allocation4_spill] sm:$0xff] %v3266_v45  ;;  %v3270_v48 = vsel %vm1396_vm6, %v678_v30, %v1541_v34 }
  0xe6   :  { %vm1399_vm8 = vcmp.ge.f32.partialorder %v693_v37, 0.0  ;;  %v1544_v46 = vmul.f32 %v3250_v24, %v693_v37  ;;  %v1616_v47 = vmul.f32 %v3250_v24, %v1053_v38  ;;  %vm1471_vm9 = vcmp.ge.f32.partialorder %v1053_v38, 0.0 }
  0xe7   :  { %v1543_v49 = vmul.f32 %v3250_v24, %v688_v43  ;;  %v1615_v50 = vmul.f32 %v3250_v24, %v1048_v44  ;;  %v2398_v51 = vpop.f32.mrb[4].mxu0  ;;  %v2506_v52 = vpop.f32.mrb[4].mxu1  ;;  %vm1398_vm10 = vcmp.ge.f32.partialorder %v688_v43, 0.0  ;;  %vm1470_vm11 = vcmp.ge.f32.partialorder %v1048_v44, 0.0 }
  0xe8   :  { %v703_v53 = vadd.f32 %v2398_v51, %v3245_v22  ;;  %v1063_v54 = vadd.f32 %v2506_v52, %v3245_v22  ;;  %v697_v55 = vpop.f32.mrb[5].mxu0  ;;  %v1057_v56 = vpop.f32.mrb[5].mxu1  ;;  %v3277_v57 = vsel %vm1468_vm7, %v1038_v31, %v1613_v42  ;;  %v3280_v58 = vsel %vm1399_vm8, %v693_v37, %v1544_v46 }
  0xe9   :  { %4202 = vst [vmem:[#allocation5_spill] sm:$0xff] %v3280_v58  ;;  %v698_v59 = vadd.f32 %v3245_v22, %v697_v55  ;;  %v1058_v60 = vadd.f32 %v3245_v22, %v1057_v56  ;;  %v3284_v61 = vsel %vm1471_vm9, %v1053_v38, %v1616_v47  ;;  %v3288_v0 = vsel %vm1398_vm10, %v688_v43, %v1543_v49 }
  0xea   :  { %4203 = vst [vmem:[#allocation6_spill] sm:$0xff] %v3284_v61  ;;  %vm1401_vm12 = vcmp.ge.f32.partialorder %v703_v53, 0.0  ;;  %v1546_v62 = vmul.f32 %v3250_v24, %v703_v53  ;;  %v1618_v63 = vmul.f32 %v3250_v24, %v1063_v54  ;;  %v3290_v1 = vsel %vm1470_vm11, %v1048_v44, %v1615_v50 }
  0xeb   :  { %vm1473_vm13 = vcmp.ge.f32.partialorder %v1063_v54, 0.0  ;;  %v1545_v2 = vmul.f32 %v3250_v24, %v698_v59  ;;  %v2401_v3 = vpop.f32.mrb[6].mxu0  ;;  %v2509_v4 = vpop.f32.mrb[6].mxu1  ;;  %vm1400_vm14 = vcmp.ge.f32.partialorder %v698_v59, 0.0  ;;  %vm1472_vm15 = vcmp.ge.f32.partialorder %v1058_v60, 0.0 }
  0xec   :  { %v713_v5 = vadd.f32 %v2401_v3, %v3245_v22  ;;  %v1073_v6 = vadd.f32 %v2509_v4, %v3245_v22  ;;  %v707_v7 = vpop.f32.mrb[7].mxu0  ;;  %v1067_v8 = vpop.f32.mrb[7].mxu1  ;;  %v3295_v9 = vsel %vm1401_vm12, %v703_v53, %v1546_v62  ;;  %v1617_v10 = vmul.f32 %v3250_v24, %v1058_v60 }
  0xed   :  { %4204 = vst [vmem:[#allocation7_spill] sm:$0xff] %v3295_v9  ;;  %v708_v11 = vadd.f32 %v3245_v22, %v707_v7  ;;  %v1068_v12 = vadd.f32 %v3245_v22, %v1067_v8  ;;  %v3300_v13 = vsel %vm1473_vm13, %v1063_v54, %v1618_v63  ;;  %v3304_v16 = vsel %vm1400_vm14, %v698_v59, %v1545_v2 }
  0xee   :  { %4205 = vst [vmem:[#allocation8_spill] sm:$0xff] %v3300_v13  ;;  %vm1403_vm0 = vcmp.ge.f32.partialorder %v713_v5, 0.0  ;;  %v1548_v14 = vmul.f32 %v3250_v24, %v713_v5  ;;  %v1620_v15 = vmul.f32 %v3250_v24, %v1073_v6  ;;  %4206 = vst [vmem:[#allocation9_spill] sm:$0xff] %v3304_v16  ;;  %vm1475_vm1 = vcmp.ge.f32.partialorder %v1073_v6, 0.0 }
  0xef   :  { %v1547_v17 = vmul.f32 %v3250_v24, %v708_v11  ;;  %v1619_v18 = vmul.f32 %v3250_v24, %v1068_v12  ;;  %v2404_v19 = vpop.f32.mrb[8].mxu0  ;;  %v2512_v20 = vpop.f32.mrb[8].mxu1  ;;  %vm1402_vm2 = vcmp.ge.f32.partialorder %v708_v11, 0.0  ;;  %vm1474_vm3 = vcmp.ge.f32.partialorder %v1068_v12, 0.0 }
  0xf0   :  { %v723_v21 = vadd.f32 %v2404_v19, %v3245_v22  ;;  %v1083_v23 = vadd.f32 %v2512_v20, %v3245_v22  ;;  %v717_v25 = vpop.f32.mrb[9].mxu0  ;;  %v1077_v26 = vpop.f32.mrb[9].mxu1  ;;  %v3311_v27 = vsel %vm1472_vm15, %v1058_v60, %v1617_v10  ;;  %v3314_v28 = vsel %vm1403_vm0, %v713_v5, %v1548_v14 }
  0xf1   :  { %4207 = vst [vmem:[#allocation10_spill] sm:$0xff] %v3311_v27  ;;  %4208 = vst [vmem:[#allocation11_spill] sm:$0xff] %v3314_v28  ;;  %v718_v29 = vadd.f32 %v3245_v22, %v717_v25  ;;  %v1078_v30 = vadd.f32 %v3245_v22, %v1077_v26  ;;  %v3318_v31 = vsel %vm1475_vm1, %v1073_v6, %v1620_v15 }
  0xf2   :  { %4209 = vst [vmem:[#allocation12_spill] sm:$0xff] %v3318_v31  ;;  %vm1405_vm4 = vcmp.ge.f32.partialorder %v723_v21, 0.0  ;;  %v1550_v32 = vmul.f32 %v3250_v24, %v723_v21  ;;  %v1622_v33 = vmul.f32 %v3250_v24, %v1083_v23  ;;  %v3322_v34 = vsel %vm1402_vm2, %v708_v11, %v1547_v17 }
  0xf3   :  { %4210 = vst [vmem:[#allocation13_spill] sm:$0xff] %v3322_v34  ;;  %v3324_v35 = vsel %vm1474_vm3, %v1068_v12, %v1619_v18  ;;  %vm1477_vm5 = vcmp.ge.f32.partialorder %v1083_v23, 0.0  ;;  %v1549_v36 = vmul.f32 %v3250_v24, %v718_v29  ;;  %v2407_v37 = vpop.f32.mrb[10].mxu0  ;;  %v2515_v38 = vpop.f32.mrb[10].mxu1  ;;  %vm1404_vm6 = vcmp.ge.f32.partialorder %v718_v29, 0.0 }
  0xf4   :  { %4211 = vst [vmem:[#allocation14_spill] sm:$0xff] %v3324_v35  ;;  %vm1476_vm7 = vcmp.ge.f32.partialorder %v1078_v30, 0.0  ;;  %v733_v39 = vadd.f32 %v2407_v37, %v3245_v22  ;;  %v1093_v40 = vadd.f32 %v2515_v38, %v3245_v22  ;;  %v727_v42 = vpop.f32.mrb[11].mxu0  ;;  %v1087_v43 = vpop.f32.mrb[11].mxu1  ;;  %v1621_v44 = vmul.f32 %v3250_v24, %v1078_v30 }
  0xf5   :  { %v728_v46 = vadd.f32 %v3245_v22, %v727_v42  ;;  %v1088_v47 = vadd.f32 %v3245_v22, %v1087_v43  ;;  %v3333_v49 = vsel %vm1405_vm4, %v723_v21, %v1550_v32  ;;  %v3338_v52 = vsel %vm1477_vm5, %v1083_v23, %v1622_v33 }
  0xf6   :  { %vm1407_vm8 = vcmp.ge.f32.partialorder %v733_v39, 0.0  ;;  %v1552_v50 = vmul.f32 %v3250_v24, %v733_v39  ;;  %v1624_v51 = vmul.f32 %v3250_v24, %v1093_v40  ;;  %v3340_v53 = vsel %vm1404_vm6, %v718_v29, %v1549_v36 }
  0xf7   :  { %4212 = vst [vmem:[#allocation15_spill] sm:$0xff] %v3340_v53  ;;  %vm1479_vm9 = vcmp.ge.f32.partialorder %v1093_v40, 0.0  ;;  %v1551_v54 = vmul.f32 %v3250_v24, %v728_v46  ;;  %v1623_v55 = vmul.f32 %v3250_v24, %v1088_v47  ;;  %v2410_v56 = vpop.f32.mrb[12].mxu0  ;;  %v2518_v59 = vpop.f32.mrb[12].mxu1  ;;  %vm1406_vm10 = vcmp.ge.f32.partialorder %v728_v46, 0.0 }
  0xf8   :  { %vm1478_vm11 = vcmp.ge.f32.partialorder %v1088_v47, 0.0  ;;  %v743_v60 = vadd.f32 %v2410_v56, %v3245_v22  ;;  %v1103_v62 = vadd.f32 %v2518_v59, %v3245_v22  ;;  %v737_v63 = vpop.f32.mrb[13].mxu0  ;;  %v1097_v2 = vpop.f32.mrb[13].mxu1  ;;  %v3347_v3 = vsel %vm1476_vm7, %v1078_v30, %v1621_v44 }
  0xf9   :  { %4213 = vst [vmem:[#allocation16_spill] sm:$0xff] %v3347_v3  ;;  %v738_v4 = vadd.f32 %v3245_v22, %v737_v63  ;;  %v1098_v5 = vadd.f32 %v3245_v22, %v1097_v2  ;;  %v3352_v6 = vsel %vm1407_vm8, %v733_v39, %v1552_v50  ;;  %v3357_v10 = vsel %vm1479_vm9, %v1093_v40, %v1624_v51 }
  0xfa   :  { %vm1409_vm12 = vcmp.ge.f32.partialorder %v743_v60, 0.0  ;;  %v1554_v7 = vmul.f32 %v3250_v24, %v743_v60  ;;  %v1626_v8 = vmul.f32 %v3250_v24, %v1103_v62  ;;  %v3359_v11 = vsel %vm1406_vm10, %v728_v46, %v1551_v54 }
  0xfb   :  { %v3361_v12 = vsel %vm1478_vm11, %v1088_v47, %v1623_v55  ;;  %vm1481_vm13 = vcmp.ge.f32.partialorder %v1103_v62, 0.0  ;;  %v1553_v14 = vmul.f32 %v3250_v24, %v738_v4  ;;  %v2413_v15 = vpop.f32.mrb[14].mxu0  ;;  %v2521_v17 = vpop.f32.mrb[14].mxu1  ;;  %vm1408_vm14 = vcmp.ge.f32.partialorder %v738_v4, 0.0 }
  0xfc   :  { %vm1480_vm15 = vcmp.ge.f32.partialorder %v1098_v5, 0.0  ;;  %v753_v18 = vadd.f32 %v2413_v15, %v3245_v22  ;;  %v1113_v19 = vadd.f32 %v2521_v17, %v3245_v22  ;;  %v747_v20 = vpop.f32.mrb[15].mxu0  ;;  %v1107_v21 = vpop.f32.mrb[15].mxu1  ;;  %v3367_v23 = vsel %vm1409_vm12, %v743_v60, %v1554_v7 }
  0xfd   :  { %v1625_v25 = vmul.f32 %v3250_v24, %v1098_v5  ;;  %v748_v26 = vadd.f32 %v3245_v22, %v747_v20  ;;  %v1108_v29 = vadd.f32 %v3245_v22, %v1107_v21  ;;  %v3372_v30 = vsel %vm1481_vm13, %v1103_v62, %v1626_v8 }
  0xfe   :  { %vm1411_vm0 = vcmp.ge.f32.partialorder %v753_v18, 0.0  ;;  %v1556_v32 = vmul.f32 %v3250_v24, %v753_v18  ;;  %v1628_v33 = vmul.f32 %v3250_v24, %v1113_v19  ;;  %v3376_v36 = vsel %vm1408_vm14, %v738_v4, %v1553_v14 }
  0xff   :  { %vm1483_vm1 = vcmp.ge.f32.partialorder %v1113_v19, 0.0  ;;  %v1555_v37 = vmul.f32 %v3250_v24, %v748_v26  ;;  %v1627_v38 = vmul.f32 %v3250_v24, %v1108_v29  ;;  %v2416_v39 = vpop.f32.mrb[16].mxu0  ;;  %v2524_v40 = vpop.f32.mrb[16].mxu1  ;;  %vm1410_vm2 = vcmp.ge.f32.partialorder %v748_v26, 0.0 }
 0x100   :  { %vm1482_vm3 = vcmp.ge.f32.partialorder %v1108_v29, 0.0  ;;  %v763_v42 = vadd.f32 %v2416_v39, %v3245_v22  ;;  %v1123_v43 = vadd.f32 %v2524_v40, %v3245_v22  ;;  %v757_v44 = vpop.f32.mrb[17].mxu0  ;;  %v1117_v46 = vpop.f32.mrb[17].mxu1  ;;  %v3383_v47 = vsel %vm1480_vm15, %v1098_v5, %v1625_v25 }
 0x101   :  { %v3386_v50 = vsel %vm1411_vm0, %v753_v18, %v1556_v32  ;;  %v758_v51 = vadd.f32 %v3245_v22, %v757_v44  ;;  %v1118_v54 = vadd.f32 %v3245_v22, %v1117_v46  ;;  %v3390_v55 = vsel %vm1483_vm1, %v1113_v19, %v1628_v33 }
 0x102   :  { %vm1413_vm4 = vcmp.ge.f32.partialorder %v763_v42, 0.0  ;;  %v1558_v56 = vmul.f32 %v3250_v24, %v763_v42  ;;  %v1630_v59 = vmul.f32 %v3250_v24, %v1123_v43  ;;  %v3394_v60 = vsel %vm1410_vm2, %v748_v26, %v1555_v37 }
 0x103   :  { %v3396_v62 = vsel %vm1482_vm3, %v1108_v29, %v1627_v38  ;;  %vm1485_vm5 = vcmp.ge.f32.partialorder %v1123_v43, 0.0  ;;  %v1557_v63 = vmul.f32 %v3250_v24, %v758_v51  ;;  %v2419_v2 = vpop.f32.mrb[18].mxu0  ;;  %v2527_v4 = vpop.f32.mrb[18].mxu1  ;;  %vm1412_vm6 = vcmp.ge.f32.partialorder %v758_v51, 0.0 }
 0x104   :  { %vm1484_vm7 = vcmp.ge.f32.partialorder %v1118_v54, 0.0  ;;  %v773_v5 = vadd.f32 %v2419_v2, %v3245_v22  ;;  %v1133_v7 = vadd.f32 %v2527_v4, %v3245_v22  ;;  %v767_v8 = vpop.f32.mrb[19].mxu0  ;;  %v1127_v14 = vpop.f32.mrb[19].mxu1  ;;  %v3401_v15 = vsel %vm1413_vm4, %v763_v42, %v1558_v56 }
 0x105   :  { %v1629_v17 = vmul.f32 %v3250_v24, %v1118_v54  ;;  %v768_v18 = vadd.f32 %v3245_v22, %v767_v8  ;;  %v1128_v19 = vadd.f32 %v3245_v22, %v1127_v14  ;;  %v3406_v20 = vsel %vm1485_vm5, %v1123_v43, %v1630_v59 }
 0x106   :  { %vm1415_vm8 = vcmp.ge.f32.partialorder %v773_v5, 0.0  ;;  %v1560_v21 = vmul.f32 %v3250_v24, %v773_v5  ;;  %v1632_v25 = vmul.f32 %v3250_v24, %v1133_v7  ;;  %v3410_v26 = vsel %vm1412_vm6, %v758_v51, %v1557_v63 }
 0x107   :  { %vm1487_vm9 = vcmp.ge.f32.partialorder %v1133_v7, 0.0  ;;  %v1559_v29 = vmul.f32 %v3250_v24, %v768_v18  ;;  %v1631_v32 = vmul.f32 %v3250_v24, %v1128_v19  ;;  %v2422_v33 = vpop.f32.mrb[20].mxu0  ;;  %v2530_v37 = vpop.f32.mrb[20].mxu1  ;;  %vm1414_vm10 = vcmp.ge.f32.partialorder %v768_v18, 0.0 }
 0x108   :  { %vm1486_vm11 = vcmp.ge.f32.partialorder %v1128_v19, 0.0  ;;  %v783_v38 = vadd.f32 %v2422_v33, %v3245_v22  ;;  %v1143_v39 = vadd.f32 %v2530_v37, %v3245_v22  ;;  %v777_v40 = vpop.f32.mrb[21].mxu0  ;;  %v1137_v42 = vpop.f32.mrb[21].mxu1  ;;  %v3417_v43 = vsel %vm1484_vm7, %v1118_v54, %v1629_v17 }
 0x109   :  { %v3420_v44 = vsel %vm1415_vm8, %v773_v5, %v1560_v21  ;;  %v778_v46 = vadd.f32 %v3245_v22, %v777_v40  ;;  %v1138_v51 = vadd.f32 %v3245_v22, %v1137_v42  ;;  %v3424_v56 = vsel %vm1487_vm9, %v1133_v7, %v1632_v25 }
 0x10a   :  { %4214 = vst [vmem:[#allocation17_spill] sm:$0xff] %v3420_v44  ;;  %4215 = vst [vmem:[#allocation18_spill] sm:$0xff] %v3424_v56  ;;  %vm1417_vm12 = vcmp.ge.f32.partialorder %v783_v38, 0.0  ;;  %v1562_v59 = vmul.f32 %v3250_v24, %v783_v38  ;;  %v1634_v63 = vmul.f32 %v3250_v24, %v1143_v39  ;;  %v3428_v2 = vsel %vm1414_vm10, %v768_v18, %v1559_v29 }
 0x10b   :  { %v3430_v4 = vsel %vm1486_vm11, %v1128_v19, %v1631_v32  ;;  %vm1489_vm13 = vcmp.ge.f32.partialorder %v1143_v39, 0.0  ;;  %v1561_v54 = vmul.f32 %v3250_v24, %v778_v46  ;;  %v2425_v5 = vpop.f32.mrb[22].mxu0  ;;  %v2533_v8 = vpop.f32.mrb[22].mxu1  ;;  %vm1416_vm14 = vcmp.ge.f32.partialorder %v778_v46, 0.0 }
 0x10c   :  { %vm1488_vm15 = vcmp.ge.f32.partialorder %v1138_v51, 0.0  ;;  %v793_v14 = vadd.f32 %v2425_v5, %v3245_v22  ;;  %v1153_v7 = vadd.f32 %v2533_v8, %v3245_v22  ;;  %v787_v17 = vpop.f32.mrb[23].mxu0  ;;  %v1147_v21 = vpop.f32.mrb[23].mxu1  ;;  %v3435_v25 = vsel %vm1417_vm12, %v783_v38, %v1562_v59 }
 0x10d   :  { %4216 = vst [vmem:[#allocation19_spill] sm:$0xff] %v3435_v25  ;;  %v1633_v18 = vmul.f32 %v3250_v24, %v1138_v51  ;;  %v788_v19 = vadd.f32 %v3245_v22, %v787_v17  ;;  %v1148_v29 = vadd.f32 %v3245_v22, %v1147_v21  ;;  %v3440_v32 = vsel %vm1489_vm13, %v1143_v39, %v1634_v63 }
 0x10e   :  { %4217 = vst [vmem:[#allocation20_spill] sm:$0xff] %v3440_v32  ;;  %vm1419_vm0 = vcmp.ge.f32.partialorder %v793_v14, 0.0  ;;  %v1564_v33 = vmul.f32 %v3250_v24, %v793_v14  ;;  %v1636_v37 = vmul.f32 %v3250_v24, %v1153_v7  ;;  %v3444_v40 = vsel %vm1416_vm14, %v778_v46, %v1561_v54 }
 0x10f   :  { %4218 = vst [vmem:[#allocation21_spill] sm:$0xff] %v3444_v40  ;;  %vm1491_vm1 = vcmp.ge.f32.partialorder %v1153_v7, 0.0  ;;  %v1563_v42 = vmul.f32 %v3250_v24, %v788_v19  ;;  %v1635_v38 = vmul.f32 %v3250_v24, %v1148_v29  ;;  %v2428_v59 = vpop.f32.mrb[24].mxu0  ;;  %v2536_v5 = vpop.f32.mrb[24].mxu1  ;;  %vm1418_vm2 = vcmp.ge.f32.partialorder %v788_v19, 0.0 }
 0x110   :  { %vm1490_vm3 = vcmp.ge.f32.partialorder %v1148_v29, 0.0  ;;  %v803_v8 = vadd.f32 %v2428_v59, %v3245_v22  ;;  %v1163_v39 = vadd.f32 %v2536_v5, %v3245_v22  ;;  %v797_v63 = vpop.f32.mrb[25].mxu0  ;;  %v1157_v17 = vpop.f32.mrb[25].mxu1  ;;  %v3451_v21 = vsel %vm1488_vm15, %v1138_v51, %v1633_v18 }
 0x111   :  { %4219 = vst [vmem:[#allocation22_spill] sm:$0xff] %v3451_v21  ;;  %v3454_v46 = vsel %vm1419_vm0, %v793_v14, %v1564_v33  ;;  %v798_v54 = vadd.f32 %v3245_v22, %v797_v63  ;;  %v1158_v32 = vadd.f32 %v3245_v22, %v1157_v17  ;;  %v3458_v25 = vsel %vm1491_vm1, %v1153_v7, %v1636_v37 }
 0x112   :  { %4220 = vst [vmem:[#allocation23_spill] sm:$0xff] %v3454_v46  ;;  %4221 = vst [vmem:[#allocation24_spill] sm:$0xff] %v3458_v25  ;;  %vm1421_vm4 = vcmp.ge.f32.partialorder %v803_v8, 0.0  ;;  %v1566_v40 = vmul.f32 %v3250_v24, %v803_v8  ;;  %v1638_v59 = vmul.f32 %v3250_v24, %v1163_v39  ;;  %v3462_v5 = vsel %vm1418_vm2, %v788_v19, %v1563_v42 }
 0x113   :  { %4222 = vst [vmem:[#allocation25_spill] sm:$0xff] %v3462_v5  ;;  %v3464_v56 = vsel %vm1490_vm3, %v1148_v29, %v1635_v38  ;;  %vm1493_vm5 = vcmp.ge.f32.partialorder %v1163_v39, 0.0  ;;  %v1565_v51 = vmul.f32 %v3250_v24, %v798_v54  ;;  %v2431_v14 = vpop.f32.mrb[26].mxu0  ;;  %v2539_v18 = vpop.f32.mrb[26].mxu1  ;;  %vm1420_vm6 = vcmp.ge.f32.partialorder %v798_v54, 0.0 }
 0x114   :  { %4223 = vst [vmem:[#allocation26_spill] sm:$0xff] %v3464_v56  ;;  %vm1492_vm7 = vcmp.ge.f32.partialorder %v1158_v32, 0.0  ;;  %v813_v33 = vadd.f32 %v2431_v14, %v3245_v22  ;;  %v1173_v7 = vadd.f32 %v2539_v18, %v3245_v22  ;;  %v807_v37 = vpop.f32.mrb[27].mxu0  ;;  %v1167_v63 = vpop.f32.mrb[27].mxu1  ;;  %v3469_v17 = vsel %vm1421_vm4, %v803_v8, %v1566_v40 }
 0x115   :  { %4224 = vst [vmem:[#allocation27_spill] sm:$0xff] %v3469_v17  ;;  %v1637_v19 = vmul.f32 %v3250_v24, %v1158_v32  ;;  %v808_v29 = vadd.f32 %v3245_v22, %v807_v37  ;;  %v1168_v42 = vadd.f32 %v3245_v22, %v1167_v63  ;;  %v3474_v38 = vsel %vm1493_vm5, %v1163_v39, %v1638_v59 }
 0x116   :  { %4225 = vst [vmem:[#allocation28_spill] sm:$0xff] %v3474_v38  ;;  %vm1423_vm8 = vcmp.ge.f32.partialorder %v813_v33, 0.0  ;;  %v1568_v25 = vmul.f32 %v3250_v24, %v813_v33  ;;  %v1640_v46 = vmul.f32 %v3250_v24, %v1173_v7  ;;  %v3478_v14 = vsel %vm1420_vm6, %v798_v54, %v1565_v51 }
 0x117   :  { %4226 = vst [vmem:[#allocation29_spill] sm:$0xff] %v3478_v14  ;;  %vm1495_vm9 = vcmp.ge.f32.partialorder %v1173_v7, 0.0  ;;  %v1567_v18 = vmul.f32 %v3250_v24, %v808_v29  ;;  %v1639_v40 = vmul.f32 %v3250_v24, %v1168_v42  ;;  %v2434_v8 = vpop.f32.mrb[28].mxu0  ;;  %v2542_v17 = vpop.f32.mrb[28].mxu1  ;;  %vm1422_vm10 = vcmp.ge.f32.partialorder %v808_v29, 0.0 }
 0x118   :  { %vm1494_vm11 = vcmp.ge.f32.partialorder %v1168_v42, 0.0  ;;  %v823_v37 = vadd.f32 %v2434_v8, %v3245_v22  ;;  %v1183_v39 = vadd.f32 %v2542_v17, %v3245_v22  ;;  %v817_v59 = vpop.f32.mrb[29].mxu0  ;;  %v1177_v63 = vpop.f32.mrb[29].mxu1  ;;  %v3485_v38 = vsel %vm1492_vm7, %v1158_v32, %v1637_v19 }
 0x119   :  { %4227 = vst [vmem:[#allocation30_spill] sm:$0xff] %v3485_v38  ;;  %v3488_v54 = vsel %vm1423_vm8, %v813_v33, %v1568_v25  ;;  %v818_v51 = vadd.f32 %v3245_v22, %v817_v59  ;;  %v1178_v14 = vadd.f32 %v3245_v22, %v1177_v63  ;;  %v3492_v56 = vsel %vm1495_vm9, %v1173_v7, %v1640_v46 }
 0x11a   :  { %4228 = vst [vmem:[#allocation31_spill] sm:$0xff] %v3488_v54  ;;  %4229 = vst [vmem:[#allocation32_spill] sm:$0xff] %v3492_v56  ;;  %vm1425_vm12 = vcmp.ge.f32.partialorder %v823_v37, 0.0  ;;  %v1570_v5 = vmul.f32 %v3250_v24, %v823_v37  ;;  %v1642_v8 = vmul.f32 %v3250_v24, %v1183_v39  ;;  %v3496_v17 = vsel %vm1422_vm10, %v808_v29, %v1567_v18 }
 0x11b   :  { %4230 = vst [vmem:[#allocation33_spill] sm:$0xff] %v3496_v17  ;;  %v3498_v21 = vsel %vm1494_vm11, %v1168_v42, %v1639_v40  ;;  %vm1497_vm13 = vcmp.ge.f32.partialorder %v1183_v39, 0.0  ;;  %v1569_v32 = vmul.f32 %v3250_v24, %v818_v51  ;;  %v2437_v25 = vpop.f32.mrb[30].mxu0  ;;  %v2545_v33 = vpop.f32.mrb[30].mxu1  ;;  %vm1424_vm14 = vcmp.ge.f32.partialorder %v818_v51, 0.0 }
 0x11c   :  { %4231 = vst [vmem:[#allocation34_spill] sm:$0xff] %v3498_v21  ;;  %v1641_v19 = vmul.f32 %v3250_v24, %v1178_v14  ;;  %v833_v46 = vadd.f32 %v2437_v25, %v3245_v22  ;;  %v1193_v7 = vadd.f32 %v2545_v33, %v3245_v22  ;;  %v827_v59 = vpop.f32.mrb[31].mxu0  ;;  %v1187_v63 = vpop.f32.mrb[31].mxu1  ;;  %v3504_v56 = vsel %vm1425_vm12, %v823_v37, %v1570_v5 }
 0x11d   :  { %4232 = vst [vmem:[#allocation35_spill] sm:$0xff] %v3504_v56  ;;  %vm1496_vm15 = vcmp.ge.f32.partialorder %v1178_v14, 0.0  ;;  %v828_v29 = vadd.f32 %v3245_v22, %v827_v59  ;;  %v1188_v42 = vadd.f32 %v3245_v22, %v1187_v63  ;;  %v3508_v18 = vsel %vm1497_vm13, %v1183_v39, %v1642_v8 }
 0x11e   :  { %4233 = vst [vmem:[#allocation36_spill] sm:$0xff] %v3508_v18  ;;  %vm1427_vm0 = vcmp.ge.f32.partialorder %v833_v46, 0.0  ;;  %v1572_v40 = vmul.f32 %v3250_v24, %v833_v46  ;;  %v1644_v54 = vmul.f32 %v3250_v24, %v1193_v7  ;;  %v3512_v21 = vsel %vm1424_vm14, %v818_v51, %v1569_v32 }
 0x11f   :  { %4234 = vst [vmem:[#allocation37_spill] sm:$0xff] %v3512_v21  ;;  %vm1499_vm1 = vcmp.ge.f32.partialorder %v1193_v7, 0.0  ;;  %vm1426_vm2 = vcmp.ge.f32.partialorder %v828_v29, 0.0  ;;  %v1571_v25 = vmul.f32 %v3250_v24, %v828_v29  ;;  %v2440_v5 = vpop.f32.mrb[32].mxu0  ;;  %v2548_v37 = vpop.f32.mrb[32].mxu1  ;;  %v3515_v33 = vsel %vm1496_vm15, %v1178_v14, %v1641_v19 }
 0x120   :  { %4235 = vst [vmem:[#allocation38_spill] sm:$0xff] %v3515_v33  ;;  %vm1498_vm3 = vcmp.ge.f32.partialorder %v1188_v42, 0.0  ;;  %v843_v59 = vadd.f32 %v2440_v5, %v3245_v22  ;;  %v1203_v39 = vadd.f32 %v2548_v37, %v3245_v22  ;;  %v837_v8 = vpop.f32.mrb[33].mxu0  ;;  %v1197_v63 = vpop.f32.mrb[33].mxu1  ;;  %v3519_v18 = vsel %vm1427_vm0, %v833_v46, %v1572_v40 }
 0x121   :  { %4236 = vst [vmem:[#allocation39_spill] sm:$0xff] %v3519_v18  ;;  %v1643_v51 = vmul.f32 %v3250_v24, %v1188_v42  ;;  %v838_v32 = vadd.f32 %v3245_v22, %v837_v8  ;;  %v1198_v56 = vadd.f32 %v3245_v22, %v1197_v63  ;;  %v3524_v21 = vsel %vm1499_vm1, %v1193_v7, %v1644_v54 }
 0x122   :  { %4237 = vst [vmem:[#allocation40_spill] sm:$0xff] %v3524_v21  ;;  %v3526_v17 = vsel %vm1426_vm2, %v828_v29, %v1571_v25  ;;  %vm1429_vm4 = vcmp.ge.f32.partialorder %v843_v59, 0.0  ;;  %v1574_v14 = vmul.f32 %v3250_v24, %v843_v59  ;;  %vm1501_vm5 = vcmp.ge.f32.partialorder %v1203_v39, 0.0 }
 0x123   :  { %4238 = vst [vmem:[#allocation41_spill] sm:$0xff] %v3526_v17  ;;  %v1646_v19 = vmul.f32 %v3250_v24, %v1203_v39  ;;  %v1573_v5 = vmul.f32 %v3250_v24, %v838_v32  ;;  %v1645_v46 = vmul.f32 %v3250_v24, %v1198_v56  ;;  %v2443_v40 = vpop.f32.mrb[34].mxu0  ;;  %v2551_v37 = vpop.f32.mrb[34].mxu1  ;;  %vm1428_vm6 = vcmp.ge.f32.partialorder %v838_v32, 0.0 }
 0x124   :  { %vm1500_vm7 = vcmp.ge.f32.partialorder %v1198_v56, 0.0  ;;  %v853_v8 = vadd.f32 %v2443_v40, %v3245_v22  ;;  %v1213_v54 = vadd.f32 %v2551_v37, %v3245_v22  ;;  %v847_v7 = vpop.f32.mrb[35].mxu0  ;;  %v1207_v29 = vpop.f32.mrb[35].mxu1  ;;  %v3535_v25 = vsel %vm1498_vm3, %v1188_v42, %v1643_v51 }
 0x125   :  { %4239 = vst [vmem:[#allocation42_spill] sm:$0xff] %v3535_v25  ;;  %v3537_v63 = vsel %vm1429_vm4, %v843_v59, %v1574_v14  ;;  %v848_v21 = vadd.f32 %v3245_v22, %v847_v7  ;;  %v3541_v18 = vadd.f32 %v3245_v22, %v1207_v29  ;;  %v3546_v37 = vsel %vm1501_vm5, %v1203_v39, %v1646_v19 }
 0x126   :  { %4240 = vst [vmem:[#allocation43_spill] sm:$0xff] %v3537_v63  ;;  %vm1431_vm8 = vcmp.ge.f32.partialorder %v853_v8, 0.0  ;;  %v1576_v17 = vmul.f32 %v3250_v24, %v853_v8  ;;  %vm1503_vm9 = vcmp.ge.f32.partialorder %v1213_v54, 0.0  ;;  %v1648_v40 = vmul.f32 %v3250_v24, %v1213_v54  ;;  %4241 = vst [vmem:[#allocation44_spill] sm:$0xff] %v3546_v37 }
 0x127   :  { %v3548_v33 = vsel %vm1428_vm6, %v838_v32, %v1573_v5  ;;  %v3550_v42 = vsel %vm1500_vm7, %v1198_v56, %v1645_v46  ;;  %vm1430_vm10 = vcmp.ge.f32.partialorder %v848_v21, 0.0  ;;  %v2446_v59 = vpop.f32.mrb[36].mxu0  ;;  %v2554_v51 = vpop.f32.mrb[36].mxu1  ;;  %v1575_v14 = vmul.f32 %v3250_v24, %v848_v21 }
 0x128   :  { %4242 = vst [vmem:[#allocation45_spill] sm:$0xff] %v3548_v33  ;;  %4243 = vst [vmem:[#allocation46_spill] sm:$0xff] %v3550_v42  ;;  %v3555_v7 = vmul.f32 %v3250_v24, %v3541_v18  ;;  %v863_v29 = vadd.f32 %v2446_v59, %v3245_v22  ;;  %v1223_v63 = vadd.f32 %v2554_v51, %v3245_v22  ;;  %v857_v25 = vpop.f32.mrb[37].mxu0  ;;  %v1217_v39 = vpop.f32.mrb[37].mxu1  ;;  %vm1502_vm1 = vcmp.ge.f32.partialorder %v3541_v18, 0.0 }
 0x129   :  { %v3560_v32 = vsel %vm1431_vm8, %v853_v8, %v1576_v17  ;;  %v3562_v56 = vsel %vm1503_vm9, %v1213_v54, %v1648_v40  ;;  %v858_v19 = vadd.f32 %v3245_v22, %v857_v25  ;;  %v1218_v5 = vadd.f32 %v3245_v22, %v1217_v39 }
 0x12a   :  { %4244 = vst [vmem:[#allocation47_spill] sm:$0xff] %v3560_v32  ;;  %4245 = vst [vmem:[#allocation48_spill] sm:$0xff] %v3562_v56  ;;  %vm1433_vm11 = vcmp.ge.f32.partialorder %v863_v29, 0.0  ;;  %v1578_v46 = vmul.f32 %v3250_v24, %v863_v29  ;;  %vm1505_vm12 = vcmp.ge.f32.partialorder %v1223_v63, 0.0  ;;  %v1650_v37 = vmul.f32 %v3250_v24, %v1223_v63 }
 0x12b   :  { %vm1432_vm13 = vcmp.ge.f32.partialorder %v858_v19, 0.0  ;;  %v1577_v59 = vmul.f32 %v3250_v24, %v858_v19  ;;  %vm1504_vm14 = vcmp.ge.f32.partialorder %v1218_v5, 0.0  ;;  %v1649_v51 = vmul.f32 %v3250_v24, %v1218_v5  ;;  %v2449_v17 = vpop.f32.mrb[38].mxu0  ;;  %v2557_v8 = vpop.f32.mrb[38].mxu1 }
 0x12c   :  { %v3570_v54 = vsel %vm1433_vm11, %v863_v29, %v1578_v46  ;;  %v3572_v40 = vsel %vm1505_vm12, %v1223_v63, %v1650_v37  ;;  %v873_v25 = vadd.f32 %v2449_v17, %v3245_v22  ;;  %v1233_v39 = vadd.f32 %v2557_v8, %v3245_v22  ;;  %v867_v56 = vpop.f32.mrb[39].mxu0  ;;  %v1227_v32 = vpop.f32.mrb[39].mxu1 }
 0x12d   :  { %4246 = vst [vmem:[#allocation49_spill] sm:$0xff] %v3570_v54  ;;  %4247 = vst [vmem:[#allocation50_spill] sm:$0xff] %v3572_v40  ;;  %v3580_v38 = vsel %vm1432_vm13, %v858_v19, %v1577_v59  ;;  %v3582_v44 = vsel %vm1504_vm14, %v1218_v5, %v1649_v51  ;;  %v868_v17 = vadd.f32 %v3245_v22, %v867_v56 }
 0x12e   :  { %vm1435_vm15 = vcmp.ge.f32.partialorder %v873_v25, 0.0  ;;  %v1580_v29 = vmul.f32 %v3250_v24, %v873_v25  ;;  %vm1507_vm0 = vcmp.ge.f32.partialorder %v1233_v39, 0.0  ;;  %v1652_v46 = vmul.f32 %v3250_v24, %v1233_v39 }
 0x12f   :  { %v1228_v8 = vadd.f32 %v3245_v22, %v1227_v32  ;;  %v2452_v19 = vpop.f32.mrb[40].mxu0  ;;  %v2560_v59 = vpop.f32.mrb[40].mxu1  ;;  %v3593_v5 = vsel %vm1430_vm10, %v848_v21, %v1575_v14  ;;  %vm1434_vm2 = vcmp.ge.f32.partialorder %v868_v17, 0.0  ;;  %v1579_v32 = vmul.f32 %v3250_v24, %v868_v17 }
 0x130   :  { %v3595_v51 = vsel %vm1435_vm15, %v873_v25, %v1580_v29  ;;  %v883_v42 = vadd.f32 %v2452_v19, %v3245_v22  ;;  %v1243_v33 = vadd.f32 %v2560_v59, %v3245_v22  ;;  %v877_v63 = vpop.f32.mrb[41].mxu0  ;;  %v1237_v37 = vpop.f32.mrb[41].mxu1  ;;  %v3602_v54 = vsel %vm1507_vm0, %v1233_v39, %v1652_v46 }
 0x131   :  { %4248 = vst [vmem:[#allocation51_spill] sm:$0xff] %v3595_v51  ;;  %4249 = vst [vmem:[#allocation52_spill] sm:$0xff] %v3602_v54  ;;  %vm1506_vm3 = vcmp.ge.f32.partialorder %v1228_v8, 0.0  ;;  %v1651_v14 = vmul.f32 %v3250_v24, %v1228_v8  ;;  %v3608_v25 = vsel %vm1434_vm2, %v868_v17, %v1579_v32  ;;  %v878_v21 = vadd.f32 %v3245_v22, %v877_v63 }
 0x132   :  { %vm1437_vm4 = vcmp.ge.f32.partialorder %v883_v42, 0.0  ;;  %v1582_v29 = vmul.f32 %v3250_v24, %v883_v42  ;;  %vm1509_vm5 = vcmp.ge.f32.partialorder %v1243_v33, 0.0  ;;  %v1654_v19 = vmul.f32 %v3250_v24, %v1243_v33 }
 0x133   :  { %v2455_v59 = vpop.f32.mrb[42].mxu0  ;;  %v2563_v39 = vpop.f32.mrb[42].mxu1  ;;  %v3614_v56 = vsel %vm1506_vm3, %v1228_v8, %v1651_v14  ;;  %v1238_v51 = vadd.f32 %v3245_v22, %v1237_v37  ;;  %vm1436_vm6 = vcmp.ge.f32.partialorder %v878_v21, 0.0  ;;  %v1581_v63 = vmul.f32 %v3250_v24, %v878_v21 }
 0x134   :  { %v887_v58 = vpop.f32.mrb[43].mxu0  ;;  %v1247_v54 = vpop.f32.mrb[43].mxu1  ;;  %v3620_v32 = vsel %vm1437_vm4, %v883_v42, %v1582_v29  ;;  %v3622_v61 = vsel %vm1509_vm5, %v1243_v33, %v1654_v19  ;;  %v893_v41 = vadd.f32 %v2455_v59, %v3245_v22  ;;  %v1253_v19 = vadd.f32 %v2563_v39, %v3245_v22 }
 0x135   :  { %4250 = vst [vmem:[#allocation53_spill] sm:$0xff] %v3620_v32  ;;  %4251 = vst [vmem:[#allocation54_spill] sm:$0xff] %v3622_v61  ;;  %vm1508_vm7 = vcmp.ge.f32.partialorder %v1238_v51, 0.0  ;;  %v1653_v37 = vmul.f32 %v3250_v24, %v1238_v51  ;;  %v3632_v29 = vsel %vm1436_vm6, %v878_v21, %v1581_v63  ;;  %v888_v59 = vadd.f32 %v3245_v22, %v887_v58 }
 0x136   :  { %vm1439_vm8 = vcmp.ge.f32.partialorder %v893_v41, 0.0  ;;  %v1584_v42 = vmul.f32 %v3250_v24, %v893_v41  ;;  %4252 = vst [vmem:[#allocation55_spill] sm:$0xff] %v3632_v29  ;;  %v1248_v46 = vadd.f32 %v3245_v22, %v1247_v54  ;;  %vm1511_vm9 = vcmp.ge.f32.partialorder %v1253_v19, 0.0 }
 0x137   :  { %v2458_v14 = vpop.f32.mrb[44].mxu0  ;;  %v2566_v33 = vpop.f32.mrb[44].mxu1  ;;  %v3639_v9 = vsel %vm1508_vm7, %v1238_v51, %v1653_v37  ;;  %v1656_v54 = vmul.f32 %v3250_v24, %v1253_v19  ;;  %vm1438_vm10 = vcmp.ge.f32.partialorder %v888_v59, 0.0  ;;  %v1583_v39 = vmul.f32 %v3250_v24, %v888_v59 }
 0x138   :  { %v897_v8 = vpop.f32.mrb[45].mxu0  ;;  %v1257_v17 = vpop.f32.mrb[45].mxu1  ;;  %4253 = vst [vmem:[#allocation56_spill] sm:$0xff] %v3639_v9  ;;  %v3641_v61 = vsel %vm1439_vm8, %v893_v41, %v1584_v42  ;;  %v3644_v13 = vadd.f32 %v2458_v14, %v3245_v22  ;;  %vm1510_vm11 = vcmp.ge.f32.partialorder %v1248_v46, 0.0  ;;  %v1655_v51 = vmul.f32 %v3250_v24, %v1248_v46 }
 0x139   :  { %4254 = vst [vmem:[#allocation57_spill] sm:$0xff] %v3641_v61  ;;  %v3657_v37 = vsel %vm1502_vm1, %v3541_v18, %v3555_v7  ;;  %v3659_v42 = vsel %vm1511_vm9, %v1253_v19, %v1656_v54  ;;  %v1263_v14 = vadd.f32 %v2566_v33, %v3245_v22  ;;  %v3665_v61 = vsel %vm1438_vm10, %v888_v59, %v1583_v39 }
 0x13a   :  { %4255 = vst [vmem:[#allocation58_spill] sm:$0xff] %v3659_v42  ;;  %vm1441_vm12 = vcmp.ge.f32.partialorder %v3644_v13, 0.0  ;;  %4256 = vst [vmem:[#allocation59_spill] sm:$0xff] %v3665_v61  ;;  %v3667_v28 = vsel %vm1510_vm11, %v1248_v46, %v1655_v51  ;;  %v898_v29 = vadd.f32 %v3245_v22, %v897_v8  ;;  %v1586_v33 = vmul.f32 %v3250_v24, %v3644_v13 }
 0x13b   :  { %v2461_v41 = vpop.f32.mrb[46].mxu0  ;;  %v2569_v63 = vpop.f32.mrb[46].mxu1  ;;  %4257 = vst [vmem:[#allocation60_spill] sm:$0xff] %v3667_v28  ;;  %vm1513_vm13 = vcmp.ge.f32.partialorder %v1263_v14, 0.0  ;;  %v1258_v59 = vadd.f32 %v3245_v22, %v1257_v17  ;;  %v1658_v31 = vmul.f32 %v3250_v24, %v1263_v14 }
 0x13c   :  { %v907_v58 = vpop.f32.mrb[47].mxu0  ;;  %v1267_v32 = vpop.f32.mrb[47].mxu1  ;;  %vm1440_vm14 = vcmp.ge.f32.partialorder %v898_v29, 0.0  ;;  %v1585_v19 = vmul.f32 %v3250_v24, %v898_v29  ;;  %v3679_v46 = vadd.f32 %v2461_v41, %v3245_v22  ;;  %v3682_v39 = vadd.f32 %v2569_v63, %v3245_v22 }
 0x13d   :  { %v908_v51 = vadd.f32 %v3245_v22, %v907_v58  ;;  %v1268_v21 = vadd.f32 %v3245_v22, %v1267_v32  ;;  %vm1512_vm15 = vcmp.ge.f32.partialorder %v1258_v59, 0.0  ;;  %v1657_v17 = vmul.f32 %v3250_v24, %v1258_v59 }
 0x13e   :  { %v3688_v61 = vsel %vm1440_vm14, %v898_v29, %v1585_v19  ;;  %vm1443_vm0 = vcmp.ge.f32.partialorder %v3679_v46, 0.0  ;;  %v1588_v58 = vmul.f32 %v3250_v24, %v3679_v46  ;;  %vm1515_vm1 = vcmp.ge.f32.partialorder %v3682_v39, 0.0 }
 0x13f   :  { %v2464_v54 = vpop.f32.mrb[48].mxu0  ;;  %v2572_v8 = vpop.f32.mrb[48].mxu1  ;;  %4258 = vst [vmem:[#allocation61_spill] sm:$0xff] %v3688_v61  ;;  %v1660_v32 = vmul.f32 %v3250_v24, %v3682_v39  ;;  %v3699_v63 = vsel %vm1512_vm15, %v1258_v59, %v1657_v17  ;;  %vm1442_vm2 = vcmp.ge.f32.partialorder %v908_v51, 0.0  ;;  %v1587_v29 = vmul.f32 %v3250_v24, %v908_v51 }
 0x140   :  { %v923_v18 = vadd.f32 %v2464_v54, %v3245_v22  ;;  %v917_v7 = vpop.f32.mrb[49].mxu0  ;;  %v1277_v42 = vpop.f32.mrb[49].mxu1  ;;  %4259 = vst [vmem:[#allocation62_spill] sm:$0xff] %v3699_v63  ;;  %vm1514_vm3 = vcmp.ge.f32.partialorder %v1268_v21, 0.0  ;;  %v1659_v61 = vmul.f32 %v3250_v24, %v1268_v21  ;;  %v1283_v59 = vadd.f32 %v2572_v8, %v3245_v22 }
 0x141   :  { %v3706_v35 = vsel %vm1442_vm2, %v908_v51, %v1587_v29  ;;  %v918_v17 = vadd.f32 %v3245_v22, %v917_v7  ;;  %v1278_v16 = vadd.f32 %v3245_v22, %v1277_v42  ;;  %v1730_v41 = vsel %vm1441_vm12, %v3644_v13, %v1586_v33 }
 0x142   :  { %vm1445_vm4 = vcmp.ge.f32.partialorder %v923_v18, 0.0  ;;  %v1590_v53 = vmul.f32 %v3250_v24, %v923_v18  ;;  %v1803_v9 = vsel %vm1514_vm3, %v1268_v21, %v1659_v61  ;;  %v1802_v63 = vsel %vm1513_vm13, %v1263_v14, %v1658_v31  ;;  %v3729_v14 = vld [vmem:[%s4169_s2] ss:$0 sm:$0xff]  ;;  %s2626_s2 = smov 32  }
 0x143   :  { %v2467_v19 = vpop.f32.mrb[50].mxu0  ;;  %v2575_v54 = vpop.f32.mrb[50].mxu1  ;;  %vm1517_vm5 = vcmp.ge.f32.partialorder %v1283_v59, 0.0  ;;  %v1662_v3 = vmul.f32 %v3250_v24, %v1283_v59  ;;  %vm1444_vm6 = vcmp.ge.f32.partialorder %v918_v17, 0.0  ;;  %v1589_v51 = vmul.f32 %v3250_v24, %v918_v17 }
 0x144   :  { %v927_v34 = vpop.f32.mrb[51].mxu0  ;;  %v1287_v28 = vpop.f32.mrb[51].mxu1  ;;  %v3711_v27 = vsel %vm1445_vm4, %v923_v18, %v1590_v53  ;;  %vm1516_vm7 = vcmp.ge.f32.partialorder %v1278_v16, 0.0  ;;  %v1661_v22 = vmul.f32 %v3250_v24, %v1278_v16  ;;  %v1838_v61 = vmax.f32 %v3333_v49, %v1730_v41 }
 0x145   :  { %v1874_v53 = vmax.f32 %v3338_v52, %v1802_v63  ;;  %v3722_v13 = vsel %vm1517_vm5, %v1283_v59, %v1662_v3  ;;  %v3724_v31 = vsel %vm1444_vm6, %v918_v17, %v1589_v51  ;;  %v933_v18 = vadd.f32 %v3729_v14, %v2467_v19 }
 0x146   :  { %v1293_v7 = vadd.f32 %v3729_v14, %v2575_v54  ;;  %v1805_v33 = vsel %vm1516_vm7, %v1278_v16, %v1661_v22  ;;  %v928_v49 = vadd.f32 %v3729_v14, %v927_v34  ;;  %v1288_v52 = vadd.f32 %v3729_v14, %v1287_v28 }
 0x147   :  { %v2470_v8 = vpop.f32.mrb[52].mxu0  ;;  %v2578_v29 = vpop.f32.mrb[52].mxu1  ;;  %v1910_v40 = vmax.f32 %v1838_v61, %v1874_v53  ;;  %vm1447_vm8 = vcmp.ge.f32.partialorder %v933_v18, 0.0  ;;  %v1592_v3 = vmul.f32 %v3250_v24, %v933_v18  ;;  %v1732_v51 = vsel %vm1443_vm0, %v3679_v46, %v1588_v58 }
 0x148   :  { %v937_v21 = vpop.f32.mrb[53].mxu0  ;;  %v1297_v42 = vpop.f32.mrb[53].mxu1  ;;  %vm1519_vm9 = vcmp.ge.f32.partialorder %v1293_v7, 0.0  ;;  %v1664_v41 = vmul.f32 %v3250_v24, %v1293_v7  ;;  %vm1446_vm10 = vcmp.ge.f32.partialorder %v928_v49, 0.0  ;;  %v1591_v19 = vmul.f32 %v3250_v24, %v928_v49 }
 0x149   :  { %1946 = vrot.lane.b32.xlu0 %v1910_v40, %s2626_s2  ;;  %vm1518_vm11 = vcmp.ge.f32.partialorder %v1288_v52, 0.0  ;;  %v1663_v16 = vmul.f32 %v3250_v24, %v1288_v52  ;;  %v3740_v28 = vsel %vm1447_vm8, %v933_v18, %v1592_v3  ;;  %v1804_v40 = vsel %vm1515_vm1, %v3682_v39, %v1660_v32 }
 0x14a   :  { %v3742_v17 = vsel %vm1519_vm9, %v1293_v7, %v1664_v41  ;;  %v3750_v22 = vsel %vm1446_vm10, %v928_v49, %v1591_v19  ;;  %v1840_v53 = vmax.f32 %v3352_v6, %v1732_v51  ;;  %v1876_v45 = vmax.f32 %v3357_v10, %v1804_v40 }
 0x14b   :  { %v2473_v63 = vpop.f32.mrb[54].mxu0  ;;  %v2581_v59 = vpop.f32.mrb[54].mxu1  ;;  %v3752_v61 = vsel %vm1518_vm11, %v1288_v52, %v1663_v16  ;;  %v1839_v18 = vmax.f32 %v3359_v11, %v3706_v35  ;;  %v1875_v7 = vmax.f32 %v3361_v12, %v1803_v9  ;;  %v943_v3 = vadd.f32 %v3729_v14, %v2470_v8 }
 0x14c   :  { %v947_v34 = vpop.f32.mrb[55].mxu0  ;;  %v1307_v54 = vpop.f32.mrb[55].mxu1  ;;  %v1303_v46 = vadd.f32 %v3729_v14, %v2578_v29  ;;  %v1912_v39 = vmax.f32 %v1840_v53, %v1876_v45  ;;  %v938_v32 = vadd.f32 %v3729_v14, %v937_v21  ;;  %v1298_v49 = vadd.f32 %v3729_v14, %v1297_v42 }
 0x14d   :  { %v1841_v6 = vmax.f32 %v3376_v36, %v3724_v31  ;;  %v1911_v19 = vmax.f32 %v1839_v18, %v1875_v7  ;;  %vm1449_vm12 = vcmp.ge.f32.partialorder %v943_v3, 0.0  ;;  %v1594_v9 = vmul.f32 %v3250_v24, %v943_v3 }
 0x14e   :  { %vm1521_vm13 = vcmp.ge.f32.partialorder %v1303_v46, 0.0  ;;  %1950 = vrot.lane.b32.xlu1 %v1912_v39, %s2626_s2  ;;  %v1666_v35 = vmul.f32 %v3250_v24, %v1303_v46  ;;  %vm1448_vm14 = vcmp.ge.f32.partialorder %v938_v32, 0.0  ;;  %v1593_v45 = vmul.f32 %v3250_v24, %v938_v32 }
 0x14f   :  { %v2476_v58 = vpop.f32.mrb[56].mxu0  ;;  %v2584_v41 = vpop.f32.mrb[56].mxu1  ;;  %vm1520_vm15 = vcmp.ge.f32.partialorder %v1298_v49, 0.0  ;;  %1948 = vrot.lane.b32.xlu0 %v1911_v19, %s2626_s2  ;;  %v3770_v11 = vsel %vm1449_vm12, %v943_v3, %v1594_v9  ;;  %v1665_v12 = vmul.f32 %v3250_v24, %v1298_v49  ;;  %v1877_v36 = vmax.f32 %v3383_v47, %v1805_v33 }
 0x150   :  { %v957_v10 = vpop.f32.mrb[57].mxu0  ;;  %v1317_v52 = vpop.f32.mrb[57].mxu1  ;;  %v1842_v8 = vmax.f32 %v3367_v23, %v3711_v27  ;;  %v3780_v42 = vsel %vm1521_vm13, %v1303_v46, %v1666_v35  ;;  %v3782_v31 = vsel %vm1448_vm14, %v938_v32, %v1593_v45  ;;  %v1878_v16 = vmax.f32 %v3372_v30, %v3722_v13 }
 0x151   :  { %v953_v51 = vadd.f32 %v3729_v14, %v2473_v63  ;;  %v1809_v47 = vsel %vm1520_vm15, %v1298_v49, %v1665_v12  ;;  %v1913_v33 = vmax.f32 %v1841_v6, %v1877_v36  ;;  %v1313_v27 = vadd.f32 %v3729_v14, %v2581_v59 }
 0x152   :  { %v948_v23 = vadd.f32 %v3729_v14, %v947_v34  ;;  %v1914_v18 = vmax.f32 %v1842_v8, %v1878_v16  ;;  %v1308_v3 = vadd.f32 %v3729_v14, %v1307_v54  ;;  %v1843_v54 = vmax.f32 %v3394_v60, %v3750_v22 }
 0x153   :  { %v3776_v29 = vpop.f32.mrb[58].mxu0  ;;  %v3778_v21 = vpop.f32.mrb[58].mxu1  ;;  %vm1451_vm0 = vcmp.ge.f32.partialorder %v953_v51, 0.0  ;;  %v1596_v7 = vmul.f32 %v3250_v24, %v953_v51  ;;  %1952 = vrot.lane.b32.xlu1 %v1913_v33, %s2626_s2  ;;  %vm1523_vm1 = vcmp.ge.f32.partialorder %v1313_v27, 0.0  ;;  %v1668_v30 = vmul.f32 %v3250_v24, %v1313_v27 }
 0x154   :  { %v3787_v40 = vpop.f32.mrb[59].mxu0  ;;  %v3789_v53 = vpop.f32.mrb[59].mxu1  ;;  %vm1450_vm2 = vcmp.ge.f32.partialorder %v948_v23, 0.0  ;;  %v1595_v13 = vmul.f32 %v3250_v24, %v948_v23  ;;  %1954 = vrot.lane.b32.xlu0 %v1914_v18, %s2626_s2  ;;  %vm1522_vm3 = vcmp.ge.f32.partialorder %v1308_v3, 0.0  ;;  %v1667_v34 = vmul.f32 %v3250_v24, %v1308_v3 }
 0x155   :  { %v3803_v59 = vsel %vm1451_vm0, %v953_v51, %v1596_v7  ;;  %v3812_v49 = vsel %vm1523_vm1, %v1313_v27, %v1668_v30  ;;  %v1879_v19 = vmax.f32 %v3396_v62, %v3752_v61  ;;  %v1844_v9 = vmax.f32 %v3386_v50, %v3740_v28 }
 0x156   :  { %v3814_v6 = vsel %vm1450_vm2, %v948_v23, %v1595_v13  ;;  %v3820_v35 = vsel %vm1522_vm3, %v1308_v3, %v1667_v34  ;;  %v1880_v45 = vmax.f32 %v3390_v55, %v3742_v17  ;;  %v963_v60 = vadd.f32 %v3729_v14, %v2476_v58 }
 0x157   :  { %v3798_v63 = vpop.f32.mrb[60].mxu0  ;;  %v3800_v46 = vpop.f32.mrb[60].mxu1  ;;  %v1323_v22 = vadd.f32 %v3729_v14, %v2584_v41  ;;  %v1915_v12 = vmax.f32 %v1843_v54, %v1879_v19  ;;  %v958_v36 = vadd.f32 %v3729_v14, %v957_v10  ;;  %v1318_v8 = vadd.f32 %v3729_v14, %v1317_v52 }
 0x158   :  { %v3808_v39 = vpop.f32.mrb[61].mxu0  ;;  %v3810_v32 = vpop.f32.mrb[61].mxu1  ;;  %v1845_v62 = vmax.f32 %v3410_v26, %v3782_v31  ;;  %v1916_v28 = vmax.f32 %v1844_v9, %v1880_v45  ;;  %vm1453_vm4 = vcmp.ge.f32.partialorder %v963_v60, 0.0  ;;  %v1598_v55 = vmul.f32 %v3250_v24, %v963_v60 }
 0x159   :  { %vm1525_vm5 = vcmp.ge.f32.partialorder %v1323_v22, 0.0  ;;  %1956 = vrot.lane.b32.xlu1 %v1915_v12, %s2626_s2  ;;  %v1670_v41 = vmul.f32 %v3250_v24, %v1323_v22  ;;  %vm1452_vm6 = vcmp.ge.f32.partialorder %v958_v36, 0.0  ;;  %v1597_v26 = vmul.f32 %v3250_v24, %v958_v36 }
 0x15a   :  { %vm1524_vm7 = vcmp.ge.f32.partialorder %v1318_v8, 0.0  ;;  %1958 = vrot.lane.b32.xlu0 %v1916_v28, %s2626_s2  ;;  %v3843_v10 = vsel %vm1453_vm4, %v963_v60, %v1598_v55  ;;  %v1669_v52 = vmul.f32 %v3250_v24, %v1318_v8  ;;  %v1881_v31 = vmax.f32 %v3417_v43, %v1809_v47 }
 0x15b   :  { %v3830_v61 = vpop.f32.mrb[62].mxu0  ;;  %v3832_v50 = vpop.f32.mrb[62].mxu1  ;;  %v1846_v16 = vmax.f32 %v3401_v15, %v3770_v11  ;;  %v3849_v51 = vsel %vm1525_vm5, %v1323_v22, %v1670_v41  ;;  %v3851_v33 = vsel %vm1452_vm6, %v958_v36, %v1597_v26  ;;  %v1882_v27 = vmax.f32 %v3406_v20, %v3780_v42  ;;  %v4260_v22 = vld [vmem:[#allocation17_spill] sm:$0xff] }
 0x15c   :  { %v3835_v17 = vpop.f32.mrb[63].mxu0  ;;  %v3837_v58 = vpop.f32.mrb[63].mxu1  ;;  %v973_v23 = vadd.f32 %v3729_v14, %v3776_v29  ;;  %v1813_v3 = vsel %vm1524_vm7, %v1318_v8, %v1669_v52  ;;  %v1917_v30 = vmax.f32 %v1845_v62, %v1881_v31  ;;  %v1333_v43 = vadd.f32 %v3729_v14, %v3778_v21 }
 0x15d   :  { %v968_v15 = vadd.f32 %v3729_v14, %v3787_v40  ;;  %v1918_v20 = vmax.f32 %v1846_v16, %v1882_v27  ;;  %v1328_v42 = vadd.f32 %v3729_v14, %v3789_v53  ;;  %v1847_v54 = vmax.f32 %v3428_v2, %v3814_v6  ;;  %v4261_v2 = vld [vmem:[#allocation18_spill] sm:$0xff] }
 0x15e   :  { %vm1455_vm8 = vcmp.ge.f32.partialorder %v973_v23, 0.0  ;;  %v1600_v29 = vmul.f32 %v3250_v24, %v973_v23  ;;  %1960 = vrot.lane.b32.xlu1 %v1917_v30, %s2626_s2  ;;  %vm1527_vm9 = vcmp.ge.f32.partialorder %v1333_v43, 0.0  ;;  %v1672_v13 = vmul.f32 %v3250_v24, %v1333_v43 }
 0x15f   :  { %v3857_v18 = vpop.f32.mrb[64].mxu0  ;;  %v3859_v7 = vpop.f32.mrb[64].mxu1  ;;  %vm1454_vm10 = vcmp.ge.f32.partialorder %v968_v15, 0.0  ;;  %v1599_v21 = vmul.f32 %v3250_v24, %v968_v15  ;;  %1962 = vrot.lane.b32.xlu0 %v1918_v20, %s2626_s2  ;;  %vm1526_vm11 = vcmp.ge.f32.partialorder %v1328_v42, 0.0  ;;  %v1671_v34 = vmul.f32 %v3250_v24, %v1328_v42 }
 0x160   :  { %v3865_v11 = vpop.f32.mrb[65].mxu0  ;;  %v3867_v47 = vpop.f32.mrb[65].mxu1  ;;  %v3876_v40 = vsel %vm1455_vm8, %v973_v23, %v1600_v29  ;;  %v3885_v9 = vsel %vm1527_vm9, %v1333_v43, %v1672_v13  ;;  %v1883_v60 = vmax.f32 %v3430_v4, %v3820_v35  ;;  %v1848_v12 = vmax.f32 %v4260_v22, %v3803_v59  ;;  %v4262_v35 = vld [vmem:[#allocation21_spill] sm:$0xff]  ;;  %v4263_v23 = vld [vmem:[#allocation22_spill] sm:$0xff]  ;;  %v4264_v43 = vld [vmem:[#allocation19_spill] sm:$0xff] }
 0x161   :  { %v3887_v45 = vsel %vm1454_vm10, %v968_v15, %v1599_v21  ;;  %v1815_v62 = vsel %vm1526_vm11, %v1328_v42, %v1671_v34  ;;  %v1884_v6 = vmax.f32 %v4261_v2, %v3812_v49  ;;  %v983_v28 = vadd.f32 %v3729_v14, %v3798_v63  ;;  %v4265_v42 = vld [vmem:[#allocation20_spill] sm:$0xff] }
 0x162   :  { %v1343_v55 = vadd.f32 %v3729_v14, %v3800_v46  ;;  %v1919_v41 = vmax.f32 %v1847_v54, %v1883_v60  ;;  %v978_v4 = vadd.f32 %v3729_v14, %v3808_v39  ;;  %v1338_v59 = vadd.f32 %v3729_v14, %v3810_v32 }
 0x163   :  { %v3881_v19 = vpop.f32.mrb[66].mxu0  ;;  %v3883_v53 = vpop.f32.mrb[66].mxu1  ;;  %v1849_v26 = vmax.f32 %v4262_v35, %v3851_v33  ;;  %v1920_v52 = vmax.f32 %v1848_v12, %v1884_v6  ;;  %vm1457_vm12 = vcmp.ge.f32.partialorder %v983_v28, 0.0  ;;  %v1602_v49 = vmul.f32 %v3250_v24, %v983_v28  ;;  %v4267_v35 = vld [vmem:[#allocation26_spill] sm:$0xff] }
 0x164   :  { %v3893_v36 = vpop.f32.mrb[67].mxu0  ;;  %v3895_v8 = vpop.f32.mrb[67].mxu1  ;;  %vm1529_vm13 = vcmp.ge.f32.partialorder %v1343_v55, 0.0  ;;  %1982 = vrot.lane.b32.xlu1 %v1919_v41, %s2627_s18  ;;  %v1674_v46 = vmul.f32 %v3250_v24, %v1343_v55  ;;  %vm1456_vm14 = vcmp.ge.f32.partialorder %v978_v4, 0.0  ;;  %v1601_v39 = vmul.f32 %v3250_v24, %v978_v4 }
 0x165   :  { %vm1528_vm15 = vcmp.ge.f32.partialorder %v1338_v59, 0.0  ;;  %1984 = vrot.lane.b32.xlu0 %v1920_v52, %s2627_s18  ;;  %v3922_v33 = vsel %vm1457_vm12, %v983_v28, %v1602_v49  ;;  %v1673_v27 = vmul.f32 %v3250_v24, %v1338_v59  ;;  %v1885_v30 = vmax.f32 %v4263_v23, %v1813_v3  ;;  %v4268_v52 = vld [vmem:[#allocation23_spill] sm:$0xff] }
 0x166   :  { %v1850_v15 = vmax.f32 %v4264_v43, %v3843_v10  ;;  %v1818_v20 = vsel %vm1529_vm13, %v1343_v55, %v1674_v46  ;;  %v1745_v29 = vsel %vm1456_vm14, %v978_v4, %v1601_v39  ;;  %v1886_v13 = vmax.f32 %v4265_v42, %v3849_v51  ;;  %v4269_v39 = vld [vmem:[#allocation24_spill] sm:$0xff] }
 0x167   :  { %v3910_v31 = vpop.f32.mrb[68].mxu0  ;;  %v3912_v63 = vpop.f32.mrb[68].mxu1  ;;  %v993_v21 = vadd.f32 %v3729_v14, %v3830_v61  ;;  %v1817_v34 = vsel %vm1528_vm15, %v1338_v59, %v1673_v27  ;;  %v1921_v54 = vmax.f32 %v1849_v26, %v1885_v30  ;;  %v1353_v60 = vadd.f32 %v3729_v14, %v3832_v50 }
 0x168   :  { %v3917_v32 = vpop.f32.mrb[69].mxu0  ;;  %v3919_v16 = vpop.f32.mrb[69].mxu1  ;;  %v988_v3 = vadd.f32 %v3729_v14, %v3835_v17  ;;  %v1922_v12 = vmax.f32 %v1850_v15, %v1886_v13  ;;  %v1348_v51 = vadd.f32 %v3729_v14, %v3837_v58  ;;  %v4266_v58 = vld [vmem:[#allocation25_spill] sm:$0xff]  ;;  %v1887_v26 = vmax.f32 %v4267_v35, %v1815_v62 }
 0x169   :  { %vm1459_vm0 = vcmp.ge.f32.partialorder %v993_v21, 0.0  ;;  %v1604_v2 = vmul.f32 %v3250_v24, %v993_v21  ;;  %1986 = vrot.lane.b32.xlu1 %v1921_v54, %s2627_s18  ;;  %vm1531_vm1 = vcmp.ge.f32.partialorder %v1353_v60, 0.0  ;;  %v1676_v50 = vmul.f32 %v3250_v24, %v1353_v60  ;;  %v4270_v15 = vld [vmem:[#allocation29_spill] sm:$0xff] }
 0x16a   :  { %vm1458_vm2 = vcmp.ge.f32.partialorder %v988_v3, 0.0  ;;  %v1603_v17 = vmul.f32 %v3250_v24, %v988_v3  ;;  %1988 = vrot.lane.b32.xlu0 %v1922_v12, %s2627_s18  ;;  %vm1530_vm3 = vcmp.ge.f32.partialorder %v1348_v51, 0.0  ;;  %v1675_v55 = vmul.f32 %v3250_v24, %v1348_v51  ;;  %v4273_v12 = vld [vmem:[#allocation28_spill] sm:$0xff]  ;;  %v4274_v35 = vld [vmem:[#allocation33_spill] sm:$0xff] }
 0x16b   :  { %v3937_v22 = vpop.f32.mrb[70].mxu0  ;;  %v3939_v10 = vpop.f32.mrb[70].mxu1  ;;  %v3952_v28 = vsel %vm1459_vm0, %v993_v21, %v1604_v2  ;;  %v1851_v41 = vmax.f32 %v4266_v58, %v3887_v45  ;;  %v1820_v4 = vsel %vm1531_vm1, %v1353_v60, %v1676_v50  ;;  %v1852_v49 = vmax.f32 %v4268_v52, %v3876_v40  ;;  %v4272_v21 = vld [vmem:[#allocation27_spill] sm:$0xff] }
 0x16c   :  { %v3944_v61 = vpop.f32.mrb[71].mxu0  ;;  %v3946_v6 = vpop.f32.mrb[71].mxu1  ;;  %v1747_v59 = vsel %vm1458_vm2, %v988_v3, %v1603_v17  ;;  %v1819_v46 = vsel %vm1530_vm3, %v1348_v51, %v1675_v55  ;;  %v1888_v27 = vmax.f32 %v4269_v39, %v3885_v9  ;;  %v1003_v23 = vadd.f32 %v3729_v14, %v3857_v18  ;;  %v4271_v9 = vld [vmem:[#allocation30_spill] sm:$0xff] }
 0x16d   :  { %v1363_v30 = vadd.f32 %v3729_v14, %v3859_v7  ;;  %v1923_v43 = vmax.f32 %v1851_v41, %v1887_v26  ;;  %v998_v45 = vadd.f32 %v3729_v14, %v3865_v11  ;;  %v1358_v62 = vadd.f32 %v3729_v14, %v3867_v47 }
 0x16e   :  { %v1853_v42 = vmax.f32 %v4270_v15, %v1745_v29  ;;  %v1924_v40 = vmax.f32 %v1852_v49, %v1888_v27  ;;  %vm1461_vm4 = vcmp.ge.f32.partialorder %v1003_v23, 0.0  ;;  %v1606_v13 = vmul.f32 %v3250_v24, %v1003_v23  ;;  %v4276_v27 = vld [vmem:[#allocation31_spill] sm:$0xff] }
 0x16f   :  { %vm1533_vm5 = vcmp.ge.f32.partialorder %v1363_v30, 0.0  ;;  %1990 = vrot.lane.b32.xlu1 %v1923_v43, %s2627_s18  ;;  %v1678_v18 = vmul.f32 %v3250_v24, %v1363_v30  ;;  %vm1460_vm6 = vcmp.ge.f32.partialorder %v998_v45, 0.0  ;;  %v1605_v7 = vmul.f32 %v3250_v24, %v998_v45  ;;  %v4277_v43 = vld [vmem:[#allocation32_spill] sm:$0xff] }
 0x170   :  { %vm1532_vm7 = vcmp.ge.f32.partialorder %v1358_v62, 0.0  ;;  %1992 = vrot.lane.b32.xlu0 %v1924_v40, %s2627_s18  ;;  %v1750_v11 = vsel %vm1461_vm4, %v1003_v23, %v1606_v13  ;;  %v1677_v47 = vmul.f32 %v3250_v24, %v1358_v62  ;;  %v1889_v29 = vmax.f32 %v4271_v9, %v1817_v34 }
 0x171   :  { %v1854_v54 = vmax.f32 %v4272_v21, %v3922_v33  ;;  %v1822_v60 = vsel %vm1533_vm5, %v1363_v30, %v1678_v18  ;;  %v1749_v3 = vsel %vm1460_vm6, %v998_v45, %v1605_v7  ;;  %v1890_v2 = vmax.f32 %v4273_v12, %v1818_v20 }
 0x172   :  { %v1013_v51 = vadd.f32 %v3729_v14, %v3881_v19  ;;  %v1821_v50 = vsel %vm1532_vm7, %v1358_v62, %v1677_v47  ;;  %v1925_v17 = vmax.f32 %v1853_v42, %v1889_v29  ;;  %v1373_v55 = vadd.f32 %v3729_v14, %v3883_v53  ;;  %v4280_v47 = vld [vmem:[#allocation35_spill] sm:$0xff] }
 0x173   :  { %v1008_v58 = vadd.f32 %v3729_v14, %v3893_v36  ;;  %v1926_v41 = vmax.f32 %v1854_v54, %v1890_v2  ;;  %v1368_v33 = vadd.f32 %v3729_v14, %v3895_v8  ;;  %v1855_v26 = vmax.f32 %v4274_v35, %v1747_v59  ;;  %v4275_v8 = vld [vmem:[#allocation34_spill] sm:$0xff]  ;;  %v4281_v54 = vld [vmem:[#allocation36_spill] sm:$0xff] }
 0x174   :  { %vm1463_vm8 = vcmp.ge.f32.partialorder %v1013_v51, 0.0  ;;  %v1608_v34 = vmul.f32 %v3250_v24, %v1013_v51  ;;  %1994 = vrot.lane.b32.xlu1 %v1925_v17, %s2627_s18  ;;  %vm1535_vm9 = vcmp.ge.f32.partialorder %v1373_v55, 0.0  ;;  %v1680_v19 = vmul.f32 %v3250_v24, %v1373_v55 }
 0x175   :  { %vm1462_vm10 = vcmp.ge.f32.partialorder %v1008_v58, 0.0  ;;  %v1607_v20 = vmul.f32 %v3250_v24, %v1008_v58  ;;  %1996 = vrot.lane.b32.xlu0 %v1926_v41, %s2627_s18  ;;  %vm1534_vm11 = vcmp.ge.f32.partialorder %v1368_v33, 0.0  ;;  %v1679_v36 = vmul.f32 %v3250_v24, %v1368_v33  ;;  %v4282_v41 = vld [vmem:[#allocation41_spill] sm:$0xff] }
 0x176   :  { %v3994_v53 = vsel %vm1463_vm8, %v1013_v51, %v1608_v34  ;;  %v1824_v52 = vsel %vm1535_vm9, %v1373_v55, %v1680_v19  ;;  %v1891_v39 = vmax.f32 %v4275_v8, %v1819_v46  ;;  %v1856_v23 = vmax.f32 %v4276_v27, %v3952_v28  ;;  %v4278_v46 = vld [vmem:[#allocation37_spill] sm:$0xff] }
 0x177   :  { %v1751_v49 = vsel %vm1462_vm10, %v1008_v58, %v1607_v20  ;;  %v1823_v30 = vsel %vm1534_vm11, %v1368_v33, %v1679_v36  ;;  %v1892_v45 = vmax.f32 %v4277_v43, %v1820_v4  ;;  %v1023_v62 = vadd.f32 %v3729_v14, %v3910_v31  ;;  %v4279_v4 = vld [vmem:[#allocation38_spill] sm:$0xff] }
 0x178   :  { %v1383_v15 = vadd.f32 %v3729_v14, %v3912_v63  ;;  %v1927_v42 = vmax.f32 %v1855_v26, %v1891_v39  ;;  %v1018_v59 = vadd.f32 %v3729_v14, %v3917_v32  ;;  %v1378_v40 = vadd.f32 %v3729_v14, %v3919_v16  ;;  %v4283_v20 = vld [vmem:[#allocation42_spill] sm:$0xff]  ;;  %v4285_v26 = vld [vmem:[#allocation40_spill] sm:$0xff]  ;;  %v4286_v39 = vld [vmem:[#allocation45_spill] sm:$0xff] }
 0x179   :  { %v1857_v13 = vmax.f32 %v4278_v46, %v1749_v3  ;;  %v1928_v18 = vmax.f32 %v1856_v23, %v1892_v45  ;;  %vm1465_vm12 = vcmp.ge.f32.partialorder %v1023_v62, 0.0  ;;  %v1610_v28 = vmul.f32 %v3250_v24, %v1023_v62  ;;  %v4287_v23 = vld [vmem:[#allocation46_spill] sm:$0xff]  ;;  %v4290_v46 = vld [vmem:[#allocation47_spill] sm:$0xff] }
 0x17a   :  { %vm1537_vm13 = vcmp.ge.f32.partialorder %v1383_v15, 0.0  ;;  %1998 = vrot.lane.b32.xlu1 %v1927_v42, %s2627_s18  ;;  %v1682_v31 = vmul.f32 %v3250_v24, %v1383_v15  ;;  %vm1464_vm14 = vcmp.ge.f32.partialorder %v1018_v59, 0.0  ;;  %v1609_v63 = vmul.f32 %v3250_v24, %v1018_v59 }
 0x17b   :  { %vm1536_vm15 = vcmp.ge.f32.partialorder %v1378_v40, 0.0  ;;  %2018 = vrot.lane.b32.xlu0 %v1928_v18, %s2628_s19  ;;  %v1754_v32 = vsel %vm1465_vm12, %v1023_v62, %v1610_v28  ;;  %v1681_v16 = vmul.f32 %v3250_v24, %v1378_v40  ;;  %v1893_v7 = vmax.f32 %v4279_v4, %v1821_v50  ;;  %v4288_v62 = vld [vmem:[#allocation43_spill] sm:$0xff]  ;;  %v4296_v4 = vld [vmem:[#allocation4_spill] sm:$0xff] }
 0x17c   :  { %v1858_v9 = vmax.f32 %v4280_v47, %v1750_v11  ;;  %v1826_v29 = vsel %vm1537_vm13, %v1383_v15, %v1682_v31  ;;  %v1753_v21 = vsel %vm1464_vm14, %v1018_v59, %v1609_v63  ;;  %v1894_v3 = vmax.f32 %v4281_v54, %v1822_v60  ;;  %v4305_v54 = vld [vmem:[#allocation5_spill] sm:$0xff] }
 0x17d   :  { %v1033_v12 = vadd.f32 %v3729_v14, %v3937_v22  ;;  %v1825_v2 = vsel %vm1536_vm15, %v1378_v40, %v1681_v16  ;;  %v1929_v51 = vmax.f32 %v1857_v13, %v1893_v7  ;;  %v1393_v17 = vadd.f32 %v3729_v14, %v3939_v10  ;;  %v4291_v13 = vld [vmem:[#allocation48_spill] sm:$0xff]  ;;  %v4297_v7 = vld [vmem:[#allocation50_spill] sm:$0xff] }
 0x17e   :  { %v1028_v55 = vadd.f32 %v3729_v14, %v3944_v61  ;;  %v1930_v58 = vmax.f32 %v1858_v9, %v1894_v3  ;;  %v1388_v11 = vadd.f32 %v3729_v14, %v3946_v6  ;;  %v1859_v34 = vmax.f32 %v4282_v41, %v1751_v49  ;;  %v4284_v6 = vld [vmem:[#allocation39_spill] sm:$0xff] }
 0x17f   :  { %vm1467_vm0 = vcmp.ge.f32.partialorder %v1033_v12, 0.0  ;;  %v1612_v50 = vmul.f32 %v3250_v24, %v1033_v12  ;;  %2020 = vrot.lane.b32.xlu1 %v1929_v51, %s2628_s19  ;;  %vm1539_vm1 = vcmp.ge.f32.partialorder %v1393_v17, 0.0  ;;  %v1684_v22 = vmul.f32 %v3250_v24, %v1393_v17  ;;  %v4299_v9 = vld [vmem:[#allocation3_spill] sm:$0xff] }
 0x180   :  { %vm1466_vm2 = vcmp.ge.f32.partialorder %v1028_v55, 0.0  ;;  %v1611_v60 = vmul.f32 %v3250_v24, %v1028_v55  ;;  %2022 = vrot.lane.b32.xlu0 %v1930_v58, %s2628_s19  ;;  %vm1538_vm3 = vcmp.ge.f32.partialorder %v1388_v11, 0.0  ;;  %v1683_v61 = vmul.f32 %v3250_v24, %v1388_v11  ;;  %v4289_v24 = vld [vmem:[#allocation44_spill] sm:$0xff]  ;;  %v4306_v3 = vld [vmem:[#allocation51_spill] sm:$0xff] }
 0x181   :  { %v1756_v10 = vsel %vm1467_vm0, %v1033_v12, %v1612_v50  ;;  %v1828_v33 = vsel %vm1539_vm1, %v1393_v17, %v1684_v22  ;;  %v1895_v14 = vmax.f32 %v4283_v20, %v1823_v30  ;;  %v1860_v36 = vmax.f32 %v4284_v6, %v3994_v53  ;;  %v4308_v12 = vld [vmem:[#allocation10_spill] sm:$0xff]  ;;  %v4312_v51 = vld [vmem:[#allocation55_spill] sm:$0xff]  ;;  %v4314_v50 = vld [vmem:[#allocation8_spill] sm:$0xff] }
 0x182   :  { %v1755_v19 = vsel %vm1466_vm2, %v1028_v55, %v1611_v60  ;;  %v1827_v35 = vsel %vm1538_vm3, %v1388_v11, %v1683_v61  ;;  %v1896_v8 = vmax.f32 %v4285_v26, %v1824_v52  ;;  %v1861_v27 = vmax.f32 %v4286_v39, %v1753_v21  ;;  %v4302_v21 = vld [vmem:[#allocation6_spill] sm:$0xff]  ;;  %v4317_v60 = vld [vmem:[#allocation7_spill] sm:$0xff]  ;;  %v4323_v20 = vld [vmem:[#allocation13_spill] sm:$0xff] }
 0x183   :  { %v1897_v43 = vmax.f32 %v4287_v23, %v1825_v2  ;;  %v1931_v45 = vmax.f32 %v1859_v34, %v1895_v14  ;;  %v1862_v15 = vmax.f32 %v4288_v62, %v1754_v32  ;;  %v1898_v42 = vmax.f32 %v4289_v24, %v1826_v29  ;;  %v4300_v29 = vld [vmem:[#allocation49_spill] sm:$0xff]  ;;  %v4315_v11 = vld [vmem:[#allocation54_spill] sm:$0xff]  ;;  %v4324_v14 = vld [vmem:[#allocation59_spill] sm:$0xff] }
 0x184   :  { %v1863_v49 = vmax.f32 %v3593_v5, %v1755_v19  ;;  %v1932_v59 = vmax.f32 %v1860_v36, %v1896_v8  ;;  %v1899_v30 = vmax.f32 %v3657_v37, %v1827_v35  ;;  %v1864_v53 = vmax.f32 %v4290_v46, %v1756_v10  ;;  %v4311_v2 = vld [vmem:[#allocation9_spill] sm:$0xff]  ;;  %v4320_v34 = vld [vmem:[#allocation14_spill] sm:$0xff]  ;;  %v4326_v35 = vld [vmem:[#allocation12_spill] sm:$0xff] }
 0x185   :  { %v1933_v40 = vmax.f32 %v1861_v27, %v1897_v43  ;;  %2024 = vrot.lane.b32.xlu1 %v1931_v45, %s2628_s19  ;;  %v1934_v52 = vmax.f32 %v1862_v15, %v1898_v42  ;;  %v1900_v18 = vmax.f32 %v4291_v13, %v1828_v33  ;;  %v4292_v28 = vmax.f32 %v3277_v57, %v3582_v44  ;;  %v4318_v10 = vld [vmem:[#allocation53_spill] sm:$0xff]  ;;  %v4321_v33 = vld [vmem:[#allocation60_spill] sm:$0xff]  ;;  %v4327_v26 = vld [vmem:[#allocation58_spill] sm:$0xff] }
 0x186   :  { %v4293_v31 = vmax.f32 %v3270_v48, %v3580_v38  ;;  %v4294_v5 = vmax.f32 %v3290_v1, %v3614_v56  ;;  %v4295_v37 = vmax.f32 %v3288_v0, %v3608_v25  ;;  %2026 = vrot.lane.b32.xlu0 %v1932_v59, %s2628_s19  ;;  %v1935_v16 = vmax.f32 %v1863_v49, %v1899_v30  ;;  %v4303_v48 = vld [vmem:[#allocation52_spill] sm:$0xff]  ;;  %v4329_v39 = vld [vmem:[#allocation11_spill] sm:$0xff]  ;;  %v4330_v27 = vld [vmem:[#allocation57_spill] sm:$0xff] }
 0x187   :  { %v4298_v47 = vmax.f32 %v4296_v4, %v4297_v7  ;;  %v4301_v57 = vmax.f32 %v4299_v9, %v4300_v29  ;;  %v4304_v38 = vmax.f32 %v4302_v21, %v4303_v48  ;;  %v4307_v1 = vmax.f32 %v4305_v54, %v4306_v3  ;;  %v4309_v0 = vld [vmem:[#allocation56_spill] sm:$0xff]  ;;  %v4333_v62 = vld [vmem:[#allocation62_spill] sm:$0xff]  ;;  %v4335_v24 = vld [vmem:[#allocation15_spill] sm:$0xff] }
 0x188   :  { %v1901_v63 = vmax.f32 %v4293_v31, %v4292_v28  ;;  %v1903_v32 = vmax.f32 %v4295_v37, %v4294_v5  ;;  %v4310_v25 = vmax.f32 %v4308_v12, %v4309_v0  ;;  %v4313_v17 = vmax.f32 %v4311_v2, %v4312_v51  ;;  %v4332_v45 = vld [vmem:[#allocation16_spill] sm:$0xff]  ;;  %v4336_v42 = vld [vmem:[#allocation61_spill] sm:$0xff] }
 0x189   :  { %v1902_v44 = vmax.f32 %v4301_v57, %v4298_v47  ;;  %v1904_v56 = vmax.f32 %v4307_v1, %v4304_v38  ;;  %v1936_v58 = vmax.f32 %v1864_v53, %v1900_v18  ;;  %v4316_v22 = vmax.f32 %v4314_v50, %v4315_v11  ;;  %2028 = vrot.lane.b32.xlu1 %v1933_v40, %s2628_s19 }
 0x18a   :  { %v1905_v55 = vmax.f32 %v4313_v17, %v4310_v25  ;;  %v4319_v61 = vmax.f32 %v4317_v60, %v4318_v10  ;;  %v4322_v19 = vmax.f32 %v4320_v34, %v4321_v33  ;;  %v4325_v6 = vmax.f32 %v4323_v20, %v4324_v14  ;;  %2030 = vrot.lane.b32.xlu0 %v1934_v52, %s2628_s19 }
 0x18b   :  { %v4328_v8 = vmax.f32 %v4326_v35, %v4327_v26  ;;  %v4331_v23 = vmax.f32 %v4329_v39, %v4330_v27  ;;  %v4334_v15 = vmax.f32 %v4332_v45, %v4333_v62  ;;  %v4337_v49 = vmax.f32 %v4335_v24, %v4336_v42 }
 0x18c   :  { %v1906_v41 = vmax.f32 %v4319_v61, %v4316_v22  ;;  %v1907_v36 = vmax.f32 %v4325_v6, %v4322_v19  ;;  %vm2045_vm4 = vcmask 261120   ;;  %vm2055_vm5 = vcmask 523264  }
 0x18d   :  { %v4097_v43 = vmax.f32 %v4331_v23, %v4328_v8  ;;  %v4105_v59 = vmax.f32 %v4337_v49, %v4334_v15  ;;  %2032 = vrot.lane.b32.xlu1 %v1935_v16, %s2628_s19  ;;  %vm2065_vm6 = vcmask 785408  }
 0x18e   :  { %2034 = vrot.lane.b32.xlu0 %v1936_v58, %s2628_s19 }
 0x1bb   :  { %v1947_v30 = vpop.permute.xlu0 %1946 }
 0x1bc   :  { %v2046_v16 = vsel %vm2045_vm4, %v1901_v63, %v1947_v30 }
 0x1c0   :  { %v1951_v46 = vpop.permute.xlu1 %1950 }
 0x1c1   :  { %v1949_v53 = vpop.permute.xlu0 %1948  ;;  %v2048_v1 = vsel %vm2045_vm4, %v1903_v32, %v1951_v46 }
 0x1c2   :  { %v2047_v3 = vsel %vm2045_vm4, %v1902_v44, %v1949_v53 }
 0x1c5   :  { %v1953_v13 = vpop.permute.xlu1 %1952 }
 0x1c6   :  { %v1955_v18 = vpop.permute.xlu0 %1954  ;;  %v2049_v32 = vsel %vm2045_vm4, %v1904_v56, %v1953_v13 }
 0x1c7   :  { %v2050_v44 = vsel %vm2045_vm4, %v1905_v55, %v1955_v18 }
 0x1cb   :  { %v1957_v28 = vpop.permute.xlu1 %1956 }
 0x1cc   :  { %v1959_v31 = vpop.permute.xlu0 %1958  ;;  %v2051_v10 = vsel %vm2045_vm4, %v1906_v41, %v1957_v28 }
 0x1cd   :  { %v2052_v56 = vsel %vm2045_vm4, %v1907_v36, %v1959_v31 }
 0x1d0   :  { %v1961_v5 = vpop.permute.xlu1 %1960 }
 0x1d1   :  { %v1963_v37 = vpop.permute.xlu0 %1962  ;;  %v2053_v20 = vsel %vm2045_vm4, %v4097_v43, %v1961_v5 }
 0x1d2   :  { %v2054_v14 = vsel %vm2045_vm4, %v4105_v59, %v1963_v37 }
 0x1d6   :  { %v1983_v4 = vpop.permute.xlu1 %1982 }
 0x1d7   :  { %v1985_v7 = vpop.permute.xlu0 %1984  ;;  %v2056_v48 = vsel %vm2055_vm5, %v2046_v16, %v1983_v4 }
 0x1d8   :  { %v2057_v12 = vsel %vm2055_vm5, %v2047_v3, %v1985_v7 }
 0x1db   :  { %v1987_v47 = vpop.permute.xlu1 %1986 }
 0x1dc   :  { %v1989_v9 = vpop.permute.xlu0 %1988  ;;  %v2058_v25 = vsel %vm2055_vm5, %v2048_v1, %v1987_v47 }
 0x1dd   :  { %v2059_v17 = vsel %vm2055_vm5, %v2049_v32, %v1989_v9 }
 0x1e1   :  { %v1991_v40 = vpop.permute.xlu1 %1990 }
 0x1e2   :  { %v1993_v29 = vpop.permute.xlu0 %1992  ;;  %v2060_v50 = vsel %vm2055_vm5, %v2050_v44, %v1991_v40 }
 0x1e3   :  { %v2061_v55 = vsel %vm2055_vm5, %v2051_v10, %v1993_v29 }
 0x1e6   :  { %v1995_v52 = vpop.permute.xlu1 %1994 }
 0x1e7   :  { %v1997_v57 = vpop.permute.xlu0 %1996  ;;  %v2062_v34 = vsel %vm2055_vm5, %v2052_v56, %v1995_v52 }
 0x1e8   :  { %v2063_v6 = vsel %vm2055_vm5, %v2053_v20, %v1997_v57 }
 0x1ec   :  { %v1999_v21 = vpop.permute.xlu1 %1998 }
 0x1ed   :  { %v2019_v38 = vpop.permute.xlu0 %2018  ;;  %v2064_v35 = vsel %vm2055_vm5, %v2054_v14, %v1999_v21 }
 0x1ee   :  { %v2066_v54 = vsel %vm2065_vm6, %v2056_v48, %v2019_v38 }
 0x1ef   :  { %2075 = vst [vmem:[%s4171_s4] sm:$0xff] %v2066_v54 }
 0x1f1   :  { %v2021_v0 = vpop.permute.xlu1 %2020 }
 0x1f2   :  { %v2067_v63 = vsel %vm2065_vm6, %v2057_v12, %v2021_v0  ;;  %v2023_v2 = vpop.permute.xlu0 %2022 }
 0x1f3   :  { %2076 = vst [vmem:[%s4171_s4 + $0x8] sm:$0xff] %v2067_v63  ;;  %v2068_v51 = vsel %vm2065_vm6, %v2058_v25, %v2023_v2 }
 0x1f4   :  { %2077 = vst [vmem:[%s4171_s4 + $0x10] sm:$0xff] %v2068_v51 }
 0x1f7   :  { %v2025_v58 = vpop.permute.xlu1 %2024 }
 0x1f8   :  { %v2069_v11 = vsel %vm2065_vm6, %v2059_v17, %v2025_v58  ;;  %v2027_v22 = vpop.permute.xlu0 %2026 }
 0x1f9   :  { %2078 = vst [vmem:[%s4171_s4 + $0x18] sm:$0xff] %v2069_v11  ;;  %v2070_v60 = vsel %vm2065_vm6, %v2060_v50, %v2027_v22 }
 0x1fa   :  { %2079 = vst [vmem:[%s4171_s4 + $0x20] sm:$0xff] %v2070_v60 }
 0x1fb   :  { %v2029_v61 = vpop.permute.xlu1 %2028 }
 0x1fc   :  { %v2071_v33 = vsel %vm2065_vm6, %v2061_v55, %v2029_v61  ;;  %v2031_v19 = vpop.permute.xlu0 %2030 }
 0x1fd   :  { %2080 = vst [vmem:[%s4171_s4 + $0x28] sm:$0xff] %v2071_v33  ;;  %v2072_v41 = vsel %vm2065_vm6, %v2062_v34, %v2031_v19 }
 0x1fe   :  { %2081 = vst [vmem:[%s4171_s4 + $0x30] sm:$0xff] %v2072_v41 }
 0x1ff   :  { %v2033_v36 = vpop.permute.xlu1 %2032 }
 0x200   :  { %v2073_v26 = vsel %vm2065_vm6, %v2063_v6, %v2033_v36  ;;  %v2035_v8 = vpop.permute.xlu0 %2034 }
 0x201   :  { %2082 = vst [vmem:[%s4171_s4 + $0x38] sm:$0xff] %v2073_v26  ;;  %v2074_v39 = vsel %vm2065_vm6, %v2064_v35, %v2035_v8 }
 0x202   :  { %2083 = vst [vmem:[%s4171_s4 + $0x40] sm:$0xff] %v2074_v39 }

// kernel: embedding_net_forward.4
= control target key start
LH: loop header
LB: loop body
LE: loop exit
PB: predicated region body
PF: predicated region fallthrough
CT: control target
= control target key end

     0   :  { %vm238_vm0 = vcmask 261120   ;;  %s2177_s1 = inlined_call_operand.vmem [shape: f32[800,64], index: 1, kind: input, shape index: {}]   ;;  %s2178_s0 = inlined_call_operand.vmem [shape: f32[4,2,16,800], index: 0, kind: input, shape index: {}]   ;;  %s2179_s2 = inlined_call_operand.vmem [shape: f32[1,64], index: 2, kind: input, shape index: {}]   ;;  %s2180_s3 = inlined_call_operand.<no memory space> [shape: f32[1], index: 3, kind: input, shape index: {}]   ;;  %s2181_s4 = inlined_call_operand.vmem [shape: f32[16,128], index: 4, kind: output, shape index: {}]  }
   0x1   :  { %v34_v0 = vld [vmem:[%s2177_s1 + $0x80] sm:$0xff]  ;;  %v35_v1 = vld [vmem:[%s2177_s1 + $0x88] sm:$0xff]  ;;  %v36_v11 = vld [vmem:[%s2177_s1 + $0x90] sm:$0xff] }
   0x2   :  { %v66_v2 = vld [vmem:[%s2177_s1 + $0x180] sm:$0xff]  ;;  %v1254_v3 = vpack.c.bf16 %v35_v1, %v34_v0  ;;  %v67_v4 = vld [vmem:[%s2177_s1 + $0x188] sm:$0xff]  ;;  %v37_v13 = vld [vmem:[%s2177_s1 + $0x98] sm:$0xff] }
   0x3   :  { %v18_v5 = vld [vmem:[%s2177_s1] sm:$0xff]  ;;  %v19_v6 = vld [vmem:[%s2177_s1 + $0x8] sm:$0xff]  ;;  %v1286_v7 = vpack.c.bf16 %v67_v4, %v66_v2  ;;  %v68_v14 = vld [vmem:[%s2177_s1 + $0x190] sm:$0xff]  ;;  %v1258_v16 = vpack.c.bf16 %v37_v13, %v36_v11 }
   0x4   :  { %v1256_v8 = vpack.c.bf16 %v19_v6, %v18_v5  ;;  %v50_v9 = vld [vmem:[%s2177_s1 + $0x100] sm:$0xff]  ;;  %v51_v10 = vld [vmem:[%s2177_s1 + $0x108] sm:$0xff]  ;;  %1255 = vmatprep.subr.bf16.mxu0 %v1254_v3  ;;  %v69_v15 = vld [vmem:[%s2177_s1 + $0x198] sm:$0xff] }
   0x5   :  { %v1288_v12 = vpack.c.bf16 %v51_v10, %v50_v9  ;;  %1287 = vmatprep.subr.bf16.mxu1 %v1286_v7  ;;  %v1290_v17 = vpack.c.bf16 %v69_v15, %v68_v14  ;;  %v20_v18 = vld [vmem:[%s2177_s1 + $0x10] sm:$0xff]  ;;  %v21_v19 = vld [vmem:[%s2177_s1 + $0x18] sm:$0xff]  ;;  %v38_v23 = vld [vmem:[%s2177_s1 + $0xa0] sm:$0xff] }
   0x6   :  { %1257 = vmatpush3.bf16.msra.mxu0 %v1256_v8  ;;  %v52_v20 = vld [vmem:[%s2177_s1 + $0x110] sm:$0xff]  ;;  %v1260_v21 = vpack.c.bf16 %v21_v19, %v20_v18  ;;  %v53_v22 = vld [vmem:[%s2177_s1 + $0x118] sm:$0xff]  ;;  %v39_v24 = vld [vmem:[%s2177_s1 + $0xa8] sm:$0xff] }
   0x7   :  { %1289 = vmatpush3.bf16.msra.mxu1 %v1288_v12  ;;  %1259 = vmatprep.subr.bf16.mxu0 %v1258_v16  ;;  %v1292_v25 = vpack.c.bf16 %v53_v22, %v52_v20  ;;  %v1262_v26 = vpack.c.bf16 %v39_v24, %v38_v23  ;;  %v70_v27 = vld [vmem:[%s2177_s1 + $0x1a0] sm:$0xff]  ;;  %v71_v28 = vld [vmem:[%s2177_s1 + $0x1a8] sm:$0xff]  ;;  %v40_v35 = vld [vmem:[%s2177_s1 + $0xb0] sm:$0xff] }
   0x8   :  { %1291 = vmatprep.subr.bf16.mxu1 %v1290_v17  ;;  %v22_v29 = vld [vmem:[%s2177_s1 + $0x20] sm:$0xff]  ;;  %v1294_v30 = vpack.c.bf16 %v71_v28, %v70_v27  ;;  %v23_v31 = vld [vmem:[%s2177_s1 + $0x28] sm:$0xff]  ;;  %v41_v36 = vld [vmem:[%s2177_s1 + $0xb8] sm:$0xff] }
   0x9   :  { %v54_v32 = vld [vmem:[%s2177_s1 + $0x120] sm:$0xff]  ;;  %v55_v33 = vld [vmem:[%s2177_s1 + $0x128] sm:$0xff]  ;;  %v1264_v34 = vpack.c.bf16 %v23_v31, %v22_v29  ;;  %v72_v37 = vld [vmem:[%s2177_s1 + $0x1b0] sm:$0xff]  ;;  %v1266_v39 = vpack.c.bf16 %v41_v36, %v40_v35 }
   0xa   :  { %1261 = vmatpush3.bf16.msra.mxu0 %v1260_v21  ;;  %v1296_v38 = vpack.c.bf16 %v55_v33, %v54_v32  ;;  %v73_v40 = vld [vmem:[%s2177_s1 + $0x1b8] sm:$0xff]  ;;  %v24_v41 = vld [vmem:[%s2177_s1 + $0x30] sm:$0xff]  ;;  %v42_v46 = vld [vmem:[%s2177_s1 + $0xc0] sm:$0xff] }
   0xb   :  { %1293 = vmatpush3.bf16.msra.mxu1 %v1292_v25  ;;  %1263 = vmatprep.subr.bf16.mxu0 %v1262_v26  ;;  %v25_v42 = vld [vmem:[%s2177_s1 + $0x38] sm:$0xff]  ;;  %v1298_v43 = vpack.c.bf16 %v73_v40, %v72_v37  ;;  %v56_v44 = vld [vmem:[%s2177_s1 + $0x130] sm:$0xff]  ;;  %v43_v47 = vld [vmem:[%s2177_s1 + $0xc8] sm:$0xff] }
   0xc   :  { %1295 = vmatprep.subr.bf16.mxu1 %v1294_v30  ;;  %v57_v45 = vld [vmem:[%s2177_s1 + $0x138] sm:$0xff]  ;;  %v74_v48 = vld [vmem:[%s2177_s1 + $0x1c0] sm:$0xff]  ;;  %v75_v49 = vld [vmem:[%s2177_s1 + $0x1c8] sm:$0xff]  ;;  %v1268_v50 = vpack.c.bf16 %v25_v42, %v24_v41  ;;  %v1270_v52 = vpack.c.bf16 %v43_v47, %v42_v46 }
   0xd   :  { %v1300_v51 = vpack.c.bf16 %v57_v45, %v56_v44  ;;  %v26_v53 = vld [vmem:[%s2177_s1 + $0x40] sm:$0xff]  ;;  %v27_v54 = vld [vmem:[%s2177_s1 + $0x48] sm:$0xff]  ;;  %v1302_v56 = vpack.c.bf16 %v75_v49, %v74_v48  ;;  %v44_v58 = vld [vmem:[%s2177_s1 + $0xd0] sm:$0xff] }
   0xe   :  { %1265 = vmatpush3.bf16.msra.mxu0 %v1264_v34  ;;  %v58_v55 = vld [vmem:[%s2177_s1 + $0x140] sm:$0xff]  ;;  %v59_v57 = vld [vmem:[%s2177_s1 + $0x148] sm:$0xff]  ;;  %v45_v59 = vld [vmem:[%s2177_s1 + $0xd8] sm:$0xff]  ;;  %v1272_v62 = vpack.c.bf16 %v27_v54, %v26_v53 }
   0xf   :  { %1297 = vmatpush3.bf16.msra.mxu1 %v1296_v38  ;;  %1267 = vmatprep.subr.bf16.mxu0 %v1266_v39  ;;  %v76_v60 = vld [vmem:[%s2177_s1 + $0x1d0] sm:$0xff]  ;;  %v77_v61 = vld [vmem:[%s2177_s1 + $0x1d8] sm:$0xff]  ;;  %v1304_v63 = vpack.c.bf16 %v59_v57, %v58_v55  ;;  %v1274_v0 = vpack.c.bf16 %v45_v59, %v44_v58  ;;  %v46_v6 = vld [vmem:[%s2177_s1 + $0xe0] sm:$0xff] }
  0x10   :  { %1299 = vmatprep.subr.bf16.mxu1 %v1298_v43  ;;  %v28_v1 = vld [vmem:[%s2177_s1 + $0x50] sm:$0xff]  ;;  %v29_v2 = vld [vmem:[%s2177_s1 + $0x58] sm:$0xff]  ;;  %v1306_v4 = vpack.c.bf16 %v77_v61, %v76_v60  ;;  %v47_v7 = vld [vmem:[%s2177_s1 + $0xe8] sm:$0xff] }
  0x11   :  { %v60_v3 = vld [vmem:[%s2177_s1 + $0x150] sm:$0xff]  ;;  %v61_v5 = vld [vmem:[%s2177_s1 + $0x158] sm:$0xff]  ;;  %v78_v8 = vld [vmem:[%s2177_s1 + $0x1e0] sm:$0xff]  ;;  %v1276_v10 = vpack.c.bf16 %v29_v2, %v28_v1  ;;  %v1278_v14 = vpack.c.bf16 %v47_v7, %v46_v6 }
  0x12   :  { %1269 = vmatpush3.bf16.msra.mxu0 %v1268_v50  ;;  %v79_v9 = vld [vmem:[%s2177_s1 + $0x1e8] sm:$0xff]  ;;  %v30_v11 = vld [vmem:[%s2177_s1 + $0x60] sm:$0xff]  ;;  %v1308_v13 = vpack.c.bf16 %v61_v5, %v60_v3  ;;  %v123_v17 = vld [vmem:[%s2178_s0 + $0x18] sm:$0xff] }
  0x13   :  { %1301 = vmatpush3.bf16.msra.mxu1 %v1300_v51  ;;  %1271 = vmatprep.subr.bf16.mxu0 %v1270_v52  ;;  %v31_v12 = vld [vmem:[%s2177_s1 + $0x68] sm:$0xff]  ;;  %v62_v15 = vld [vmem:[%s2177_s1 + $0x160] sm:$0xff]  ;;  %v1310_v18 = vpack.c.bf16 %v79_v9, %v78_v8  ;;  %v48_v20 = vld [vmem:[%s2177_s1 + $0xf0] sm:$0xff] }
  0x14   :  { %1303 = vmatprep.subr.bf16.mxu1 %v1302_v56  ;;  %v121_v16 = vld [vmem:[%s2178_s0 + $0x8] sm:$0xff]  ;;  %v49_v21 = vld [vmem:[%s2177_s1 + $0xf8] sm:$0xff]  ;;  %v80_v22 = vld [vmem:[%s2177_s1 + $0x1f0] sm:$0xff]  ;;  %496 = vmatprep.mubr.f32.mxu1 %v123_v17  ;;  %v1280_v24 = vpack.c.bf16 %v31_v12, %v30_v11 }
  0x15   :  { %v63_v19 = vld [vmem:[%s2177_s1 + $0x168] sm:$0xff]  ;;  %351 = vmatprep.mubr.f32.mxu0 %v121_v16  ;;  %v81_v23 = vld [vmem:[%s2177_s1 + $0x1f8] sm:$0xff]  ;;  %v1282_v26 = vpack.c.bf16 %v49_v21, %v48_v20  ;;  %v32_v27 = vld [vmem:[%s2177_s1 + $0x70] sm:$0xff] }
  0x16   :  { %1273 = vmatpush3.bf16.msra.mxu0 %v1272_v62  ;;  %v1312_v25 = vpack.c.bf16 %v63_v19, %v62_v15  ;;  %v33_v28 = vld [vmem:[%s2177_s1 + $0x78] sm:$0xff]  ;;  %v64_v29 = vld [vmem:[%s2177_s1 + $0x170] sm:$0xff]  ;;  %v1314_v30 = vpack.c.bf16 %v81_v23, %v80_v22  ;;  %v98_v32 = vld [vmem:[%s2177_s1 + $0x280] sm:$0xff] }
  0x17   :  { %1305 = vmatpush3.bf16.msra.mxu1 %v1304_v63  ;;  %1275 = vmatprep.subr.bf16.mxu0 %v1274_v0  ;;  %v65_v31 = vld [vmem:[%s2177_s1 + $0x178] sm:$0xff]  ;;  %v99_v33 = vld [vmem:[%s2177_s1 + $0x288] sm:$0xff]  ;;  %v1284_v34 = vpack.c.bf16 %v33_v28, %v32_v27  ;;  %v82_v37 = vld [vmem:[%s2177_s1 + $0x200] sm:$0xff] }
  0x18   :  { %1307 = vmatprep.subr.bf16.mxu1 %v1306_v4  ;;  %v1316_v35 = vpack.c.bf16 %v65_v31, %v64_v29  ;;  %v1318_v36 = vpack.c.bf16 %v99_v33, %v98_v32  ;;  %v83_v38 = vld [vmem:[%s2177_s1 + $0x208] sm:$0xff]  ;;  %v100_v39 = vld [vmem:[%s2177_s1 + $0x290] sm:$0xff]  ;;  %v101_v40 = vld [vmem:[%s2177_s1 + $0x298] sm:$0xff] }
  0x19   :  { %v120_v41 = vld [vmem:[%s2178_s0] sm:$0xff]  ;;  %v1320_v42 = vpack.c.bf16 %v83_v38, %v82_v37  ;;  %v122_v43 = vld [vmem:[%s2178_s0 + $0x10] sm:$0xff]  ;;  %v1322_v45 = vpack.c.bf16 %v101_v40, %v100_v39  ;;  %v85_v47 = vld [vmem:[%s2177_s1 + $0x218] sm:$0xff] }
  0x1a   :  { %1277 = vmatpush3.bf16.msra.mxu0 %v1276_v10  ;;  %v128_v44 = vld [vmem:[%s2178_s0 + $0x40] sm:$0xff]  ;;  %v84_v46 = vld [vmem:[%s2177_s1 + $0x210] sm:$0xff]  ;;  %v103_v50 = vld [vmem:[%s2177_s1 + $0x2a8] sm:$0xff] }
  0x1b   :  { %1309 = vmatpush3.bf16.msra.mxu1 %v1308_v13  ;;  %1279 = vmatprep.subr.bf16.mxu0 %v1278_v14  ;;  %v130_v48 = vld [vmem:[%s2178_s0 + $0x50] sm:$0xff]  ;;  %v102_v49 = vld [vmem:[%s2177_s1 + $0x2a0] sm:$0xff]  ;;  %v127_v51 = vld [vmem:[%s2178_s0 + $0x38] sm:$0xff]  ;;  %v1324_v54 = vpack.c.bf16 %v85_v47, %v84_v46 }
  0x1c   :  { %1311 = vmatprep.subr.bf16.mxu1 %v1310_v18  ;;  %v129_v52 = vld [vmem:[%s2178_s0 + $0x48] sm:$0xff]  ;;  %v135_v53 = vld [vmem:[%s2178_s0 + $0x78] sm:$0xff]  ;;  %v1326_v56 = vpack.c.bf16 %v103_v50, %v102_v49  ;;  %v86_v57 = vld [vmem:[%s2177_s1 + $0x220] sm:$0xff] }
  0x1d   :  { %v137_v55 = vld [vmem:[%s2178_s0 + $0x88] sm:$0xff]  ;;  %v104_v59 = vld [vmem:[%s2177_s1 + $0x2b0] sm:$0xff]  ;;  %v105_v60 = vld [vmem:[%s2177_s1 + $0x2b8] sm:$0xff] }
  0x1e   :  { %1281 = vmatpush3.bf16.msra.mxu0 %v1280_v24  ;;  %v87_v58 = vld [vmem:[%s2177_s1 + $0x228] sm:$0xff]  ;;  %v134_v61 = vld [vmem:[%s2178_s0 + $0x70] sm:$0xff]  ;;  %v136_v62 = vld [vmem:[%s2178_s0 + $0x80] sm:$0xff]  ;;  %v1330_v2 = vpack.c.bf16 %v105_v60, %v104_v59 }
  0x1f   :  { %1313 = vmatpush3.bf16.msra.mxu1 %v1312_v25  ;;  %1283 = vmatprep.subr.bf16.mxu0 %v1282_v26  ;;  %v142_v63 = vld [vmem:[%s2178_s0 + $0xb0] sm:$0xff]  ;;  %v1328_v0 = vpack.c.bf16 %v87_v58, %v86_v57  ;;  %v144_v1 = vld [vmem:[%s2178_s0 + $0xc0] sm:$0xff]  ;;  %v89_v4 = vld [vmem:[%s2177_s1 + $0x238] sm:$0xff] }
  0x20   :  { %1315 = vmatprep.subr.bf16.mxu1 %v1314_v30  ;;  %v88_v3 = vld [vmem:[%s2177_s1 + $0x230] sm:$0xff]  ;;  %v106_v5 = vld [vmem:[%s2177_s1 + $0x2c0] sm:$0xff]  ;;  %v107_v6 = vld [vmem:[%s2177_s1 + $0x2c8] sm:$0xff] }
  0x21   :  { %v141_v7 = vld [vmem:[%s2178_s0 + $0xa8] sm:$0xff]  ;;  %v143_v8 = vld [vmem:[%s2178_s0 + $0xb8] sm:$0xff]  ;;  %v1332_v10 = vpack.c.bf16 %v89_v4, %v88_v3  ;;  %v1334_v12 = vpack.c.bf16 %v107_v6, %v106_v5  ;;  %v90_v13 = vld [vmem:[%s2177_s1 + $0x240] sm:$0xff] }
  0x22   :  { %1285 = vmatpush3.bf16.msra.mxu0 %v1284_v34  ;;  %v149_v9 = vld [vmem:[%s2178_s0 + $0xe8] sm:$0xff]  ;;  %v151_v11 = vld [vmem:[%s2178_s0 + $0xf8] sm:$0xff]  ;;  %v108_v15 = vld [vmem:[%s2177_s1 + $0x2d0] sm:$0xff] }
  0x23   :  { %1317 = vmatpush3.bf16.msra.mxu1 %v1316_v35  ;;  %1319 = vmatprep.subr.bf16.mxu0 %v1318_v36  ;;  %v91_v14 = vld [vmem:[%s2177_s1 + $0x248] sm:$0xff]  ;;  %v109_v16 = vld [vmem:[%s2177_s1 + $0x2d8] sm:$0xff]  ;;  %v148_v17 = vld [vmem:[%s2178_s0 + $0xe0] sm:$0xff] }
  0x24   :  { %1358 = vmatprep.subr.bf16.mxu1 %v1318_v36  ;;  %v150_v18 = vld [vmem:[%s2178_s0 + $0xf0] sm:$0xff]  ;;  %v156_v19 = vld [vmem:[%s2178_s0 + $0x120] sm:$0xff]  ;;  %v1336_v20 = vpack.c.bf16 %v91_v14, %v90_v13  ;;  %v1338_v22 = vpack.c.bf16 %v109_v16, %v108_v15  ;;  %v93_v24 = vld [vmem:[%s2177_s1 + $0x258] sm:$0xff] }
  0x25   :  { %352 = vmatmul.mubr.f32.vlgmr.msra.gmra.mrb[0].mxu0 %v120_v41  ;;  %v158_v21 = vld [vmem:[%s2178_s0 + $0x130] sm:$0xff]  ;;  %v110_v25 = vld [vmem:[%s2177_s1 + $0x2e0] sm:$0xff]  ;;  %v111_v26 = vld [vmem:[%s2177_s1 + $0x2e8] sm:$0xff] }
  0x26   :  { %497 = vmatmul.mubr.f32.vlgmr.msra.gmra.mrb[0].mxu1 %v122_v43  ;;  %1321 = vmatpush3.bf16.msra.mxu0 %v1320_v42  ;;  %v92_v23 = vld [vmem:[%s2177_s1 + $0x250] sm:$0xff]  ;;  %v155_v27 = vld [vmem:[%s2178_s0 + $0x118] sm:$0xff]  ;;  %v157_v28 = vld [vmem:[%s2178_s0 + $0x128] sm:$0xff]  ;;  %v1342_v32 = vpack.c.bf16 %v111_v26, %v110_v25 }
  0x27   :  { %1366 = vmatpush3.bf16.msra.mxu1 %v1320_v42  ;;  %356 = vmatprep.mubr.f32.mxu0 %v128_v44  ;;  %v163_v29 = vld [vmem:[%s2178_s0 + $0x158] sm:$0xff]  ;;  %v1340_v30 = vpack.c.bf16 %v93_v24, %v92_v23  ;;  %v165_v31 = vld [vmem:[%s2178_s0 + $0x168] sm:$0xff]  ;;  %v94_v33 = vld [vmem:[%s2177_s1 + $0x260] sm:$0xff] }
  0x28   :  { %501 = vmatprep.mubr.f32.mxu1 %v130_v48  ;;  %1323 = vmatprep.subr.bf16.mxu0 %v1322_v45  ;;  %v95_v34 = vld [vmem:[%s2177_s1 + $0x268] sm:$0xff]  ;;  %v112_v35 = vld [vmem:[%s2177_s1 + $0x2f0] sm:$0xff]  ;;  %v113_v36 = vld [vmem:[%s2177_s1 + $0x2f8] sm:$0xff] }
  0x29   :  { %357 = vmatmul.mubr.f32.gmra.mrb[2].mxu0 %v127_v51  ;;  %1359 = vmatprep.subr.bf16.mxu1 %v1322_v45  ;;  %v162_v37 = vld [vmem:[%s2178_s0 + $0x150] sm:$0xff]  ;;  %v164_v38 = vld [vmem:[%s2178_s0 + $0x160] sm:$0xff]  ;;  %v1344_v40 = vpack.c.bf16 %v95_v34, %v94_v33  ;;  %v1346_v42 = vpack.c.bf16 %v113_v36, %v112_v35  ;;  %v97_v44 = vld [vmem:[%s2177_s1 + $0x278] sm:$0xff] }
  0x2a   :  { %502 = vmatmul.mubr.f32.gmra.mrb[2].mxu1 %v129_v52  ;;  %361 = vmatprep.mubr.f32.mxu0 %v135_v53  ;;  %v170_v39 = vld [vmem:[%s2178_s0 + $0x190] sm:$0xff]  ;;  %v172_v41 = vld [vmem:[%s2178_s0 + $0x1a0] sm:$0xff]  ;;  %v169_v45 = vld [vmem:[%s2178_s0 + $0x188] sm:$0xff] }
  0x2b   :  { %506 = vmatprep.mubr.f32.mxu1 %v137_v55  ;;  %1325 = vmatpush3.bf16.msra.mxu0 %v1324_v54  ;;  %v96_v43 = vld [vmem:[%s2177_s1 + $0x270] sm:$0xff]  ;;  %v114_v46 = vld [vmem:[%s2177_s1 + $0x300] sm:$0xff]  ;;  %v115_v47 = vld [vmem:[%s2177_s1 + $0x308] sm:$0xff] }
  0x2c   :  { %1367 = vmatpush3.bf16.msra.mxu1 %v1324_v54  ;;  %1327 = vmatprep.subr.bf16.mxu0 %v1326_v56  ;;  %v171_v48 = vld [vmem:[%s2178_s0 + $0x198] sm:$0xff]  ;;  %v177_v49 = vld [vmem:[%s2178_s0 + $0x1c8] sm:$0xff]  ;;  %v1348_v50 = vpack.c.bf16 %v97_v44, %v96_v43  ;;  %v1797_v52 = vpack.c.bf16 %v115_v47, %v114_v46  ;;  %v176_v53 = vld [vmem:[%s2178_s0 + $0x1c0] sm:$0xff] }
  0x2d   :  { %362 = vmatmul.mubr.f32.gmra.mrb[4].mxu0 %v134_v61  ;;  %1360 = vmatprep.subr.bf16.mxu1 %v1326_v56  ;;  %v179_v51 = vld [vmem:[%s2178_s0 + $0x1d8] sm:$0xff]  ;;  %v178_v54 = vld [vmem:[%s2178_s0 + $0x1d0] sm:$0xff]  ;;  %v184_v55 = vld [vmem:[%s2178_s0 + $0x200] sm:$0xff] }
  0x2e   :  { %507 = vmatmul.mubr.f32.gmra.mrb[4].mxu1 %v136_v62  ;;  %366 = vmatprep.mubr.f32.mxu0 %v142_v63  ;;  %v186_v56 = vld [vmem:[%s2178_s0 + $0x210] sm:$0xff]  ;;  %v183_v57 = vld [vmem:[%s2178_s0 + $0x1f8] sm:$0xff]  ;;  %v185_v58 = vld [vmem:[%s2178_s0 + $0x208] sm:$0xff] }
  0x2f   :  { %511 = vmatprep.mubr.f32.mxu1 %v144_v1  ;;  %1329 = vmatpush3.bf16.msra.mxu0 %v1328_v0  ;;  %v191_v59 = vld [vmem:[%s2178_s0 + $0x238] sm:$0xff]  ;;  %v193_v60 = vld [vmem:[%s2178_s0 + $0x248] sm:$0xff]  ;;  %v190_v61 = vld [vmem:[%s2178_s0 + $0x230] sm:$0xff] }
  0x30   :  { %1368 = vmatpush3.bf16.msra.mxu1 %v1328_v0  ;;  %1331 = vmatprep.subr.bf16.mxu0 %v1330_v2  ;;  %v192_v62 = vld [vmem:[%s2178_s0 + $0x240] sm:$0xff]  ;;  %v198_v63 = vld [vmem:[%s2178_s0 + $0x270] sm:$0xff]  ;;  %v197_v1 = vld [vmem:[%s2178_s0 + $0x268] sm:$0xff] }
  0x31   :  { %367 = vmatmul.mubr.f32.gmra.mrb[6].mxu0 %v141_v7  ;;  %1361 = vmatprep.subr.bf16.mxu1 %v1330_v2  ;;  %v200_v0 = vld [vmem:[%s2178_s0 + $0x280] sm:$0xff]  ;;  %v199_v2 = vld [vmem:[%s2178_s0 + $0x278] sm:$0xff]  ;;  %v205_v3 = vld [vmem:[%s2178_s0 + $0x2a8] sm:$0xff] }
  0x32   :  { %512 = vmatmul.mubr.f32.gmra.mrb[6].mxu1 %v143_v8  ;;  %371 = vmatprep.mubr.f32.mxu0 %v149_v9  ;;  %v207_v4 = vld [vmem:[%s2178_s0 + $0x2b8] sm:$0xff]  ;;  %v204_v5 = vld [vmem:[%s2178_s0 + $0x2a0] sm:$0xff]  ;;  %v206_v6 = vld [vmem:[%s2178_s0 + $0x2b0] sm:$0xff] }
  0x33   :  { %516 = vmatprep.mubr.f32.mxu1 %v151_v11  ;;  %1333 = vmatpush3.bf16.msra.mxu0 %v1332_v10  ;;  %v212_v7 = vld [vmem:[%s2178_s0 + $0x2e0] sm:$0xff]  ;;  %v214_v8 = vld [vmem:[%s2178_s0 + $0x2f0] sm:$0xff]  ;;  %v211_v9 = vld [vmem:[%s2178_s0 + $0x2d8] sm:$0xff] }
  0x34   :  { %1369 = vmatpush3.bf16.msra.mxu1 %v1332_v10  ;;  %1335 = vmatprep.subr.bf16.mxu0 %v1334_v12  ;;  %v213_v10 = vld [vmem:[%s2178_s0 + $0x2e8] sm:$0xff]  ;;  %v219_v11 = vld [vmem:[%s2178_s0 + $0x318] sm:$0xff]  ;;  %v218_v13 = vld [vmem:[%s2178_s0 + $0x310] sm:$0xff] }
  0x35   :  { %372 = vmatmul.mubr.f32.gmra.mrb[8].mxu0 %v148_v17  ;;  %1362 = vmatprep.subr.bf16.mxu1 %v1334_v12  ;;  %v221_v12 = vld [vmem:[%s2178_s0 + $0x328] sm:$0xff]  ;;  %v220_v14 = vld [vmem:[%s2178_s0 + $0x320] sm:$0xff]  ;;  %v226_v15 = vld [vmem:[%s2178_s0 + $0x350] sm:$0xff] }
  0x36   :  { %517 = vmatmul.mubr.f32.gmra.mrb[8].mxu1 %v150_v18  ;;  %376 = vmatprep.mubr.f32.mxu0 %v156_v19  ;;  %v228_v16 = vld [vmem:[%s2178_s0 + $0x360] sm:$0xff]  ;;  %v225_v17 = vld [vmem:[%s2178_s0 + $0x348] sm:$0xff]  ;;  %v227_v18 = vld [vmem:[%s2178_s0 + $0x358] sm:$0xff] }
  0x37   :  { %521 = vmatprep.mubr.f32.mxu1 %v158_v21  ;;  %1337 = vmatpush3.bf16.msra.mxu0 %v1336_v20  ;;  %v125_v19 = vld [vmem:[%s2178_s0 + $0x28] sm:$0xff]  ;;  %v116_v21 = vld [vmem:[%s2177_s1 + $0x310] sm:$0xff]  ;;  %v124_v23 = vld [vmem:[%s2178_s0 + $0x20] sm:$0xff] }
  0x38   :  { %1370 = vmatpush3.bf16.msra.mxu1 %v1336_v20  ;;  %1339 = vmatprep.subr.bf16.mxu0 %v1338_v22  ;;  %v209_v20 = vld [vmem:[%s2178_s0 + $0x2c8] sm:$0xff]  ;;  %v208_v24 = vld [vmem:[%s2178_s0 + $0x2c0] sm:$0xff]  ;;  %v222_v33 = vld [vmem:[%s2178_s0 + $0x330] sm:$0xff] }
  0x39   :  { %377 = vmatmul.mubr.f32.gmra.mrb[10].mxu0 %v155_v27  ;;  %1363 = vmatprep.subr.bf16.mxu1 %v1338_v22  ;;  %v117_v22 = vld [vmem:[%s2177_s1 + $0x318] sm:$0xff]  ;;  %v132_v25 = vld [vmem:[%s2178_s0 + $0x60] sm:$0xff]  ;;  %v146_v34 = vld [vmem:[%s2178_s0 + $0xd0] sm:$0xff] }
  0x3a   :  { %522 = vmatmul.mubr.f32.gmra.mrb[10].mxu1 %v157_v28  ;;  %381 = vmatprep.mubr.f32.mxu0 %v163_v29  ;;  %v216_v26 = vld [vmem:[%s2178_s0 + $0x300] sm:$0xff]  ;;  %v1354_v27 = vpack.c.bf16 %v117_v22, %v116_v21  ;;  %v131_v28 = vld [vmem:[%s2178_s0 + $0x58] sm:$0xff]  ;;  %v230_v35 = vld [vmem:[%s2178_s0 + $0x370] sm:$0xff] }
  0x3b   :  { %526 = vmatprep.mubr.f32.mxu1 %v165_v31  ;;  %1341 = vmatpush3.bf16.msra.mxu0 %v1340_v30  ;;  %v215_v29 = vld [vmem:[%s2178_s0 + $0x2f8] sm:$0xff]  ;;  %v145_v36 = vld [vmem:[%s2178_s0 + $0xc8] sm:$0xff]  ;;  %v140_v43 = vld [vmem:[%s2178_s0 + $0xa0] sm:$0xff] }
  0x3c   :  { %1371 = vmatpush3.bf16.msra.mxu1 %v1340_v30  ;;  %1343 = vmatprep.subr.bf16.mxu0 %v1342_v32  ;;  %v139_v30 = vld [vmem:[%s2178_s0 + $0x98] sm:$0xff]  ;;  %v154_v47 = vld [vmem:[%s2178_s0 + $0x110] sm:$0xff] }
  0x3d   :  { %382 = vmatmul.mubr.f32.gmra.mrb[12].mxu0 %v162_v37  ;;  %1364 = vmatprep.subr.bf16.mxu1 %v1342_v32  ;;  %v223_v31 = vld [vmem:[%s2178_s0 + $0x338] sm:$0xff]  ;;  %v138_v32 = vld [vmem:[%s2178_s0 + $0x90] sm:$0xff]  ;;  %v229_v37 = vld [vmem:[%s2178_s0 + $0x368] sm:$0xff] }
  0x3e   :  { %527 = vmatmul.mubr.f32.gmra.mrb[12].mxu1 %v164_v38  ;;  %386 = vmatprep.mubr.f32.mxu0 %v170_v39  ;;  %v153_v38 = vld [vmem:[%s2178_s0 + $0x108] sm:$0xff]  ;;  %v126_v39 = vld [vmem:[%s2178_s0 + $0x30] sm:$0xff]  ;;  %v159_v44 = vld [vmem:[%s2178_s0 + $0x138] sm:$0xff] }
  0x3f   :  { %531 = vmatprep.mubr.f32.mxu1 %v172_v41  ;;  %1345 = vmatpush3.bf16.msra.mxu0 %v1344_v40  ;;  %v133_v41 = vld [vmem:[%s2178_s0 + $0x68] sm:$0xff]  ;;  %v167_v46 = vld [vmem:[%s2178_s0 + $0x178] sm:$0xff] }
  0x40   :  { %1372 = vmatpush3.bf16.msra.mxu1 %v1344_v40  ;;  %1347 = vmatprep.subr.bf16.mxu0 %v1346_v42  ;;  %v152_v40 = vld [vmem:[%s2178_s0 + $0x100] sm:$0xff] }
  0x41   :  { %387 = vmatmul.mubr.f32.gmra.mrb[14].mxu0 %v169_v45  ;;  %1365 = vmatprep.subr.bf16.mxu1 %v1346_v42  ;;  %v160_v42 = vld [vmem:[%s2178_s0 + $0x140] sm:$0xff]  ;;  %v147_v45 = vld [vmem:[%s2178_s0 + $0xd8] sm:$0xff] }
  0x42   :  { %532 = vmatmul.mubr.f32.gmra.mrb[14].mxu1 %v171_v48  ;;  %391 = vmatprep.mubr.f32.mxu0 %v177_v49  ;;  %v166_v48 = vld [vmem:[%s2178_s0 + $0x170] sm:$0xff]  ;;  %v161_v49 = vld [vmem:[%s2178_s0 + $0x148] sm:$0xff] }
  0x43   :  { %536 = vmatprep.mubr.f32.mxu1 %v179_v51  ;;  %1349 = vmatpush3.bf16.msra.mxu0 %v1348_v50  ;;  %v168_v51 = vld [vmem:[%s2178_s0 + $0x180] sm:$0xff] }
  0x44   :  { %1373 = vmatpush3.bf16.msra.mxu1 %v1348_v50  ;;  %v174_v50 = vld [vmem:[%s2178_s0 + $0x1b0] sm:$0xff] }
  0x45   :  { %392 = vmatmul.mubr.f32.gmra.mrb[16].mxu0 %v176_v53  ;;  %1351 = vmatprep.subr.bf16.mxu1 %v1797_v52  ;;  %v175_v53 = vld [vmem:[%s2178_s0 + $0x1b8] sm:$0xff] }
  0x46   :  { %537 = vmatmul.mubr.f32.gmra.mrb[16].mxu1 %v178_v54  ;;  %396 = vmatprep.mubr.f32.mxu0 %v184_v55  ;;  %v181_v54 = vld [vmem:[%s2178_s0 + $0x1e8] sm:$0xff]  ;;  %v182_v55 = vld [vmem:[%s2178_s0 + $0x1f0] sm:$0xff] }
  0x47   :  { %541 = vmatprep.mubr.f32.mxu1 %v186_v56  ;;  %v180_v56 = vld [vmem:[%s2178_s0 + $0x1e0] sm:$0xff] }
  0x49   :  { %397 = vmatmul.mubr.f32.gmra.mrb[18].mxu0 %v183_v57  ;;  %v189_v57 = vld [vmem:[%s2178_s0 + $0x228] sm:$0xff] }
  0x4a   :  { %542 = vmatmul.mubr.f32.gmra.mrb[18].mxu1 %v185_v58  ;;  %401 = vmatprep.mubr.f32.mxu0 %v191_v59  ;;  %v188_v58 = vld [vmem:[%s2178_s0 + $0x220] sm:$0xff] }
  0x4b   :  { %546 = vmatprep.mubr.f32.mxu1 %v193_v60  ;;  %v196_v59 = vld [vmem:[%s2178_s0 + $0x260] sm:$0xff]  ;;  %v187_v60 = vld [vmem:[%s2178_s0 + $0x218] sm:$0xff] }
  0x4d   :  { %402 = vmatmul.mubr.f32.gmra.mrb[20].mxu0 %v190_v61  ;;  %v203_v61 = vld [vmem:[%s2178_s0 + $0x298] sm:$0xff] }
  0x4e   :  { %547 = vmatmul.mubr.f32.gmra.mrb[20].mxu1 %v192_v62  ;;  %406 = vmatprep.mubr.f32.mxu0 %v198_v63  ;;  %v195_v62 = vld [vmem:[%s2178_s0 + $0x258] sm:$0xff]  ;;  %v210_v63 = vld [vmem:[%s2178_s0 + $0x2d0] sm:$0xff] }
  0x4f   :  { %551 = vmatprep.mubr.f32.mxu1 %v200_v0  ;;  %v194_v0 = vld [vmem:[%s2178_s0 + $0x250] sm:$0xff] }
  0x51   :  { %407 = vmatmul.mubr.f32.gmra.mrb[22].mxu0 %v197_v1  ;;  %v217_v1 = vld [vmem:[%s2178_s0 + $0x308] sm:$0xff] }
  0x52   :  { %552 = vmatmul.mubr.f32.gmra.mrb[22].mxu1 %v199_v2  ;;  %411 = vmatprep.mubr.f32.mxu0 %v205_v3  ;;  %v202_v2 = vld [vmem:[%s2178_s0 + $0x290] sm:$0xff]  ;;  %v224_v3 = vld [vmem:[%s2178_s0 + $0x340] sm:$0xff] }
  0x53   :  { %556 = vmatprep.mubr.f32.mxu1 %v207_v4  ;;  %v201_v4 = vld [vmem:[%s2178_s0 + $0x288] sm:$0xff] }
  0x55   :  { %412 = vmatmul.mubr.f32.gmra.mrb[24].mxu0 %v204_v5  ;;  %v231_v5 = vld [vmem:[%s2178_s0 + $0x378] sm:$0xff] }
  0x56   :  { %557 = vmatmul.mubr.f32.gmra.mrb[24].mxu1 %v206_v6  ;;  %416 = vmatprep.mubr.f32.mxu0 %v212_v7 }
  0x57   :  { %561 = vmatprep.mubr.f32.mxu1 %v214_v8  ;;  %v2060_v8 = vld [vmem:[%s2179_s2] ss:$0 sm:$0xff] }
  0x59   :  { %417 = vmatmul.mubr.f32.gmra.mrb[26].mxu0 %v211_v9 }
  0x5a   :  { %562 = vmatmul.mubr.f32.gmra.mrb[26].mxu1 %v213_v10  ;;  %421 = vmatprep.mubr.f32.mxu0 %v219_v11 }
  0x5b   :  { %566 = vmatprep.mubr.f32.mxu1 %v221_v12 }
  0x5d   :  { %422 = vmatmul.mubr.f32.gmra.mrb[28].mxu0 %v218_v13 }
  0x5e   :  { %567 = vmatmul.mubr.f32.gmra.mrb[28].mxu1 %v220_v14  ;;  %426 = vmatprep.mubr.f32.mxu0 %v226_v15 }
  0x5f   :  { %571 = vmatprep.mubr.f32.mxu1 %v228_v16 }
  0x61   :  { %427 = vmatmul.mubr.f32.gmra.mrb[30].mxu0 %v225_v17 }
  0x62   :  { %572 = vmatmul.mubr.f32.gmra.mrb[30].mxu1 %v227_v18  ;;  %641 = vmatprep.mubr.f32.mxu0 %v125_v19 }
  0x63   :  { %701 = vmatprep.mubr.f32.mxu1 %v209_v20 }
  0x65   :  { %642 = vmatmul.mubr.f32.vlgmr.msra.gmra.mrb[32].mxu0 %v124_v23 }
  0x66   :  { %702 = vmatmul.mubr.f32.vlgmr.msra.gmra.mrb[32].mxu1 %v208_v24  ;;  %646 = vmatprep.mubr.f32.mxu0 %v132_v25 }
  0x67   :  { %1353 = vmatpush3.bf16.msra.mxu1 %v1797_v52  ;;  %706 = vmatprep.mubr.f32.mxu1 %v216_v26  ;;  %v173_v52 = vld [vmem:[%s2178_s0 + $0x1a8] sm:$0xff] }
  0x68   :  { %1355 = vmatprep.subr.bf16.mxu1 %v1354_v27 }
  0x69   :  { %647 = vmatmul.mubr.f32.gmra.mrb[34].mxu0 %v131_v28 }
  0x6a   :  { %707 = vmatmul.mubr.f32.gmra.mrb[34].mxu1 %v215_v29  ;;  %651 = vmatprep.mubr.f32.mxu0 %v139_v30 }
  0x6b   :  { %711 = vmatprep.mubr.f32.mxu1 %v223_v31  ;;  %1357 = vmatpush3.bf16.msra.mxu1 %v1354_v27 }
  0x6d   :  { %652 = vmatmul.mubr.f32.gmra.mrb[36].mxu0 %v138_v32 }
  0x6e   :  { %712 = vmatmul.mubr.f32.gmra.mrb[36].mxu1 %v222_v33  ;;  %656 = vmatprep.mubr.f32.mxu0 %v146_v34 }
  0x6f   :  { %716 = vmatprep.mubr.f32.mxu1 %v230_v35 }
  0x71   :  { %657 = vmatmul.mubr.f32.gmra.mrb[38].mxu0 %v145_v36 }
  0x72   :  { %717 = vmatmul.mubr.f32.gmra.mrb[38].mxu1 %v229_v37  ;;  %661 = vmatprep.mubr.f32.mxu0 %v153_v38 }
  0x73   :  { %1230 = vmatprep.mubr.msk.f32.mxu1 %vm238_vm0, %v126_v39 }
  0x75   :  { %662 = vmatmul.mubr.f32.gmra.mrb[40].mxu0 %v152_v40 }
  0x76   :  { %1231 = vmatmul.mubr.msk.f32.vlgmr.msra.gmra.mrb[40].mxu1 %vm238_vm0, %v133_v41  ;;  %666 = vmatprep.mubr.f32.mxu0 %v160_v42 }
  0x77   :  { %1233 = vmatprep.mubr.msk.f32.mxu1 %vm238_vm0, %v140_v43 }
  0x79   :  { %667 = vmatmul.mubr.f32.gmra.mrb[42].mxu0 %v159_v44 }
  0x7a   :  { %1234 = vmatmul.mubr.msk.f32.gmra.mrb[42].mxu1 %vm238_vm0, %v147_v45  ;;  %671 = vmatprep.mubr.f32.mxu0 %v167_v46 }
  0x7b   :  { %1236 = vmatprep.mubr.msk.f32.mxu1 %vm238_vm0, %v154_v47 }
  0x7d   :  { %672 = vmatmul.mubr.f32.gmra.mrb[44].mxu0 %v166_v48 }
  0x7e   :  { %1237 = vmatmul.mubr.msk.f32.gmra.mrb[44].mxu1 %vm238_vm0, %v161_v49  ;;  %676 = vmatprep.mubr.f32.mxu0 %v174_v50 }
  0x7f   :  { %1239 = vmatprep.mubr.msk.f32.mxu1 %vm238_vm0, %v168_v51 }
  0x81   :  { %677 = vmatmul.mubr.f32.gmra.mrb[46].mxu0 %v173_v52 }
  0x82   :  { %1240 = vmatmul.mubr.msk.f32.gmra.mrb[46].mxu1 %vm238_vm0, %v175_v53  ;;  %681 = vmatprep.mubr.f32.mxu0 %v181_v54 }
  0x83   :  { %1242 = vmatprep.mubr.msk.f32.mxu1 %vm238_vm0, %v182_v55 }
  0x85   :  { %682 = vmatmul.mubr.f32.gmra.mrb[48].mxu0 %v180_v56 }
  0x86   :  { %1243 = vmatmul.mubr.msk.f32.gmra.mrb[48].mxu1 %vm238_vm0, %v189_v57  ;;  %686 = vmatprep.mubr.f32.mxu0 %v188_v58 }
  0x87   :  { %1245 = vmatprep.mubr.msk.f32.mxu1 %vm238_vm0, %v196_v59 }
  0x89   :  { %687 = vmatmul.mubr.f32.gmra.mrb[50].mxu0 %v187_v60 }
  0x8a   :  { %1246 = vmatmul.mubr.msk.f32.gmra.mrb[50].mxu1 %vm238_vm0, %v203_v61  ;;  %691 = vmatprep.mubr.f32.mxu0 %v195_v62 }
  0x8b   :  { %1248 = vmatprep.mubr.msk.f32.mxu1 %vm238_vm0, %v210_v63 }
  0x8d   :  { %692 = vmatmul.mubr.f32.gmra.mrb[52].mxu0 %v194_v0 }
  0x8e   :  { %1249 = vmatmul.mubr.msk.f32.gmra.mrb[52].mxu1 %vm238_vm0, %v217_v1  ;;  %696 = vmatprep.mubr.f32.mxu0 %v202_v2 }
  0x8f   :  { %1251 = vmatprep.mubr.msk.f32.mxu1 %vm238_vm0, %v224_v3 }
  0x91   :  { %697 = vmatmul.mubr.f32.gmra.mrb[54].mxu0 %v201_v4 }
  0x92   :  { %1252 = vmatmul.mubr.msk.f32.gmra.mrb[54].mxu1 %vm238_vm0, %v231_v5 }
  0xf8   :  { %v994_v6 = vpop.f32.mrb[0].mxu0 }
  0xf9   :  { %v1074_v7 = vpop.f32.mrb[0].mxu1  ;;  %v995_v9 = vpop.f32.mrb[1].mxu0 }
  0xfa   :  { %v996_v10 = vadd.f32 %v995_v9, %v994_v6  ;;  %v1075_v11 = vpop.f32.mrb[1].mxu1 }
  0xfb   :  { %v1076_v12 = vadd.f32 %v1075_v11, %v1074_v7 }
  0xfc   :  { %v354_v13 = vadd.f32 %v996_v10, %v2060_v8  ;;  %v997_v14 = vpop.f32.mrb[2].mxu0 }
  0xfd   :  { %v1077_v15 = vpop.f32.mrb[2].mxu1  ;;  %v998_v16 = vpop.f32.mrb[3].mxu0 }
  0xfe   :  { %v2063_v17 = vadd.f32 %v1076_v12, %v354_v13  ;;  %v999_v18 = vadd.f32 %v998_v16, %v997_v14  ;;  %v1078_v19 = vpop.f32.mrb[3].mxu1 }
  0xff   :  { %v1079_v20 = vadd.f32 %v1078_v19, %v1077_v15 }
 0x100   :  { %v359_v21 = vadd.f32 %v999_v18, %v2060_v8  ;;  %v1000_v22 = vpop.f32.mrb[4].mxu0 }
 0x101   :  { %v1080_v23 = vpop.f32.mrb[4].mxu1  ;;  %v1001_v24 = vpop.f32.mrb[5].mxu0 }
 0x102   :  { %v2066_v25 = vadd.f32 %v1079_v20, %v359_v21  ;;  %v1002_v26 = vadd.f32 %v1001_v24, %v1000_v22  ;;  %v1081_v27 = vpop.f32.mrb[5].mxu1 }
 0x103   :  { %v1082_v28 = vadd.f32 %v1081_v27, %v1080_v23 }
 0x104   :  { %v364_v29 = vadd.f32 %v1002_v26, %v2060_v8  ;;  %v1003_v30 = vpop.f32.mrb[6].mxu0 }
 0x105   :  { %v1083_v31 = vpop.f32.mrb[6].mxu1  ;;  %v1004_v32 = vpop.f32.mrb[7].mxu0 }
 0x106   :  { %v2069_v33 = vadd.f32 %v1082_v28, %v364_v29  ;;  %v1005_v34 = vadd.f32 %v1004_v32, %v1003_v30  ;;  %v1084_v35 = vpop.f32.mrb[7].mxu1 }
 0x107   :  { %v1085_v36 = vadd.f32 %v1084_v35, %v1083_v31 }
 0x108   :  { %v369_v37 = vadd.f32 %v1005_v34, %v2060_v8  ;;  %v1006_v38 = vpop.f32.mrb[8].mxu0 }
 0x109   :  { %v1086_v39 = vpop.f32.mrb[8].mxu1  ;;  %v1007_v40 = vpop.f32.mrb[9].mxu0 }
 0x10a   :  { %v2072_v41 = vadd.f32 %v1085_v36, %v369_v37  ;;  %v1008_v42 = vadd.f32 %v1007_v40, %v1006_v38  ;;  %v1087_v43 = vpop.f32.mrb[9].mxu1 }
 0x10b   :  { %v1088_v44 = vadd.f32 %v1087_v43, %v1086_v39 }
 0x10c   :  { %v374_v45 = vadd.f32 %v1008_v42, %v2060_v8  ;;  %v1009_v46 = vpop.f32.mrb[10].mxu0 }
 0x10d   :  { %v1089_v47 = vpop.f32.mrb[10].mxu1  ;;  %v1010_v48 = vpop.f32.mrb[11].mxu0 }
 0x10e   :  { %v2075_v49 = vadd.f32 %v1088_v44, %v374_v45  ;;  %v1011_v50 = vadd.f32 %v1010_v48, %v1009_v46  ;;  %v1090_v51 = vpop.f32.mrb[11].mxu1 }
 0x10f   :  { %v1091_v52 = vadd.f32 %v1090_v51, %v1089_v47 }
 0x110   :  { %v379_v53 = vadd.f32 %v1011_v50, %v2060_v8  ;;  %v1012_v54 = vpop.f32.mrb[12].mxu0 }
 0x111   :  { %v1092_v55 = vpop.f32.mrb[12].mxu1  ;;  %v1013_v56 = vpop.f32.mrb[13].mxu0 }
 0x112   :  { %v2078_v57 = vadd.f32 %v1091_v52, %v379_v53  ;;  %v1014_v58 = vadd.f32 %v1013_v56, %v1012_v54  ;;  %v1093_v59 = vpop.f32.mrb[13].mxu1 }
 0x113   :  { %v1094_v60 = vadd.f32 %v1093_v59, %v1092_v55 }
 0x114   :  { %v384_v61 = vadd.f32 %v1014_v58, %v2060_v8  ;;  %v1015_v62 = vpop.f32.mrb[14].mxu0 }
 0x115   :  { %v1095_v63 = vpop.f32.mrb[14].mxu1  ;;  %v1016_v0 = vpop.f32.mrb[15].mxu0 }
 0x116   :  { %v2081_v1 = vadd.f32 %v1094_v60, %v384_v61  ;;  %v1017_v2 = vadd.f32 %v1016_v0, %v1015_v62  ;;  %v1096_v3 = vpop.f32.mrb[15].mxu1 }
 0x117   :  { %v1097_v4 = vadd.f32 %v1096_v3, %v1095_v63 }
 0x118   :  { %v389_v5 = vadd.f32 %v1017_v2, %v2060_v8  ;;  %v1018_v6 = vpop.f32.mrb[16].mxu0 }
 0x119   :  { %v1098_v7 = vpop.f32.mrb[16].mxu1  ;;  %v1019_v9 = vpop.f32.mrb[17].mxu0 }
 0x11a   :  { %v2084_v10 = vadd.f32 %v1097_v4, %v389_v5  ;;  %v1020_v11 = vadd.f32 %v1019_v9, %v1018_v6  ;;  %v1099_v12 = vpop.f32.mrb[17].mxu1 }
 0x11b   :  { %v1100_v13 = vadd.f32 %v1099_v12, %v1098_v7 }
 0x11c   :  { %v394_v14 = vadd.f32 %v1020_v11, %v2060_v8  ;;  %v1021_v15 = vpop.f32.mrb[18].mxu0 }
 0x11d   :  { %v1101_v16 = vpop.f32.mrb[18].mxu1  ;;  %v1022_v18 = vpop.f32.mrb[19].mxu0 }
 0x11e   :  { %v2087_v19 = vadd.f32 %v1100_v13, %v394_v14  ;;  %v1023_v20 = vadd.f32 %v1022_v18, %v1021_v15  ;;  %v1102_v21 = vpop.f32.mrb[19].mxu1 }
 0x11f   :  { %v1103_v22 = vadd.f32 %v1102_v21, %v1101_v16 }
 0x120   :  { %v399_v23 = vadd.f32 %v1023_v20, %v2060_v8  ;;  %v1024_v24 = vpop.f32.mrb[20].mxu0 }
 0x121   :  { %v1104_v26 = vpop.f32.mrb[20].mxu1  ;;  %v1025_v27 = vpop.f32.mrb[21].mxu0 }
 0x122   :  { %v2090_v28 = vadd.f32 %v1103_v22, %v399_v23  ;;  %v1026_v29 = vadd.f32 %v1025_v27, %v1024_v24  ;;  %v1105_v30 = vpop.f32.mrb[21].mxu1 }
 0x123   :  { %v1106_v31 = vadd.f32 %v1105_v30, %v1104_v26 }
 0x124   :  { %v404_v32 = vadd.f32 %v1026_v29, %v2060_v8  ;;  %v1027_v34 = vpop.f32.mrb[22].mxu0 }
 0x125   :  { %v1107_v35 = vpop.f32.mrb[22].mxu1  ;;  %v1028_v36 = vpop.f32.mrb[23].mxu0 }
 0x126   :  { %v2093_v37 = vadd.f32 %v1106_v31, %v404_v32  ;;  %v1029_v38 = vadd.f32 %v1028_v36, %v1027_v34  ;;  %v1108_v39 = vpop.f32.mrb[23].mxu1 }
 0x127   :  { %v1109_v40 = vadd.f32 %v1108_v39, %v1107_v35 }
 0x128   :  { %v409_v42 = vadd.f32 %v1029_v38, %v2060_v8  ;;  %v1030_v43 = vpop.f32.mrb[24].mxu0 }
 0x129   :  { %v1110_v44 = vpop.f32.mrb[24].mxu1  ;;  %v1031_v45 = vpop.f32.mrb[25].mxu0 }
 0x12a   :  { %v2096_v46 = vadd.f32 %v1109_v40, %v409_v42  ;;  %v1032_v47 = vadd.f32 %v1031_v45, %v1030_v43  ;;  %v1111_v48 = vpop.f32.mrb[25].mxu1 }
 0x12b   :  { %v1112_v50 = vadd.f32 %v1111_v48, %v1110_v44 }
 0x12c   :  { %v414_v51 = vadd.f32 %v1032_v47, %v2060_v8  ;;  %v1033_v52 = vpop.f32.mrb[26].mxu0 }
 0x12d   :  { %v1113_v53 = vpop.f32.mrb[26].mxu1  ;;  %v1034_v54 = vpop.f32.mrb[27].mxu0 }
 0x12e   :  { %v559_v55 = vadd.f32 %v1112_v50, %v414_v51  ;;  %v1035_v56 = vadd.f32 %v1034_v54, %v1033_v52  ;;  %v1114_v58 = vpop.f32.mrb[27].mxu1 }
 0x12f   :  { %v1115_v59 = vadd.f32 %v1114_v58, %v1113_v53 }
 0x130   :  { %v419_v60 = vadd.f32 %v1035_v56, %v2060_v8  ;;  %v1036_v61 = vpop.f32.mrb[28].mxu0  ;;  %v2115_v56 = vstv %s2180_s3  ;;  %s1375_s3 = smov 64  }
 0x131   :  { %v1116_v62 = vpop.f32.mrb[28].mxu1  ;;  %v1037_v63 = vpop.f32.mrb[29].mxu0 }
 0x132   :  { %v564_v0 = vadd.f32 %v1115_v59, %v419_v60  ;;  %v1038_v2 = vadd.f32 %v1037_v63, %v1036_v61  ;;  %v1117_v3 = vpop.f32.mrb[29].mxu1 }
 0x133   :  { %v1118_v4 = vadd.f32 %v1117_v3, %v1116_v62 }
 0x134   :  { %v424_v5 = vadd.f32 %v1038_v2, %v2060_v8  ;;  %v1039_v6 = vpop.f32.mrb[30].mxu0 }
 0x135   :  { %v1119_v7 = vpop.f32.mrb[30].mxu1  ;;  %v1040_v9 = vpop.f32.mrb[31].mxu0 }
 0x136   :  { %v569_v11 = vadd.f32 %v1118_v4, %v424_v5  ;;  %v1041_v12 = vadd.f32 %v1040_v9, %v1039_v6  ;;  %v1120_v13 = vpop.f32.mrb[31].mxu1 }
 0x137   :  { %v1121_v14 = vadd.f32 %v1120_v13, %v1119_v7 }
 0x138   :  { %v429_v15 = vadd.f32 %v1041_v12, %v2060_v8  ;;  %v1154_v16 = vpop.f32.mrb[32].mxu0 }
 0x139   :  { %v1190_v18 = vpop.f32.mrb[32].mxu1  ;;  %v1155_v20 = vpop.f32.mrb[33].mxu0 }
 0x13a   :  { %v574_v21 = vadd.f32 %v1121_v14, %v429_v15  ;;  %v1156_v22 = vadd.f32 %v1155_v20, %v1154_v16  ;;  %v1191_v23 = vpop.f32.mrb[33].mxu1 }
 0x13b   :  { %v1192_v24 = vadd.f32 %v1191_v23, %v1190_v18 }
 0x13c   :  { %v1157_v26 = vpop.f32.mrb[34].mxu0  ;;  %v644_v27 = vadd.f32 %v1156_v22, %v2063_v17 }
 0x13d   :  { %v1193_v29 = vpop.f32.mrb[34].mxu1  ;;  %v1158_v30 = vpop.f32.mrb[35].mxu0  ;;  %v2103_v31 = vadd.f32 %v1192_v24, %v559_v55 }
 0x13e   :  { %v1159_v32 = vadd.f32 %v1158_v30, %v1157_v26  ;;  %v1194_v34 = vpop.f32.mrb[35].mxu1 }
 0x13f   :  { %v1195_v35 = vadd.f32 %v1194_v34, %v1193_v29 }
 0x140   :  { %v1160_v36 = vpop.f32.mrb[36].mxu0  ;;  %v649_v8 = vadd.f32 %v1159_v32, %v2066_v25 }
 0x141   :  { %v1196_v38 = vpop.f32.mrb[36].mxu1  ;;  %v1161_v39 = vpop.f32.mrb[37].mxu0  ;;  %v2106_v40 = vadd.f32 %v1195_v35, %v564_v0 }
 0x142   :  { %v1162_v42 = vadd.f32 %v1161_v39, %v1160_v36  ;;  %v1197_v43 = vpop.f32.mrb[37].mxu1 }
 0x143   :  { %v1198_v44 = vadd.f32 %v1197_v43, %v1196_v38 }
 0x144   :  { %v1163_v45 = vpop.f32.mrb[38].mxu0  ;;  %v654_v17 = vadd.f32 %v1162_v42, %v2069_v33 }
 0x145   :  { %v1199_v47 = vpop.f32.mrb[38].mxu1  ;;  %v1164_v48 = vpop.f32.mrb[39].mxu0  ;;  %v2109_v50 = vadd.f32 %v1198_v44, %v569_v11 }
 0x146   :  { %v1165_v51 = vadd.f32 %v1164_v48, %v1163_v45  ;;  %v1200_v52 = vpop.f32.mrb[39].mxu1 }
 0x147   :  { %v1201_v53 = vadd.f32 %v1200_v52, %v1199_v47 }
 0x148   :  { %v1166_v54 = vpop.f32.mrb[40].mxu0  ;;  %v659_v25 = vadd.f32 %v1165_v51, %v2072_v41 }
 0x149   :  { %v1232_v55 = vpop.f32.mrb[40].mxu1  ;;  %v1167_v58 = vpop.f32.mrb[41].mxu0  ;;  %v2117_v59 = vadd.f32 %v1201_v53, %v574_v21 }
 0x14a   :  { %v794_v33 = vadd.f32 %v1232_v55, %v649_v8  ;;  %v1168_v60 = vadd.f32 %v1167_v58, %v1166_v54  ;;  %v788_v61 = vpop.f32.mrb[41].mxu1 }
 0x14b   :  { %v789_v62 = vadd.f32 %v788_v61, %v644_v27 }
 0x14c   :  { %vm868_vm1 = vcmp.ge.f32.partialorder %v794_v33, 0.0  ;;  %v885_v63 = vmul.f32 %v2115_v56, %v794_v33  ;;  %v1169_v0 = vpop.f32.mrb[42].mxu0  ;;  %v664_v2 = vadd.f32 %v1168_v60, %v2075_v49 }
 0x14d   :  { %vm867_vm2 = vcmp.ge.f32.partialorder %v789_v62, 0.0  ;;  %v884_v41 = vmul.f32 %v2115_v56, %v789_v62  ;;  %v1235_v3 = vpop.f32.mrb[42].mxu1  ;;  %v1170_v4 = vpop.f32.mrb[43].mxu0 }
 0x14e   :  { %v2122_v5 = vsel %vm868_vm1, %v794_v33, %v885_v63  ;;  %v804_v6 = vadd.f32 %v1235_v3, %v659_v25  ;;  %v1171_v7 = vadd.f32 %v1170_v4, %v1169_v0  ;;  %v798_v9 = vpop.f32.mrb[43].mxu1  ;;  %vm936_vm1 = vcmask 523264  }
 0x14f   :  { %v2124_v11 = vsel %vm867_vm2, %v789_v62, %v884_v41  ;;  %v799_v12 = vadd.f32 %v798_v9, %v654_v17 }
 0x150   :  { %v1172_v13 = vpop.f32.mrb[44].mxu0  ;;  %v669_v14 = vadd.f32 %v1171_v7, %v2078_v57  ;;  %v887_v45 = vmul.f32 %v2115_v56, %v804_v6  ;;  %vm870_vm7 = vcmp.ge.f32.partialorder %v804_v6, 0.0 }
 0x151   :  { %v1238_v15 = vpop.f32.mrb[44].mxu1  ;;  %v1173_v16 = vpop.f32.mrb[45].mxu0  ;;  %v886_v34 = vmul.f32 %v2115_v56, %v799_v12  ;;  %vm869_vm5 = vcmp.ge.f32.partialorder %v799_v12, 0.0 }
 0x152   :  { %v814_v18 = vadd.f32 %v1238_v15, %v669_v14  ;;  %v1174_v49 = vadd.f32 %v1173_v16, %v1172_v13  ;;  %v808_v20 = vpop.f32.mrb[45].mxu1  ;;  %v903_v33 = vsel %vm870_vm7, %v804_v6, %v887_v45 }
 0x153   :  { %v809_v21 = vadd.f32 %v808_v20, %v664_v2  ;;  %v2142_v51 = vsel %vm869_vm5, %v799_v12, %v886_v34 }
 0x154   :  { %vm872_vm3 = vcmp.ge.f32.partialorder %v814_v18, 0.0  ;;  %v889_v22 = vmul.f32 %v2115_v56, %v814_v18  ;;  %v1175_v23 = vpop.f32.mrb[46].mxu0  ;;  %v674_v24 = vadd.f32 %v1174_v49, %v2081_v1 }
 0x155   :  { %vm871_vm4 = vcmp.ge.f32.partialorder %v809_v21, 0.0  ;;  %v888_v26 = vmul.f32 %v2115_v56, %v809_v21  ;;  %v1241_v27 = vpop.f32.mrb[46].mxu1  ;;  %v1176_v29 = vpop.f32.mrb[47].mxu0 }
 0x156   :  { %v2130_v30 = vsel %vm872_vm3, %v814_v18, %v889_v22  ;;  %v1177_v57 = vadd.f32 %v1176_v29, %v1175_v23  ;;  %v818_v32 = vpop.f32.mrb[47].mxu1 }
 0x157   :  { %v917_v35 = vmax.f32 %v2122_v5, %v2130_v30  ;;  %v2135_v36 = vsel %vm871_vm4, %v809_v21, %v888_v26  ;;  %v819_v8 = vadd.f32 %v818_v32, %v674_v24 }
 0x158   :  { %v916_v1 = vmax.f32 %v2124_v11, %v2135_v36  ;;  %v679_v38 = vadd.f32 %v1177_v57, %v2084_v10  ;;  %v1178_v39 = vpop.f32.mrb[48].mxu0 }
 0x159   :  { %vm873_vm6 = vcmp.ge.f32.partialorder %v819_v8, 0.0  ;;  %v890_v42 = vmul.f32 %v2115_v56, %v819_v8  ;;  %v1244_v43 = vpop.f32.mrb[48].mxu1  ;;  %v1179_v44 = vpop.f32.mrb[49].mxu0 }
 0x15a   :  { %v824_v17 = vadd.f32 %v1241_v27, %v679_v38  ;;  %v1180_v47 = vadd.f32 %v1179_v44, %v1178_v39  ;;  %v828_v48 = vpop.f32.mrb[49].mxu1 }
 0x15b   :  { %v2144_v52 = vsel %vm873_vm6, %v819_v8, %v890_v42 }
 0x15c   :  { %vm874_vm8 = vcmp.ge.f32.partialorder %v824_v17, 0.0  ;;  %v891_v53 = vmul.f32 %v2115_v56, %v824_v17  ;;  %v684_v10 = vadd.f32 %v1180_v47, %v2087_v19  ;;  %v1181_v54 = vpop.f32.mrb[50].mxu0  ;;  %v918_v25 = vmax.f32 %v2142_v51, %v2144_v52 }
 0x15d   :  { %v1247_v55 = vpop.f32.mrb[50].mxu1  ;;  %v1182_v58 = vpop.f32.mrb[51].mxu0 }
 0x15e   :  { %v829_v60 = vadd.f32 %v828_v48, %v684_v10  ;;  %v1183_v61 = vadd.f32 %v1182_v58, %v1181_v54  ;;  %v838_v62 = vpop.f32.mrb[51].mxu1  ;;  %v907_v63 = vsel %vm874_vm8, %v824_v17, %v891_v53 }
 0x15f   :  { %v919_v0 = vmax.f32 %v903_v33, %v907_v63 }
 0x160   :  { %vm875_vm9 = vcmp.ge.f32.partialorder %v829_v60, 0.0  ;;  %v892_v2 = vmul.f32 %v2115_v56, %v829_v60  ;;  %v689_v41 = vadd.f32 %v1183_v61, %v2090_v28  ;;  %v1184_v3 = vpop.f32.mrb[52].mxu0 }
 0x161   :  { %v1250_v4 = vpop.f32.mrb[52].mxu1  ;;  %v1185_v19 = vpop.f32.mrb[53].mxu0 }
 0x162   :  { %v908_v7 = vsel %vm875_vm9, %v829_v60, %v892_v2  ;;  %v834_v9 = vadd.f32 %v1244_v43, %v689_v41  ;;  %v854_v12 = vadd.f32 %v1250_v4, %v2106_v40  ;;  %v1186_v13 = vadd.f32 %v1185_v19, %v1184_v3  ;;  %v848_v14 = vpop.f32.mrb[53].mxu1 }
 0x163   :  { %v849_v6 = vadd.f32 %v848_v14, %v2103_v31 }
 0x164   :  { %vm876_vm10 = vcmp.ge.f32.partialorder %v834_v9, 0.0  ;;  %v893_v15 = vmul.f32 %v2115_v56, %v834_v9  ;;  %vm880_vm11 = vcmp.ge.f32.partialorder %v854_v12, 0.0  ;;  %v897_v16 = vmul.f32 %v2115_v56, %v854_v12  ;;  %v1187_v18 = vpop.f32.mrb[54].mxu0 }
 0x165   :  { %v694_v28 = vadd.f32 %v1186_v13, %v2093_v37  ;;  %vm879_vm12 = vcmp.ge.f32.partialorder %v849_v6, 0.0  ;;  %v896_v49 = vmul.f32 %v2115_v56, %v849_v6  ;;  %v1253_v20 = vpop.f32.mrb[54].mxu1  ;;  %v1188_v21 = vpop.f32.mrb[55].mxu0 }
 0x166   :  { %v909_v22 = vsel %vm876_vm10, %v834_v9, %v893_v15  ;;  %v913_v40 = vsel %vm880_vm11, %v854_v12, %v897_v16  ;;  %v864_v23 = vadd.f32 %v1253_v20, %v2117_v59  ;;  %v1189_v24 = vadd.f32 %v1188_v21, %v1187_v18  ;;  %v858_v31 = vpop.f32.mrb[55].mxu1 }
 0x167   :  { %v921_v26 = vmax.f32 %v909_v22, %v913_v40  ;;  %v839_v27 = vadd.f32 %v838_v62, %v694_v28  ;;  %v912_v29 = vsel %vm879_vm12, %v849_v6, %v896_v49  ;;  %v859_v57 = vadd.f32 %v858_v31, %v2109_v50 }
 0x168   :  { %v920_v32 = vmax.f32 %v908_v7, %v912_v29  ;;  %v699_v34 = vadd.f32 %v1189_v24, %v2096_v46  ;;  %v899_v38 = vmul.f32 %v2115_v56, %v864_v23  ;;  %vm882_vm15 = vcmp.ge.f32.partialorder %v864_v23, 0.0 }
 0x169   :  { %vm881_vm13 = vcmp.ge.f32.partialorder %v859_v57, 0.0  ;;  %v898_v37 = vmul.f32 %v2115_v56, %v859_v57  ;;  %vm877_vm14 = vcmp.ge.f32.partialorder %v839_v27, 0.0  ;;  %v894_v8 = vmul.f32 %v2115_v56, %v839_v27 }
 0x16a   :  { %v844_v39 = vadd.f32 %v1247_v55, %v699_v34  ;;  %v924_v59 = vmax.f32 %v916_v1, %v920_v32  ;;  %v925_v50 = vmax.f32 %v917_v35, %v921_v26  ;;  %v915_v45 = vsel %vm882_vm15, %v864_v23, %v899_v38 }
 0x16b   :  { %v910_v42 = vsel %vm877_vm14, %v839_v27, %v894_v8  ;;  %v914_v46 = vsel %vm881_vm13, %v859_v57, %v898_v37 }
 0x16c   :  { %vm878_vm0 = vcmp.ge.f32.partialorder %v844_v39, 0.0  ;;  %v895_v43 = vmul.f32 %v2115_v56, %v844_v39  ;;  %v922_v44 = vmax.f32 %v910_v42, %v914_v46 }
 0x16e   :  { %v926_v17 = vmax.f32 %v918_v25, %v922_v44  ;;  %v911_v47 = vsel %vm878_vm0, %v844_v39, %v895_v43 }
 0x16f   :  { %v923_v48 = vmax.f32 %v911_v47, %v915_v45 }
 0x170   :  { %930 = vrot.lane.b32.xlu0 %v926_v17, %s1375_s3 }
 0x171   :  { %v927_v51 = vmax.f32 %v919_v0, %v923_v48 }
 0x174   :  { %932 = vrot.lane.b32.xlu0 %v927_v51, %s1375_s3 }
 0x1e2   :  { %v931_v11 = vpop.permute.xlu0 %930 }
 0x1e3   :  { %v937_v36 = vsel %vm936_vm1, %v924_v59, %v931_v11 }
 0x1e4   :  { %939 = vst [vmem:[%s2181_s4] sm:$0xff] %v937_v36 }
 0x1e6   :  { %v933_v5 = vpop.permute.xlu0 %932 }
 0x1e7   :  { %v938_v30 = vsel %vm936_vm1, %v925_v50, %v933_v5 }
 0x1e8   :  { %940 = vst [vmem:[%s2181_s4 + $0x8] sm:$0xff] %v938_v30 }

// kernel: embedding_net_forward.5
= control target key start
LH: loop header
LB: loop body
LE: loop exit
PB: predicated region body
PF: predicated region fallthrough
CT: control target
= control target key end

     0   :  { %11 = vsyncpa [#allocation4], 0  ;;  %s2264_s0 = inlined_call_operand.vmem [shape: f32[2,1024], index: 0, kind: input, shape index: {}]   ;;  %s2265_s1 = inlined_call_operand.vmem [shape: f32[1024,256], index: 1, kind: input, shape index: {}]   ;;  %s2266_s2 = inlined_call_operand.vmem [shape: f32[1,256], index: 2, kind: input, shape index: {}]   ;;  %s2267_s3 = inlined_call_operand.vmem [shape: f32[256,256], index: 3, kind: input, shape index: {}]   ;;  %s2268_s4 = inlined_call_operand.vmem [shape: f32[1,256], index: 4, kind: input, shape index: {}]   ;;  %s2269_s5 = inlined_call_operand.vmem [shape: f32[2], index: 5, kind: input, shape index: {}]   ;;  %s2270_s6 = inlined_call_operand.hbm [shape: f32[2,256], index: 6, kind: output, shape index: {}]  }
   0x1   :  { %12 = vsyncpa [#allocation3], 0  ;;  %s29_s23 = sshll.u32 %s2269_s5, 4  ;;  %s30_s23 = int_to_ptr.vmem [resolvable:$true] %s29_s23 }
   0x2   :  { %s1160_s24 = scalar_lea.vmem %s30_s23, 16  ;;  %p1165_p1 = scmp.lt.s32.totalorder %s30_s23, %s30_s23 }
   0x3   :  { %p1161_p0 = scmp.ne.s32.totalorder %s30_s23, %s1160_s24  ;;  %p1166_p2 = scmp.lt.s32.totalorder %s1160_s24, %s1160_s24 }
   0x5   :  { %p1167_p3 = por %p1166_p2, %p1165_p1 }
   0x7   :  { %p1168_p4 = pnand %p1167_p3, %p1161_p0 }
   0x9   :  { %1171 = shalt.err (!%p1168_p4)
}
   0xa   :  { %s1198_s25 = smov [#allocation2]  }
   0xb   :  { %32 = dma.vmem_to_smem %s30_s23, 16, %s1198_s25, [#allocation4]  }
   0xc   :  { %1194 = dma.done.wait [#allocation4], 16  }
   0xd   :  { %1195 = vsyncadd [#allocation4], 4294967280 }
   0xe   :  { %36 = sfence }
   0xf   :  { %v104_v0 = vld [vmem:[%s2265_s1 + $0x208] sm:$0xff]  ;;  %v106_v1 = vld [vmem:[%s2265_s1 + $0x218] sm:$0xff]  ;;  %v103_v2 = vld [vmem:[%s2265_s1 + $0x200] sm:$0xff]  ;;  %v297_v26 = vlaneseq  ;;  %v1199_v27 = vmov 1983009808   ;;  %s637_s28 = sld [smem:[#allocation2]] }
  0x10   :  { %v891_v3 = vpack.c.bf16 %v106_v1, %v104_v0  ;;  %v105_v4 = vld [vmem:[%s2265_s1 + $0x210] sm:$0xff]  ;;  %v108_v5 = vld [vmem:[%s2265_s1 + $0x228] sm:$0xff]  ;;  %v110_v6 = vld [vmem:[%s2265_s1 + $0x238] sm:$0xff]  ;;  %v311_v28 = vunpack.c.l.s4 %v1199_v27  ;;  %s1200_s5 = smov [#allocation5]  }
  0x11   :  { %v893_v7 = vpack.c.bf16 %v105_v4, %v103_v2  ;;  %v895_v8 = vpack.c.bf16 %v110_v6, %v108_v5  ;;  %v107_v9 = vld [vmem:[%s2265_s1 + $0x220] sm:$0xff]  ;;  %v109_v10 = vld [vmem:[%s2265_s1 + $0x230] sm:$0xff]  ;;  %v112_v11 = vld [vmem:[%s2265_s1 + $0x248] sm:$0xff]  ;;  %v1305_v35 = vshrl.u32 %v297_v26, 7 }
  0x12   :  { %892 = vmatprep.subr.bf16.mxu0 %v891_v3  ;;  %v114_v12 = vld [vmem:[%s2265_s1 + $0x258] sm:$0xff]  ;;  %v897_v13 = vpack.c.bf16 %v109_v10, %v107_v9  ;;  %v111_v15 = vld [vmem:[%s2265_s1 + $0x240] sm:$0xff]  ;;  %v113_v16 = vld [vmem:[%s2265_s1 + $0x250] sm:$0xff]  ;;  %v312_v36 = vunpack.c.0.s8 %v311_v28 }
  0x13   :  { %894 = vmatpush1.bf16.msra.mxu0 %v893_v7  ;;  %v899_v14 = vpack.c.bf16 %v114_v12, %v112_v11  ;;  %v116_v17 = vld [vmem:[%s2265_s1 + $0x268] sm:$0xff]  ;;  %v118_v18 = vld [vmem:[%s2265_s1 + $0x278] sm:$0xff]  ;;  %v901_v19 = vpack.c.bf16 %v113_v16, %v111_v15  ;;  %v115_v21 = vld [vmem:[%s2265_s1 + $0x260] sm:$0xff] }
  0x14   :  { %896 = vmatprep.subr.bf16.mxu0 %v895_v8  ;;  %v903_v20 = vpack.c.bf16 %v118_v18, %v116_v17  ;;  %v117_v22 = vld [vmem:[%s2265_s1 + $0x270] sm:$0xff]  ;;  %v120_v23 = vld [vmem:[%s2265_s1 + $0x288] sm:$0xff]  ;;  %v122_v24 = vld [vmem:[%s2265_s1 + $0x298] sm:$0xff]  ;;  %v1320_v43 = vsub.s32 %v312_v36, %v1305_v35 }
  0x15   :  { %v905_v25 = vpack.c.bf16 %v117_v22, %v115_v21  ;;  %v907_v29 = vpack.c.bf16 %v122_v24, %v120_v23  ;;  %v119_v30 = vld [vmem:[%s2265_s1 + $0x280] sm:$0xff]  ;;  %v121_v31 = vld [vmem:[%s2265_s1 + $0x290] sm:$0xff]  ;;  %v124_v32 = vld [vmem:[%s2265_s1 + $0x2a8] sm:$0xff] }
  0x16   :  { %v126_v33 = vld [vmem:[%s2265_s1 + $0x2b8] sm:$0xff]  ;;  %v909_v34 = vpack.c.bf16 %v121_v31, %v119_v30  ;;  %v123_v38 = vld [vmem:[%s2265_s1 + $0x2a0] sm:$0xff]  ;;  %v125_v39 = vld [vmem:[%s2265_s1 + $0x2b0] sm:$0xff] }
  0x17   :  { %898 = vmatpush1.bf16.msra.mxu0 %v897_v13  ;;  %v911_v37 = vpack.c.bf16 %v126_v33, %v124_v32  ;;  %v128_v40 = vld [vmem:[%s2265_s1 + $0x2c8] sm:$0xff]  ;;  %v130_v41 = vld [vmem:[%s2265_s1 + $0x2d8] sm:$0xff]  ;;  %v913_v42 = vpack.c.bf16 %v125_v39, %v123_v38  ;;  %v127_v45 = vld [vmem:[%s2265_s1 + $0x2c0] sm:$0xff] }
  0x18   :  { %900 = vmatprep.subr.bf16.mxu0 %v899_v14  ;;  %v915_v44 = vpack.c.bf16 %v130_v41, %v128_v40  ;;  %v129_v46 = vld [vmem:[%s2265_s1 + $0x2d0] sm:$0xff]  ;;  %v1331_v47 = vld [vmem:[%s2264_s0] sm:$0xff]  ;;  %v132_v48 = vld [vmem:[%s2265_s1 + $0x2e8] sm:$0xff] }
  0x19   :  { %v134_v49 = vld [vmem:[%s2265_s1 + $0x2f8] sm:$0xff]  ;;  %v309_v50 = vcombine.high %v1331_v47, %v1331_v47  ;;  %v917_v51 = vpack.c.bf16 %v129_v46, %v127_v45  ;;  %v131_v54 = vld [vmem:[%s2265_s1 + $0x2e0] sm:$0xff]  ;;  %v133_v55 = vld [vmem:[%s2265_s1 + $0x2f0] sm:$0xff] }
  0x1a   :  { %v919_v53 = vpack.c.bf16 %v134_v49, %v132_v48  ;;  %v136_v56 = vld [vmem:[%s2265_s1 + $0x308] sm:$0xff]  ;;  %v138_v57 = vld [vmem:[%s2265_s1 + $0x318] sm:$0xff]  ;;  %v921_v59 = vpack.c.bf16 %v133_v55, %v131_v54  ;;  %v135_v61 = vld [vmem:[%s2265_s1 + $0x300] sm:$0xff] }
  0x1b   :  { %902 = vmatpush1.bf16.msra.mxu0 %v901_v19  ;;  %v1342_v52 = vrot.slane %v309_v50, %v1320_v43  ;;  %v923_v60 = vpack.c.bf16 %v138_v57, %v136_v56  ;;  %v137_v62 = vld [vmem:[%s2265_s1 + $0x310] sm:$0xff]  ;;  %v140_v63 = vld [vmem:[%s2265_s1 + $0x328] sm:$0xff]  ;;  %v142_v0 = vld [vmem:[%s2265_s1 + $0x338] sm:$0xff] }
  0x1c   :  { %904 = vmatprep.subr.bf16.mxu0 %v903_v20  ;;  %v925_v1 = vpack.c.bf16 %v137_v62, %v135_v61  ;;  %v927_v2 = vpack.c.bf16 %v142_v0, %v140_v63  ;;  %v139_v3 = vld [vmem:[%s2265_s1 + $0x320] sm:$0xff]  ;;  %v141_v4 = vld [vmem:[%s2265_s1 + $0x330] sm:$0xff]  ;;  %v144_v5 = vld [vmem:[%s2265_s1 + $0x348] sm:$0xff] }
  0x1d   :  { %v325_v58 = vcombine.high %v1342_v52, %v1342_v52  ;;  %v146_v6 = vld [vmem:[%s2265_s1 + $0x358] sm:$0xff]  ;;  %v929_v7 = vpack.c.bf16 %v141_v4, %v139_v3  ;;  %v143_v9 = vld [vmem:[%s2265_s1 + $0x340] sm:$0xff]  ;;  %v145_v10 = vld [vmem:[%s2265_s1 + $0x350] sm:$0xff] }
  0x1e   :  { %v931_v8 = vpack.c.bf16 %v146_v6, %v144_v5  ;;  %v148_v11 = vld [vmem:[%s2265_s1 + $0x368] sm:$0xff]  ;;  %v150_v12 = vld [vmem:[%s2265_s1 + $0x378] sm:$0xff]  ;;  %v933_v13 = vpack.c.bf16 %v145_v10, %v143_v9  ;;  %v147_v15 = vld [vmem:[%s2265_s1 + $0x360] sm:$0xff] }
  0x1f   :  { %906 = vmatpush1.bf16.msra.mxu0 %v905_v25  ;;  %486 = vmatprep.mubr.f32.mxu0 %v325_v58  ;;  %v935_v14 = vpack.c.bf16 %v150_v12, %v148_v11  ;;  %v149_v16 = vld [vmem:[%s2265_s1 + $0x370] sm:$0xff]  ;;  %v152_v17 = vld [vmem:[%s2265_s1 + $0x388] sm:$0xff]  ;;  %v154_v18 = vld [vmem:[%s2265_s1 + $0x398] sm:$0xff] }
  0x20   :  { %908 = vmatprep.subr.bf16.mxu0 %v907_v29  ;;  %v40_v19 = vld [vmem:[%s2265_s1 + $0x8] sm:$0xff]  ;;  %v42_v20 = vld [vmem:[%s2265_s1 + $0x18] sm:$0xff]  ;;  %v39_v22 = vld [vmem:[%s2265_s1] sm:$0xff]  ;;  %v937_v23 = vpack.c.bf16 %v149_v16, %v147_v15  ;;  %v939_v26 = vpack.c.bf16 %v154_v18, %v152_v17  ;;  %v1527_v16 = vrot.slane %v1331_v47, %v1320_v43 }
  0x21   :  { %v827_v21 = vpack.c.bf16 %v42_v20, %v40_v19  ;;  %v151_v24 = vld [vmem:[%s2265_s1 + $0x380] sm:$0xff]  ;;  %v41_v25 = vld [vmem:[%s2265_s1 + $0x10] sm:$0xff]  ;;  %v44_v29 = vld [vmem:[%s2265_s1 + $0x28] sm:$0xff] }
  0x22   :  { %v153_v27 = vld [vmem:[%s2265_s1 + $0x390] sm:$0xff]  ;;  %v829_v28 = vpack.c.bf16 %v41_v25, %v39_v22  ;;  %v46_v30 = vld [vmem:[%s2265_s1 + $0x38] sm:$0xff]  ;;  %v156_v31 = vld [vmem:[%s2265_s1 + $0x3a8] sm:$0xff]  ;;  %v324_v25 = vcombine.high %v1527_v16, %v1527_v16 }
  0x23   :  { %910 = vmatpush1.bf16.msra.mxu0 %v909_v34  ;;  %828 = vmatprep.subr.bf16.mxu1 %v827_v21  ;;  %v158_v32 = vld [vmem:[%s2265_s1 + $0x3b8] sm:$0xff]  ;;  %v831_v33 = vpack.c.bf16 %v46_v30, %v44_v29  ;;  %v43_v34 = vld [vmem:[%s2265_s1 + $0x20] sm:$0xff]  ;;  %v45_v36 = vld [vmem:[%s2265_s1 + $0x30] sm:$0xff] }
  0x24   :  { %912 = vmatprep.subr.bf16.mxu0 %v911_v37  ;;  %830 = vmatpush1.bf16.msra.mxu1 %v829_v28  ;;  %v941_v37 = vpack.c.bf16 %v153_v27, %v151_v24  ;;  %v155_v38 = vld [vmem:[%s2265_s1 + $0x3a0] sm:$0xff]  ;;  %v833_v39 = vpack.c.bf16 %v45_v36, %v43_v34  ;;  %v48_v40 = vld [vmem:[%s2265_s1 + $0x48] sm:$0xff]  ;;  %v50_v41 = vld [vmem:[%s2265_s1 + $0x58] sm:$0xff] }
  0x25   :  { %832 = vmatprep.subr.bf16.mxu1 %v831_v33  ;;  %v835_v45 = vpack.c.bf16 %v50_v41, %v48_v40  ;;  %v47_v46 = vld [vmem:[%s2265_s1 + $0x40] sm:$0xff]  ;;  %v49_v48 = vld [vmem:[%s2265_s1 + $0x50] sm:$0xff]  ;;  %v160_v49 = vld [vmem:[%s2265_s1 + $0x3c8] sm:$0xff]  ;;  %415 = vmatprep.mubr.f32.mxu1 %v324_v25 }
  0x26   :  { %v162_v50 = vld [vmem:[%s2265_s1 + $0x3d8] sm:$0xff]  ;;  %v159_v56 = vld [vmem:[%s2265_s1 + $0x3c0] sm:$0xff]  ;;  %v161_v61 = vld [vmem:[%s2265_s1 + $0x3d0] sm:$0xff] }
  0x27   :  { %914 = vmatpush1.bf16.msra.mxu0 %v913_v42  ;;  %v943_v42 = vpack.c.bf16 %v158_v32, %v156_v31  ;;  %v54_v54 = vld [vmem:[%s2265_s1 + $0x78] sm:$0xff]  ;;  %v51_v58 = vld [vmem:[%s2265_s1 + $0x60] sm:$0xff]  ;;  %v56_v62 = vld [vmem:[%s2265_s1 + $0x88] sm:$0xff]  ;;  %v949_v4 = vpack.c.bf16 %v161_v61, %v159_v56 }
  0x28   :  { %916 = vmatprep.subr.bf16.mxu0 %v915_v44  ;;  %v157_v44 = vld [vmem:[%s2265_s1 + $0x3b0] sm:$0xff]  ;;  %834 = vmatpush1.bf16.msra.mxu1 %v833_v39  ;;  %v58_v63 = vld [vmem:[%s2265_s1 + $0x98] sm:$0xff]  ;;  %v164_v0 = vld [vmem:[%s2265_s1 + $0x3e8] sm:$0xff] }
  0x29   :  { %v945_v55 = vpack.c.bf16 %v157_v44, %v155_v38  ;;  %836 = vmatprep.subr.bf16.mxu1 %v835_v45  ;;  %v165_v5 = vld [vmem:[%s2265_s1 + $0x3f0] sm:$0xff]  ;;  %v843_v6 = vpack.c.bf16 %v58_v63, %v56_v62  ;;  %v1511_v10 = vld [vmem:[%s2264_s0 + $0x8] sm:$0xff]  ;;  %v62_v12 = vld [vmem:[%s2265_s1 + $0xb8] sm:$0xff]  ;;  %s816_s0 = sshll.u32 %s1200_s5, 4  ;;  %s817_s0 = int_to_ptr.vmem [resolvable:$true] %s816_s0 }
  0x2a   :  { %v60_v11 = vld [vmem:[%s2265_s1 + $0xa8] sm:$0xff]  ;;  %v1531_v18 = vrot.slane %v1511_v10, %v1320_v43  ;;  %v59_v20 = vld [vmem:[%s2265_s1 + $0xa0] sm:$0xff]  ;;  %v61_v21 = vld [vmem:[%s2265_s1 + $0xb0] sm:$0xff]  ;;  %s1172_s30 = scalar_lea.vmem %s817_s0, 64  ;;  %p1177_p6 = scmp.lt.s32.totalorder %s817_s0, %s817_s0 }
  0x2b   :  { %918 = vmatpush1.bf16.msra.mxu0 %v917_v51  ;;  %v52_v51 = vld [vmem:[%s2265_s1 + $0x68] sm:$0xff]  ;;  %v847_v19 = vpack.c.bf16 %v62_v12, %v60_v11  ;;  %v167_v47 = vld [vmem:[%s2265_s1 + $0x400] sm:$0xff]  ;;  %v66_v28 = vld [vmem:[%s2265_s1 + $0xd8] sm:$0xff]  ;;  %v849_v29 = vpack.c.bf16 %v61_v21, %v59_v20  ;;  %p1173_p5 = scmp.ne.s32.totalorder %s817_s0, %s1172_s30  ;;  %p1178_p7 = scmp.lt.s32.totalorder %s1172_s30, %s1172_s30 }
  0x2c   :  { %920 = vmatprep.subr.bf16.mxu0 %v919_v53  ;;  %v837_v53 = vpack.c.bf16 %v49_v48, %v47_v46  ;;  %v839_v57 = vpack.c.bf16 %v54_v54, %v52_v51  ;;  %v172_v24 = vld [vmem:[%s2265_s1 + $0x428] sm:$0xff]  ;;  %v171_v31 = vld [vmem:[%s2265_s1 + $0x420] sm:$0xff]  ;;  %v341_v32 = vcombine.high %v1531_v18, %v1531_v18  ;;  %v65_v34 = vld [vmem:[%s2265_s1 + $0xd0] sm:$0xff] }
  0x2d   :  { %v64_v27 = vld [vmem:[%s2265_s1 + $0xc8] sm:$0xff]  ;;  %v63_v33 = vld [vmem:[%s2265_s1 + $0xc0] sm:$0xff]  ;;  %v70_v40 = vld [vmem:[%s2265_s1 + $0xf8] sm:$0xff]  ;;  %p1179_p8 = por %p1178_p7, %p1177_p6 }
  0x2e   :  { %838 = vmatpush1.bf16.msra.mxu1 %v837_v53  ;;  %v851_v38 = vpack.c.bf16 %v66_v28, %v64_v27  ;;  %v68_v39 = vld [vmem:[%s2265_s1 + $0xe8] sm:$0xff]  ;;  %v853_v44 = vpack.c.bf16 %v65_v34, %v63_v33  ;;  %v175_v46 = vld [vmem:[%s2265_s1 + $0x440] sm:$0xff]  ;;  %v177_v51 = vld [vmem:[%s2265_s1 + $0x450] sm:$0xff] }
  0x2f   :  { %922 = vmatpush1.bf16.msra.mxu0 %v921_v59  ;;  %v53_v59 = vld [vmem:[%s2265_s1 + $0x70] sm:$0xff]  ;;  %840 = vmatprep.subr.bf16.mxu1 %v839_v57  ;;  %v176_v41 = vld [vmem:[%s2265_s1 + $0x448] sm:$0xff]  ;;  %v855_v48 = vpack.c.bf16 %v70_v40, %v68_v39  ;;  %v74_v54 = vld [vmem:[%s2265_s1 + $0x118] sm:$0xff]  ;;  %p1180_p9 = pnand %p1179_p8, %p1173_p5 }
  0x30   :  { %924 = vmatprep.subr.bf16.mxu0 %v923_v60  ;;  %v947_v60 = vpack.c.bf16 %v162_v50, %v160_v49  ;;  %v841_v3 = vpack.c.bf16 %v53_v59, %v51_v58  ;;  %v67_v49 = vld [vmem:[%s2265_s1 + $0xe0] sm:$0xff]  ;;  %v69_v50 = vld [vmem:[%s2265_s1 + $0xf0] sm:$0xff]  ;;  %v72_v53 = vld [vmem:[%s2265_s1 + $0x108] sm:$0xff]  ;;  %v965_v58 = vpack.c.bf16 %v177_v51, %v175_v46 }
  0x31   :  { %v182_v56 = vld [vmem:[%s2265_s1 + $0x478] sm:$0xff]  ;;  %v857_v57 = vpack.c.bf16 %v69_v50, %v67_v49  ;;  %v179_v59 = vld [vmem:[%s2265_s1 + $0x460] sm:$0xff]  ;;  %v73_v62 = vld [vmem:[%s2265_s1 + $0x110] sm:$0xff] }
  0x32   :  { %842 = vmatpush1.bf16.msra.mxu1 %v841_v3  ;;  %v71_v61 = vld [vmem:[%s2265_s1 + $0x100] sm:$0xff]  ;;  %v184_v3 = vld [vmem:[%s2265_s1 + $0x488] sm:$0xff]  ;;  %v77_v11 = vld [vmem:[%s2265_s1 + $0x130] sm:$0xff] }
  0x33   :  { %926 = vmatpush1.bf16.msra.mxu0 %v925_v1  ;;  %v166_v1 = vld [vmem:[%s2265_s1 + $0x3f8] sm:$0xff]  ;;  %844 = vmatprep.subr.bf16.mxu1 %v843_v6  ;;  %v84_v27 = vld [vmem:[%s2265_s1 + $0x168] sm:$0xff]  ;;  %v191_v33 = vld [vmem:[%s2265_s1 + $0x4c0] sm:$0xff] }
  0x34   :  { %928 = vmatprep.subr.bf16.mxu0 %v927_v2  ;;  %v163_v2 = vld [vmem:[%s2265_s1 + $0x3e0] sm:$0xff]  ;;  %v951_v9 = vpack.c.bf16 %v166_v1, %v164_v0  ;;  %v181_v0 = vld [vmem:[%s2265_s1 + $0x470] sm:$0xff]  ;;  %v76_v1 = vld [vmem:[%s2265_s1 + $0x128] sm:$0xff] }
  0x35   :  { %v953_v17 = vpack.c.bf16 %v165_v5, %v163_v2  ;;  %v78_v2 = vld [vmem:[%s2265_s1 + $0x138] sm:$0xff]  ;;  %v861_v5 = vpack.c.bf16 %v73_v62, %v71_v61  ;;  %v969_v6 = vpack.c.bf16 %v181_v0, %v179_v59  ;;  %v193_v39 = vld [vmem:[%s2265_s1 + $0x4d0] sm:$0xff]  ;;  %v88_v40 = vld [vmem:[%s2265_s1 + $0x188] sm:$0xff] }
  0x36   :  { %v86_v28 = vld [vmem:[%s2265_s1 + $0x178] sm:$0xff]  ;;  %v981_v46 = vpack.c.bf16 %v193_v39, %v191_v33  ;;  %v87_v50 = vld [vmem:[%s2265_s1 + $0x180] sm:$0xff] }
  0x37   :  { %930 = vmatpush1.bf16.msra.mxu0 %v929_v7  ;;  %v55_v7 = vld [vmem:[%s2265_s1 + $0x80] sm:$0xff]  ;;  %v871_v34 = vpack.c.bf16 %v86_v28, %v84_v27  ;;  %v209_v27 = vld [vmem:[%s2265_s1 + $0x550] sm:$0xff]  ;;  %v644_v28 = vld [vmem:[%s2267_s3 + $0x8] sm:$0xff] }
  0x38   :  { %932 = vmatprep.subr.bf16.mxu0 %v931_v8  ;;  %v57_v8 = vld [vmem:[%s2265_s1 + $0x90] sm:$0xff]  ;;  %v91_v62 = vld [vmem:[%s2265_s1 + $0x1a0] sm:$0xff] }
  0x39   :  { %v845_v15 = vpack.c.bf16 %v57_v8, %v55_v7  ;;  %v183_v7 = vld [vmem:[%s2265_s1 + $0x480] sm:$0xff]  ;;  %v863_v8 = vpack.c.bf16 %v78_v2, %v76_v1  ;;  %v201_v1 = vld [vmem:[%s2265_s1 + $0x510] sm:$0xff]  ;;  %v96_v2 = vld [vmem:[%s2265_s1 + $0x1c8] sm:$0xff] }
  0x3b   :  { %934 = vmatpush1.bf16.msra.mxu0 %v933_v13  ;;  %v168_v13 = vld [vmem:[%s2265_s1 + $0x408] sm:$0xff]  ;;  %846 = vmatpush1.bf16.msra.mxu1 %v845_v15  ;;  %v82_v15 = vld [vmem:[%s2265_s1 + $0x158] sm:$0xff] }
  0x3c   :  { %936 = vmatprep.subr.bf16.mxu0 %v935_v14  ;;  %v170_v14 = vld [vmem:[%s2265_s1 + $0x418] sm:$0xff]  ;;  %848 = vmatprep.subr.bf16.mxu1 %v847_v19 }
  0x3d   :  { %v955_v22 = vpack.c.bf16 %v170_v14, %v168_v13  ;;  %v185_v13 = vld [vmem:[%s2265_s1 + $0x490] sm:$0xff]  ;;  %v80_v14 = vld [vmem:[%s2265_s1 + $0x148] sm:$0xff]  ;;  %v190_v19 = vld [vmem:[%s2265_s1 + $0x4b8] sm:$0xff] }
  0x3e   :  { %v973_v21 = vpack.c.bf16 %v185_v13, %v183_v7 }
  0x3f   :  { %938 = vmatpush1.bf16.msra.mxu0 %v937_v23  ;;  %v169_v23 = vld [vmem:[%s2265_s1 + $0x410] sm:$0xff]  ;;  %850 = vmatpush1.bf16.msra.mxu1 %v849_v29  ;;  %v192_v29 = vld [vmem:[%s2265_s1 + $0x4c8] sm:$0xff] }
  0x40   :  { %940 = vmatprep.subr.bf16.mxu0 %v939_v26  ;;  %v174_v26 = vld [vmem:[%s2265_s1 + $0x438] sm:$0xff]  ;;  %v957_v30 = vpack.c.bf16 %v169_v23, %v167_v47  ;;  %852 = vmatprep.subr.bf16.mxu1 %v851_v38  ;;  %v867_v47 = vpack.c.bf16 %v82_v15, %v80_v14  ;;  %v79_v23 = vld [vmem:[%s2265_s1 + $0x140] sm:$0xff]  ;;  %v205_v14 = vld [vmem:[%s2265_s1 + $0x530] sm:$0xff] }
  0x41   :  { %v959_v36 = vpack.c.bf16 %v174_v26, %v172_v24  ;;  %v81_v24 = vld [vmem:[%s2265_s1 + $0x150] sm:$0xff]  ;;  %v100_v15 = vld [vmem:[%s2265_s1 + $0x1e8] sm:$0xff] }
  0x42   :  { %v189_v26 = vld [vmem:[%s2265_s1 + $0x4b0] sm:$0xff] }
  0x43   :  { %942 = vmatpush1.bf16.msra.mxu0 %v941_v37  ;;  %v173_v37 = vld [vmem:[%s2265_s1 + $0x430] sm:$0xff]  ;;  %854 = vmatpush1.bf16.msra.mxu1 %v853_v44  ;;  %v198_v44 = vld [vmem:[%s2265_s1 + $0x4f8] sm:$0xff] }
  0x44   :  { %944 = vmatprep.subr.bf16.mxu0 %v943_v42  ;;  %v178_v42 = vld [vmem:[%s2265_s1 + $0x458] sm:$0xff]  ;;  %v961_v45 = vpack.c.bf16 %v173_v37, %v171_v31  ;;  %856 = vmatprep.subr.bf16.mxu1 %v855_v48  ;;  %v869_v31 = vpack.c.bf16 %v81_v24, %v79_v23  ;;  %v85_v37 = vld [vmem:[%s2265_s1 + $0x170] sm:$0xff]  ;;  %v195_v48 = vld [vmem:[%s2265_s1 + $0x4e0] sm:$0xff] }
  0x45   :  { %v99_v24 = vld [vmem:[%s2265_s1 + $0x1e0] sm:$0xff] }
  0x47   :  { %946 = vmatpush1.bf16.msra.mxu0 %v945_v55  ;;  %v180_v55 = vld [vmem:[%s2265_s1 + $0x468] sm:$0xff]  ;;  %858 = vmatpush1.bf16.msra.mxu1 %v857_v57  ;;  %v202_v57 = vld [vmem:[%s2265_s1 + $0x518] sm:$0xff] }
  0x48   :  { %948 = vmatprep.subr.bf16.mxu0 %v947_v60  ;;  %v859_v60 = vpack.c.bf16 %v74_v54, %v72_v53  ;;  %v967_v63 = vpack.c.bf16 %v182_v56, %v180_v55  ;;  %v197_v53 = vld [vmem:[%s2265_s1 + $0x4f0] sm:$0xff]  ;;  %v92_v54 = vld [vmem:[%s2265_s1 + $0x1a8] sm:$0xff]  ;;  %v94_v55 = vld [vmem:[%s2265_s1 + $0x1b8] sm:$0xff] }
  0x49   :  { %v200_v56 = vld [vmem:[%s2265_s1 + $0x508] sm:$0xff]  ;;  %v985_v59 = vpack.c.bf16 %v197_v53, %v195_v48  ;;  %v879_v61 = vpack.c.bf16 %v94_v55, %v92_v54  ;;  %v217_v54 = vld [vmem:[%s2265_s1 + $0x590] sm:$0xff] }
  0x4a   :  { %860 = vmatprep.subr.bf16.mxu1 %v859_v60  ;;  %v199_v60 = vld [vmem:[%s2265_s1 + $0x500] sm:$0xff]  ;;  %v987_v0 = vpack.c.bf16 %v202_v57, %v200_v56  ;;  %v652_v55 = vld [vmem:[%s2267_s3 + $0x48] sm:$0xff]  ;;  %v654_v56 = vld [vmem:[%s2267_s3 + $0x58] sm:$0xff] }
  0x4b   :  { %950 = vmatpush1.bf16.msra.mxu0 %v949_v4  ;;  %v186_v4 = vld [vmem:[%s2265_s1 + $0x498] sm:$0xff]  ;;  %862 = vmatpush1.bf16.msra.mxu1 %v861_v5  ;;  %v989_v7 = vpack.c.bf16 %v201_v1, %v199_v60  ;;  %v220_v57 = vld [vmem:[%s2265_s1 + $0x5a8] sm:$0xff]  ;;  %v221_v1 = vld [vmem:[%s2265_s1 + $0x5b0] sm:$0xff] }
  0x4c   :  { %952 = vmatprep.subr.bf16.mxu0 %v951_v9  ;;  %v75_v9 = vld [vmem:[%s2265_s1 + $0x120] sm:$0xff]  ;;  %v971_v12 = vpack.c.bf16 %v186_v4, %v184_v3  ;;  %864 = vmatprep.subr.bf16.mxu1 %v863_v8  ;;  %v98_v3 = vld [vmem:[%s2265_s1 + $0x1d8] sm:$0xff]  ;;  %v204_v4 = vld [vmem:[%s2265_s1 + $0x528] sm:$0xff] }
  0x4d   :  { %v865_v20 = vpack.c.bf16 %v77_v11, %v75_v9  ;;  %v206_v5 = vld [vmem:[%s2265_s1 + $0x538] sm:$0xff]  ;;  %v203_v8 = vld [vmem:[%s2265_s1 + $0x520] sm:$0xff]  ;;  %v883_v9 = vpack.c.bf16 %v98_v3, %v96_v2  ;;  %v656_v2 = vld [vmem:[%s2267_s3 + $0x68] sm:$0xff] }
  0x4e   :  { %v95_v11 = vld [vmem:[%s2265_s1 + $0x1c0] sm:$0xff]  ;;  %v991_v13 = vpack.c.bf16 %v206_v5, %v204_v4  ;;  %v658_v3 = vld [vmem:[%s2267_s3 + $0x78] sm:$0xff]  ;;  %v224_v4 = vld [vmem:[%s2265_s1 + $0x5c8] sm:$0xff] }
  0x4f   :  { %954 = vmatpush1.bf16.msra.mxu0 %v953_v17  ;;  %v188_v17 = vld [vmem:[%s2265_s1 + $0x4a8] sm:$0xff]  ;;  %866 = vmatpush1.bf16.msra.mxu1 %v865_v20  ;;  %v210_v20 = vld [vmem:[%s2265_s1 + $0x558] sm:$0xff] }
  0x50   :  { %956 = vmatprep.subr.bf16.mxu0 %v955_v22  ;;  %v187_v22 = vld [vmem:[%s2265_s1 + $0x4a0] sm:$0xff]  ;;  %v975_v25 = vpack.c.bf16 %v190_v19, %v188_v17  ;;  %868 = vmatprep.subr.bf16.mxu1 %v867_v47  ;;  %v102_v17 = vld [vmem:[%s2265_s1 + $0x1f8] sm:$0xff]  ;;  %v208_v19 = vld [vmem:[%s2265_s1 + $0x548] sm:$0xff] }
  0x51   :  { %v207_v47 = vld [vmem:[%s2265_s1 + $0x540] sm:$0xff]  ;;  %v887_v23 = vpack.c.bf16 %v102_v17, %v100_v15  ;;  %v226_v5 = vld [vmem:[%s2265_s1 + $0x5d8] sm:$0xff]  ;;  %v660_v15 = vld [vmem:[%s2267_s3 + $0x88] sm:$0xff] }
  0x52   :  { %487 = vmatmul.mubr.f32.vlgmr.msra.gmra.mrb[0].mxu0 %v1342_v52  ;;  %v963_v52 = vpack.c.bf16 %v178_v42, %v176_v41  ;;  %v90_v41 = vld [vmem:[%s2265_s1 + $0x198] sm:$0xff]  ;;  %v196_v42 = vld [vmem:[%s2265_s1 + $0x4e8] sm:$0xff]  ;;  %v997_v33 = vpack.c.bf16 %v209_v27, %v207_v47  ;;  %v227_v47 = vld [vmem:[%s2265_s1 + $0x5e0] sm:$0xff] }
  0x53   :  { %958 = vmatpush1.bf16.msra.mxu0 %v957_v30  ;;  %557 = vmatprep.mubr.f32.mxu0 %v341_v32  ;;  %v194_v30 = vld [vmem:[%s2265_s1 + $0x4d8] sm:$0xff]  ;;  %v977_v32 = vpack.c.bf16 %v189_v26, %v187_v22  ;;  %v875_v49 = vpack.c.bf16 %v90_v41, %v88_v40  ;;  %v983_v51 = vpack.c.bf16 %v198_v44, %v196_v42  ;;  %v213_v40 = vld [vmem:[%s2265_s1 + $0x570] sm:$0xff]  ;;  %v648_v41 = vld [vmem:[%s2267_s3 + $0x28] sm:$0xff] }
  0x54   :  { %960 = vmatprep.subr.bf16.mxu0 %v959_v36  ;;  %v83_v36 = vld [vmem:[%s2265_s1 + $0x160] sm:$0xff]  ;;  %v979_v38 = vpack.c.bf16 %v194_v30, %v192_v29  ;;  %870 = vmatpush1.bf16.msra.mxu1 %v869_v31  ;;  %v993_v22 = vpack.c.bf16 %v205_v14, %v203_v8  ;;  %v995_v26 = vpack.c.bf16 %v210_v20, %v208_v19  ;;  %v646_v29 = vld [vmem:[%s2267_s3 + $0x18] sm:$0xff]  ;;  %v212_v30 = vld [vmem:[%s2265_s1 + $0x568] sm:$0xff] }
  0x55   :  { %872 = vmatprep.subr.bf16.mxu1 %v871_v34  ;;  %v214_v31 = vld [vmem:[%s2265_s1 + $0x578] sm:$0xff]  ;;  %v211_v34 = vld [vmem:[%s2265_s1 + $0x560] sm:$0xff]  ;;  %v216_v44 = vld [vmem:[%s2265_s1 + $0x588] sm:$0xff] }
  0x56   :  { %v999_v39 = vpack.c.bf16 %v214_v31, %v212_v30  ;;  %v650_v42 = vld [vmem:[%s2267_s3 + $0x38] sm:$0xff]  ;;  %v1001_v48 = vpack.c.bf16 %v213_v40, %v211_v34  ;;  %v223_v8 = vld [vmem:[%s2265_s1 + $0x5c0] sm:$0xff]  ;;  %v225_v14 = vld [vmem:[%s2265_s1 + $0x5d0] sm:$0xff] }
  0x57   :  { %962 = vmatpush1.bf16.msra.mxu0 %v961_v45  ;;  %v873_v45 = vpack.c.bf16 %v85_v37, %v83_v36  ;;  %v1083_v36 = vpack.c.bf16 %v646_v29, %v644_v28  ;;  %v643_v37 = vld [vmem:[%s2267_s3] sm:$0xff]  ;;  %v662_v17 = vld [vmem:[%s2267_s3 + $0x98] sm:$0xff]  ;;  %v228_v19 = vld [vmem:[%s2265_s1 + $0x5e8] sm:$0xff] }
  0x58   :  { %964 = vmatprep.subr.bf16.mxu0 %v963_v52  ;;  %v89_v52 = vld [vmem:[%s2265_s1 + $0x190] sm:$0xff]  ;;  %v230_v20 = vld [vmem:[%s2265_s1 + $0x5f8] sm:$0xff]  ;;  %v232_v30 = vld [vmem:[%s2265_s1 + $0x608] sm:$0xff] }
  0x59   :  { %874 = vmatpush1.bf16.msra.mxu1 %v873_v45  ;;  %v218_v45 = vld [vmem:[%s2265_s1 + $0x598] sm:$0xff]  ;;  %v1015_v27 = vpack.c.bf16 %v230_v20, %v228_v19  ;;  %v229_v28 = vld [vmem:[%s2265_s1 + $0x5f0] sm:$0xff]  ;;  %v231_v40 = vld [vmem:[%s2265_s1 + $0x600] sm:$0xff] }
  0x5a   :  { %876 = vmatprep.subr.bf16.mxu1 %v875_v49  ;;  %v215_v49 = vld [vmem:[%s2265_s1 + $0x580] sm:$0xff]  ;;  %v1003_v53 = vpack.c.bf16 %v218_v45, %v216_v44  ;;  %v666_v29 = vld [vmem:[%s2267_s3 + $0xb8] sm:$0xff]  ;;  %v668_v44 = vld [vmem:[%s2267_s3 + $0xc8] sm:$0xff] }
  0x5b   :  { %966 = vmatpush1.bf16.msra.mxu0 %v965_v58  ;;  %v877_v58 = vpack.c.bf16 %v89_v52, %v87_v50  ;;  %v1087_v50 = vpack.c.bf16 %v650_v42, %v648_v41  ;;  %v647_v52 = vld [vmem:[%s2267_s3 + $0x20] sm:$0xff]  ;;  %v1005_v60 = vpack.c.bf16 %v217_v54, %v215_v49  ;;  %v234_v31 = vld [vmem:[%s2265_s1 + $0x618] sm:$0xff]  ;;  %v236_v41 = vld [vmem:[%s2265_s1 + $0x628] sm:$0xff] }
  0x5c   :  { %968 = vmatprep.subr.bf16.mxu0 %v967_v63  ;;  %v93_v63 = vld [vmem:[%s2265_s1 + $0x1b0] sm:$0xff]  ;;  %v238_v42 = vld [vmem:[%s2265_s1 + $0x638] sm:$0xff]  ;;  %v235_v49 = vld [vmem:[%s2265_s1 + $0x620] sm:$0xff] }
  0x5d   :  { %878 = vmatpush1.bf16.msra.mxu1 %v877_v58  ;;  %v222_v58 = vld [vmem:[%s2265_s1 + $0x5b8] sm:$0xff]  ;;  %v237_v54 = vld [vmem:[%s2265_s1 + $0x630] sm:$0xff]  ;;  %v248_v19 = vld [vmem:[%s2265_s1 + $0x688] sm:$0xff] }
  0x5e   :  { %880 = vmatprep.subr.bf16.mxu1 %v879_v61  ;;  %v219_v61 = vld [vmem:[%s2265_s1 + $0x5a0] sm:$0xff]  ;;  %v670_v45 = vld [vmem:[%s2267_s3 + $0xd8] sm:$0xff] }
  0x5f   :  { %970 = vmatpush1.bf16.msra.mxu0 %v969_v6  ;;  %v881_v6 = vpack.c.bf16 %v93_v63, %v91_v62  ;;  %v1091_v62 = vpack.c.bf16 %v654_v56, %v652_v55  ;;  %v651_v63 = vld [vmem:[%s2267_s3 + $0x40] sm:$0xff]  ;;  %v1107_v55 = vpack.c.bf16 %v670_v45, %v668_v44  ;;  %v672_v56 = vld [vmem:[%s2267_s3 + $0xe8] sm:$0xff]  ;;  %v250_v20 = vld [vmem:[%s2265_s1 + $0x698] sm:$0xff] }
  0x60   :  { %972 = vmatprep.subr.bf16.mxu0 %v971_v12  ;;  %v97_v12 = vld [vmem:[%s2265_s1 + $0x1d0] sm:$0xff]  ;;  %v258_v44 = vld [vmem:[%s2265_s1 + $0x6d8] sm:$0xff] }
  0x61   :  { %882 = vmatpush1.bf16.msra.mxu1 %v881_v6 }
  0x62   :  { %884 = vmatprep.subr.bf16.mxu1 %v883_v9  ;;  %v1095_v9 = vpack.c.bf16 %v658_v3, %v656_v2  ;;  %v676_v2 = vld [vmem:[%s2267_s3 + $0x108] sm:$0xff]  ;;  %v678_v3 = vld [vmem:[%s2267_s3 + $0x118] sm:$0xff] }
  0x63   :  { %974 = vmatpush1.bf16.msra.mxu0 %v973_v21  ;;  %v885_v21 = vpack.c.bf16 %v97_v12, %v95_v11  ;;  %v655_v11 = vld [vmem:[%s2267_s3 + $0x60] sm:$0xff]  ;;  %v657_v12 = vld [vmem:[%s2267_s3 + $0x70] sm:$0xff] }
  0x64   :  { %976 = vmatprep.subr.bf16.mxu0 %v975_v25  ;;  %v101_v25 = vld [vmem:[%s2265_s1 + $0x1f0] sm:$0xff] }
  0x65   :  { %886 = vmatpush1.bf16.msra.mxu1 %v885_v21  ;;  %v1097_v21 = vpack.c.bf16 %v657_v12, %v655_v11  ;;  %v675_v11 = vld [vmem:[%s2267_s3 + $0x100] sm:$0xff]  ;;  %v677_v12 = vld [vmem:[%s2267_s3 + $0x110] sm:$0xff] }
  0x66   :  { %888 = vmatprep.subr.bf16.mxu1 %v887_v23  ;;  %v326_v23 = vcombine.high %v1511_v10, %v1511_v10  ;;  %v664_v10 = vld [vmem:[%s2267_s3 + $0xa8] sm:$0xff] }
  0x67   :  { %978 = vmatpush1.bf16.msra.mxu0 %v977_v32  ;;  %v889_v32 = vpack.c.bf16 %v101_v25, %v99_v24  ;;  %v1099_v24 = vpack.c.bf16 %v662_v17, %v660_v15  ;;  %v659_v25 = vld [vmem:[%s2267_s3 + $0x80] sm:$0xff]  ;;  %v680_v15 = vld [vmem:[%s2267_s3 + $0x128] sm:$0xff]  ;;  %v682_v17 = vld [vmem:[%s2267_s3 + $0x138] sm:$0xff] }
  0x68   :  { %980 = vmatprep.subr.bf16.mxu0 %v979_v38  ;;  %v645_v38 = vld [vmem:[%s2267_s3 + $0x10] sm:$0xff]  ;;  %v1926_v34 = vrot.slane %v326_v23, %v1320_v43  ;;  %v1119_v23 = vpack.c.bf16 %v682_v17, %v680_v15  ;;  %v267_v15 = vld [vmem:[%s2265_s1 + $0x720] sm:$0xff] }
  0x69   :  { %890 = vmatpush1.bf16.msra.mxu1 %v889_v32  ;;  %v233_v43 = vld [vmem:[%s2265_s1 + $0x610] sm:$0xff] }
  0x6a   :  { %1084 = vmatprep.subr.bf16.mxu1 %v1083_v36  ;;  %v1103_v36 = vpack.c.bf16 %v666_v29, %v664_v10  ;;  %v686_v10 = vld [vmem:[%s2267_s3 + $0x158] sm:$0xff]  ;;  %v252_v29 = vld [vmem:[%s2265_s1 + $0x6a8] sm:$0xff]  ;;  %v269_v17 = vld [vmem:[%s2265_s1 + $0x730] sm:$0xff] }
  0x6b   :  { %982 = vmatpush1.bf16.msra.mxu0 %v981_v46  ;;  %v1085_v46 = vpack.c.bf16 %v645_v38, %v643_v37  ;;  %v663_v37 = vld [vmem:[%s2267_s3 + $0xa0] sm:$0xff]  ;;  %v665_v38 = vld [vmem:[%s2267_s3 + $0xb0] sm:$0xff] }
  0x6c   :  { %984 = vmatprep.subr.bf16.mxu0 %v983_v51  ;;  %v649_v51 = vld [vmem:[%s2267_s3 + $0x30] sm:$0xff]  ;;  %416 = vmatmul.mubr.f32.vlgmr.msra.gmra.mrb[0].mxu1 %v1527_v16  ;;  %v1007_v16 = vpack.c.bf16 %v222_v58, %v220_v57  ;;  %v674_v57 = vld [vmem:[%s2267_s3 + $0xf8] sm:$0xff]  ;;  %v240_v58 = vld [vmem:[%s2265_s1 + $0x648] sm:$0xff] }
  0x6d   :  { %1086 = vmatpush1.bf16.msra.mxu1 %v1085_v46  ;;  %v1105_v46 = vpack.c.bf16 %v665_v38, %v663_v37  ;;  %v683_v37 = vld [vmem:[%s2267_s3 + $0x140] sm:$0xff]  ;;  %v685_v38 = vld [vmem:[%s2267_s3 + $0x150] sm:$0xff] }
  0x6e   :  { %1088 = vmatprep.subr.bf16.mxu1 %v1087_v50  ;;  %v342_v50 = vcombine.high %v1926_v34, %v1926_v34  ;;  %v1125_v45 = vpack.c.bf16 %v685_v38, %v683_v37  ;;  %v284_v37 = vld [vmem:[%s2265_s1 + $0x7a8] sm:$0xff]  ;;  %v286_v38 = vld [vmem:[%s2265_s1 + $0x7b8] sm:$0xff] }
  0x6f   :  { %986 = vmatpush1.bf16.msra.mxu0 %v985_v59  ;;  %v1089_v59 = vpack.c.bf16 %v649_v51, %v647_v52  ;;  %v667_v52 = vld [vmem:[%s2267_s3 + $0xc0] sm:$0xff]  ;;  %v669_v51 = vld [vmem:[%s2267_s3 + $0xd0] sm:$0xff] }
  0x70   :  { %988 = vmatprep.subr.bf16.mxu0 %v987_v0  ;;  %v653_v0 = vld [vmem:[%s2267_s3 + $0x50] sm:$0xff] }
  0x71   :  { %1090 = vmatpush1.bf16.msra.mxu1 %v1089_v59  ;;  %v1093_v6 = vpack.c.bf16 %v653_v0, %v651_v63  ;;  %v242_v59 = vld [vmem:[%s2265_s1 + $0x658] sm:$0xff]  ;;  %v1111_v63 = vpack.c.bf16 %v674_v57, %v672_v56  ;;  %v671_v0 = vld [vmem:[%s2267_s3 + $0xe0] sm:$0xff]  ;;  %v260_v56 = vld [vmem:[%s2265_s1 + $0x6e8] sm:$0xff] }
  0x72   :  { %1092 = vmatprep.subr.bf16.mxu1 %v1091_v62  ;;  %v239_v62 = vld [vmem:[%s2265_s1 + $0x640] sm:$0xff]  ;;  %v262_v57 = vld [vmem:[%s2265_s1 + $0x6f8] sm:$0xff] }
  0x73   :  { %990 = vmatpush1.bf16.msra.mxu0 %v989_v7  ;;  %v1009_v7 = vpack.c.bf16 %v221_v1, %v219_v61  ;;  %v1025_v61 = vpack.c.bf16 %v237_v54, %v235_v49  ;;  %v241_v1 = vld [vmem:[%s2265_s1 + $0x650] sm:$0xff]  ;;  %v692_v54 = vld [vmem:[%s2267_s3 + $0x188] sm:$0xff] }
  0x74   :  { %992 = vmatprep.subr.bf16.mxu0 %v991_v13  ;;  %v1011_v13 = vpack.c.bf16 %v226_v5, %v224_v4  ;;  %v244_v4 = vld [vmem:[%s2265_s1 + $0x668] sm:$0xff]  ;;  %v246_v5 = vld [vmem:[%s2265_s1 + $0x678] sm:$0xff] }
  0x75   :  { %1094 = vmatpush1.bf16.msra.mxu1 %v1093_v6 }
  0x76   :  { %1096 = vmatprep.subr.bf16.mxu1 %v1095_v9  ;;  %v1115_v9 = vpack.c.bf16 %v678_v3, %v676_v2  ;;  %v264_v2 = vld [vmem:[%s2265_s1 + $0x708] sm:$0xff]  ;;  %v266_v3 = vld [vmem:[%s2265_s1 + $0x718] sm:$0xff] }
  0x77   :  { %994 = vmatpush1.bf16.msra.mxu0 %v993_v22  ;;  %v1013_v22 = vpack.c.bf16 %v225_v14, %v223_v8  ;;  %v243_v8 = vld [vmem:[%s2265_s1 + $0x660] sm:$0xff]  ;;  %v245_v14 = vld [vmem:[%s2265_s1 + $0x670] sm:$0xff] }
  0x78   :  { %996 = vmatprep.subr.bf16.mxu0 %v995_v26  ;;  %v661_v26 = vld [vmem:[%s2267_s3 + $0x90] sm:$0xff] }
  0x79   :  { %1098 = vmatpush1.bf16.msra.mxu1 %v1097_v21  ;;  %v1101_v32 = vpack.c.bf16 %v661_v26, %v659_v25  ;;  %v1117_v21 = vpack.c.bf16 %v677_v12, %v675_v11  ;;  %v681_v25 = vld [vmem:[%s2267_s3 + $0x130] sm:$0xff]  ;;  %v1035_v26 = vpack.c.bf16 %v250_v20, %v248_v19  ;;  %v268_v11 = vld [vmem:[%s2265_s1 + $0x728] sm:$0xff]  ;;  %v270_v12 = vld [vmem:[%s2265_s1 + $0x738] sm:$0xff] }
  0x7a   :  { %1100 = vmatprep.subr.bf16.mxu1 %v1099_v24  ;;  %v679_v24 = vld [vmem:[%s2267_s3 + $0x120] sm:$0xff]  ;;  %v272_v19 = vld [vmem:[%s2265_s1 + $0x748] sm:$0xff]  ;;  %v274_v20 = vld [vmem:[%s2265_s1 + $0x758] sm:$0xff] }
  0x7b   :  { %998 = vmatpush1.bf16.msra.mxu0 %v997_v33  ;;  %v1017_v33 = vpack.c.bf16 %v229_v28, %v227_v47  ;;  %v247_v47 = vld [vmem:[%s2265_s1 + $0x680] sm:$0xff]  ;;  %v684_v28 = vld [vmem:[%s2267_s3 + $0x148] sm:$0xff] }
  0x7c   :  { %1000 = vmatprep.subr.bf16.mxu0 %v999_v39  ;;  %v1019_v39 = vpack.c.bf16 %v234_v31, %v232_v30  ;;  %v254_v30 = vld [vmem:[%s2265_s1 + $0x6b8] sm:$0xff]  ;;  %v1121_v31 = vpack.c.bf16 %v681_v25, %v679_v24  ;;  %v276_v24 = vld [vmem:[%s2265_s1 + $0x768] sm:$0xff] }
  0x7d   :  { %1102 = vmatpush1.bf16.msra.mxu1 %v1101_v32  ;;  %v278_v25 = vld [vmem:[%s2265_s1 + $0x778] sm:$0xff] }
  0x7e   :  { %1104 = vmatprep.subr.bf16.mxu1 %v1103_v36  ;;  %v1123_v36 = vpack.c.bf16 %v686_v10, %v684_v28  ;;  %v275_v28 = vld [vmem:[%s2265_s1 + $0x760] sm:$0xff]  ;;  %v277_v10 = vld [vmem:[%s2265_s1 + $0x770] sm:$0xff] }
  0x7f   :  { %1002 = vmatpush1.bf16.msra.mxu0 %v1001_v48  ;;  %v1021_v48 = vpack.c.bf16 %v233_v43, %v231_v40  ;;  %v253_v40 = vld [vmem:[%s2265_s1 + $0x6b0] sm:$0xff]  ;;  %v688_v43 = vld [vmem:[%s2267_s3 + $0x168] sm:$0xff] }
  0x80   :  { %1004 = vmatprep.subr.bf16.mxu0 %v1003_v53  ;;  %v1023_v53 = vpack.c.bf16 %v238_v42, %v236_v41  ;;  %v690_v41 = vld [vmem:[%s2267_s3 + $0x178] sm:$0xff]  ;;  %v256_v42 = vld [vmem:[%s2265_s1 + $0x6c8] sm:$0xff] }
  0x81   :  { %1106 = vmatpush1.bf16.msra.mxu1 %v1105_v46  ;;  %v1127_v49 = vpack.c.bf16 %v690_v41, %v688_v43  ;;  %v283_v43 = vld [vmem:[%s2265_s1 + $0x7a0] sm:$0xff]  ;;  %v285_v41 = vld [vmem:[%s2265_s1 + $0x7b0] sm:$0xff] }
  0x82   :  { %1108 = vmatprep.subr.bf16.mxu1 %v1107_v55  ;;  %v694_v55 = vld [vmem:[%s2267_s3 + $0x198] sm:$0xff] }
  0x83   :  { %1006 = vmatpush1.bf16.msra.mxu0 %v1005_v60  ;;  %v1109_v60 = vpack.c.bf16 %v669_v51, %v667_v52  ;;  %v689_v52 = vld [vmem:[%s2267_s3 + $0x170] sm:$0xff]  ;;  %v1043_v51 = vpack.c.bf16 %v258_v44, %v256_v42  ;;  %v288_v42 = vld [vmem:[%s2265_s1 + $0x7c8] sm:$0xff]  ;;  %v290_v44 = vld [vmem:[%s2265_s1 + $0x7d8] sm:$0xff] }
  0x84   :  { %1008 = vmatprep.subr.bf16.mxu0 %v1007_v16  ;;  %v673_v16 = vld [vmem:[%s2267_s3 + $0xf0] sm:$0xff] }
  0x85   :  { %1110 = vmatpush1.bf16.msra.mxu1 %v1109_v60  ;;  %v1113_v6 = vpack.c.bf16 %v673_v16, %v671_v0  ;;  %v259_v60 = vld [vmem:[%s2265_s1 + $0x6e0] sm:$0xff]  ;;  %v1047_v0 = vpack.c.bf16 %v262_v57, %v260_v56  ;;  %v261_v16 = vld [vmem:[%s2265_s1 + $0x6f0] sm:$0xff] }
  0x86   :  { %1112 = vmatprep.subr.bf16.mxu1 %v1111_v63  ;;  %v693_v63 = vld [vmem:[%s2267_s3 + $0x190] sm:$0xff]  ;;  %v695_v57 = vld [vmem:[%s2267_s3 + $0x1a0] sm:$0xff] }
  0x87   :  { %1010 = vmatpush1.bf16.msra.mxu0 %v1009_v7  ;;  %v1029_v7 = vpack.c.bf16 %v241_v1, %v239_v62  ;;  %v691_v62 = vld [vmem:[%s2267_s3 + $0x180] sm:$0xff]  ;;  %v698_v1 = vld [vmem:[%s2267_s3 + $0x1b8] sm:$0xff] }
  0x88   :  { %1012 = vmatprep.subr.bf16.mxu0 %v1011_v13  ;;  %v1031_v13 = vpack.c.bf16 %v246_v5, %v244_v4  ;;  %v1133_v4 = vpack.c.bf16 %v693_v63, %v691_v62  ;;  %v1049_v5 = vpack.c.bf16 %v261_v16, %v259_v60  ;;  %v700_v60 = vld [vmem:[%s2267_s3 + $0x1c8] sm:$0xff]  ;;  %v699_v63 = vld [vmem:[%s2267_s3 + $0x1c0] sm:$0xff] }
  0x89   :  { %1114 = vmatpush1.bf16.msra.mxu1 %v1113_v6  ;;  %v704_v16 = vld [vmem:[%s2267_s3 + $0x1e8] sm:$0xff] }
  0x8a   :  { %1116 = vmatprep.subr.bf16.mxu1 %v1115_v9  ;;  %v265_v9 = vld [vmem:[%s2265_s1 + $0x710] sm:$0xff] }
  0x8b   :  { %1014 = vmatpush1.bf16.msra.mxu0 %v1013_v22  ;;  %v1033_v22 = vpack.c.bf16 %v245_v14, %v243_v8  ;;  %v263_v8 = vld [vmem:[%s2265_s1 + $0x700] sm:$0xff]  ;;  %v1055_v14 = vpack.c.bf16 %v270_v12, %v268_v11 }
  0x8c   :  { %1016 = vmatprep.subr.bf16.mxu0 %v1015_v27  ;;  %v249_v27 = vld [vmem:[%s2265_s1 + $0x690] sm:$0xff] }
  0x8d   :  { %1118 = vmatpush1.bf16.msra.mxu1 %v1117_v21  ;;  %v1037_v32 = vpack.c.bf16 %v249_v27, %v247_v47  ;;  %v1057_v21 = vpack.c.bf16 %v269_v17, %v267_v15  ;;  %v271_v47 = vld [vmem:[%s2265_s1 + $0x740] sm:$0xff]  ;;  %v1063_v27 = vpack.c.bf16 %v278_v25, %v276_v24  ;;  %v638_v17 = vstv %s637_s28 }
  0x8e   :  { %1120 = vmatprep.subr.bf16.mxu1 %v1119_v23  ;;  %v273_v23 = vld [vmem:[%s2265_s1 + $0x750] sm:$0xff] }
  0x8f   :  { %1018 = vmatpush1.bf16.msra.mxu0 %v1017_v33  ;;  %v251_v33 = vld [vmem:[%s2265_s1 + $0x6a0] sm:$0xff] }
  0x90   :  { %1020 = vmatprep.subr.bf16.mxu0 %v1019_v39  ;;  %v1039_v39 = vpack.c.bf16 %v254_v30, %v252_v29  ;;  %v1041_v46 = vpack.c.bf16 %v253_v40, %v251_v33  ;;  %v280_v29 = vld [vmem:[%s2265_s1 + $0x788] sm:$0xff]  ;;  %v282_v30 = vld [vmem:[%s2265_s1 + $0x798] sm:$0xff]  ;;  %v279_v33 = vld [vmem:[%s2265_s1 + $0x780] sm:$0xff]  ;;  %v1071_v40 = vpack.c.bf16 %v286_v38, %v284_v37 }
  0x91   :  { %1122 = vmatpush1.bf16.msra.mxu1 %v1121_v31  ;;  %v1065_v31 = vpack.c.bf16 %v277_v10, %v275_v28 }
  0x92   :  { %558 = vmatmul.mubr.f32.vlgmr.msra.gmra.mrb[0].mxu0 %v1531_v18  ;;  %v1027_v18 = vpack.c.bf16 %v242_v59, %v240_v58  ;;  %1124 = vmatprep.subr.bf16.mxu1 %v1123_v36  ;;  %v281_v36 = vld [vmem:[%s2265_s1 + $0x790] sm:$0xff] }
  0x93   :  { %1022 = vmatpush1.bf16.msra.mxu0 %v1021_v48  ;;  %628 = vmatprep.mubr.f32.mxu0 %v342_v50  ;;  %v255_v48 = vld [vmem:[%s2265_s1 + $0x6c0] sm:$0xff] }
  0x94   :  { %1024 = vmatprep.subr.bf16.mxu0 %v1023_v53  ;;  %v687_v50 = vld [vmem:[%s2267_s3 + $0x160] sm:$0xff]  ;;  %v257_v53 = vld [vmem:[%s2265_s1 + $0x6d0] sm:$0xff] }
  0x95   :  { %1126 = vmatpush1.bf16.msra.mxu1 %v1125_v45  ;;  %v1129_v58 = vpack.c.bf16 %v689_v52, %v687_v50  ;;  %v1045_v59 = vpack.c.bf16 %v257_v53, %v255_v48  ;;  %v1073_v45 = vpack.c.bf16 %v285_v41, %v283_v43  ;;  %v287_v48 = vld [vmem:[%s2265_s1 + $0x7c0] sm:$0xff]  ;;  %v292_v50 = vld [vmem:[%s2265_s1 + $0x7e8] sm:$0xff]  ;;  %v294_v52 = vld [vmem:[%s2265_s1 + $0x7f8] sm:$0xff] }
  0x96   :  { %1128 = vmatprep.subr.bf16.mxu1 %v1127_v49  ;;  %v289_v49 = vld [vmem:[%s2265_s1 + $0x7d0] sm:$0xff]  ;;  %v1079_v53 = vpack.c.bf16 %v294_v52, %v292_v50 }
  0x97   :  { %1026 = vmatpush1.bf16.msra.mxu0 %v1025_v61  ;;  %v1131_v61 = vpack.c.bf16 %v694_v55, %v692_v54  ;;  %v291_v54 = vld [vmem:[%s2265_s1 + $0x7e0] sm:$0xff]  ;;  %v293_v55 = vld [vmem:[%s2265_s1 + $0x7f0] sm:$0xff] }
  0x98   :  { %1028 = vmatprep.subr.bf16.mxu0 %v1027_v18  ;;  %v696_v18 = vld [vmem:[%s2267_s3 + $0x1a8] sm:$0xff]  ;;  %v1081_v56 = vpack.c.bf16 %v293_v55, %v291_v54 }
  0x99   :  { %1130 = vmatpush1.bf16.msra.mxu1 %v1129_v58  ;;  %v1135_v6 = vpack.c.bf16 %v698_v1, %v696_v18  ;;  %v697_v58 = vld [vmem:[%s2267_s3 + $0x1b0] sm:$0xff]  ;;  %v706_v18 = vld [vmem:[%s2267_s3 + $0x1f8] sm:$0xff] }
  0x9a   :  { %1132 = vmatprep.subr.bf16.mxu1 %v1131_v61  ;;  %v702_v61 = vld [vmem:[%s2267_s3 + $0x1d8] sm:$0xff]  ;;  %v1143_v1 = vpack.c.bf16 %v706_v18, %v704_v16 }
  0x9b   :  { %1030 = vmatpush1.bf16.msra.mxu0 %v1029_v7  ;;  %v1051_v7 = vpack.c.bf16 %v266_v3, %v264_v2  ;;  %v1139_v62 = vpack.c.bf16 %v702_v61, %v700_v60  ;;  %v703_v2 = vld [vmem:[%s2267_s3 + $0x1e0] sm:$0xff]  ;;  %v705_v3 = vld [vmem:[%s2267_s3 + $0x1f0] sm:$0xff] }
  0x9c   :  { %1032 = vmatprep.subr.bf16.mxu0 %v1031_v13  ;;  %v1053_v13 = vpack.c.bf16 %v265_v9, %v263_v8  ;;  %v295_v8 = vld [vmem:[%s2266_s2] sm:$0x3]  ;;  %v303_v9 = vsub.s32 1, %v1305_v35  ;;  %s825_s2 = sld [smem:[#allocation2 + $0x1]] }
  0x9d   :  { %1134 = vmatpush1.bf16.msra.mxu1 %v1133_v4  ;;  %v1145_v4 = vpack.c.bf16 %v705_v3, %v703_v2 }
  0x9e   :  { %1136 = vmatprep.subr.bf16.mxu1 %v1135_v6  ;;  %v304_v12 = vrot.slane %v295_v8, %v303_v9 }
  0x9f   :  { %1034 = vmatpush1.bf16.msra.mxu0 %v1033_v22  ;;  %v1059_v22 = vpack.c.bf16 %v274_v20, %v272_v19 }
  0xa0   :  { %1036 = vmatprep.subr.bf16.mxu0 %v1035_v26  ;;  %v1061_v26 = vpack.c.bf16 %v273_v23, %v271_v47 }
  0xa2   :  { %v793_v28 = vstv %s825_s2 }
  0xa3   :  { %1038 = vmatpush1.bf16.msra.mxu0 %v1037_v32  ;;  %v1067_v32 = vpack.c.bf16 %v282_v30, %v280_v29 }
  0xa4   :  { %1040 = vmatprep.subr.bf16.mxu0 %v1039_v39  ;;  %v1069_v39 = vpack.c.bf16 %v281_v36, %v279_v33 }
  0xa7   :  { %1042 = vmatpush1.bf16.msra.mxu0 %v1041_v46  ;;  %v1075_v46 = vpack.c.bf16 %v290_v44, %v288_v42 }
  0xa8   :  { %1044 = vmatprep.subr.bf16.mxu0 %v1043_v51  ;;  %v1077_v51 = vpack.c.bf16 %v289_v49, %v287_v48 }
  0xab   :  { %1046 = vmatpush1.bf16.msra.mxu0 %v1045_v59  ;;  %v1137_v59 = vpack.c.bf16 %v697_v58, %v695_v57 }
  0xac   :  { %1048 = vmatprep.subr.bf16.mxu0 %v1047_v0  ;;  %v701_v0 = vld [vmem:[%s2267_s3 + $0x1d0] sm:$0xff] }
  0xad   :  { %1138 = vmatpush1.bf16.msra.mxu1 %v1137_v59 }
  0xae   :  { %1140 = vmatprep.subr.bf16.mxu1 %v1139_v62 }
  0xaf   :  { %1050 = vmatpush1.bf16.msra.mxu0 %v1049_v5 }
  0xb0   :  { %1052 = vmatprep.subr.bf16.mxu0 %v1051_v7  ;;  %v299_v7 = vsub.s32 0, %v1305_v35  ;;  %v707_v35 = vld [vmem:[%s2268_s4] sm:$0x3] }
  0xb2   :  { %v300_v11 = vrot.slane %v295_v8, %v299_v7  ;;  %v712_v25 = vrot.slane %v707_v35, %v299_v7 }
  0xb3   :  { %1054 = vmatpush1.bf16.msra.mxu0 %v1053_v13 }
  0xb4   :  { %1056 = vmatprep.subr.bf16.mxu0 %v1055_v14 }
  0xb7   :  { %1058 = vmatpush1.bf16.msra.mxu0 %v1057_v21 }
  0xb8   :  { %1060 = vmatprep.subr.bf16.mxu0 %v1059_v22 }
  0xbb   :  { %1062 = vmatpush1.bf16.msra.mxu0 %v1061_v26  ;;  %v716_v26 = vrot.slane %v707_v35, %v303_v9 }
  0xbc   :  { %1064 = vmatprep.subr.bf16.mxu0 %v1063_v27 }
  0xbf   :  { %1066 = vmatpush1.bf16.msra.mxu0 %v1065_v31 }
  0xc0   :  { %1068 = vmatprep.subr.bf16.mxu0 %v1067_v32 }
  0xc3   :  { %1070 = vmatpush1.bf16.msra.mxu0 %v1069_v39 }
  0xc4   :  { %1072 = vmatprep.subr.bf16.mxu0 %v1071_v40 }
  0xc7   :  { %1074 = vmatpush1.bf16.msra.mxu0 %v1073_v45 }
  0xc8   :  { %1076 = vmatprep.subr.bf16.mxu0 %v1075_v46 }
  0xcb   :  { %1078 = vmatpush1.bf16.msra.mxu0 %v1077_v51 }
  0xcc   :  { %1080 = vmatprep.subr.bf16.mxu0 %v1079_v53 }
  0xcf   :  { %1082 = vmatpush1.bf16.msra.mxu0 %v1081_v56 }
  0xd2   :  { %629 = vmatmul.mubr.f32.vlgmr.msra.gmra.mrb[0].mxu0 %v1926_v34  ;;  %v1141_v34 = vpack.c.bf16 %v701_v0, %v699_v63 }
  0xd4   :  { %1142 = vmatpush1.bf16.msra.mxu1 %v1141_v34 }
  0xd5   :  { %1144 = vmatprep.subr.bf16.mxu1 %v1143_v1 }
  0xd8   :  { %1146 = vmatpush1.bf16.msra.mxu1 %v1145_v4 }
 0x13f   :  { %v417_v5 = vpop.f32.mrb[0].mxu1 }
 0x140   :  { %v419_v6 = vpop.f32.mrb[1].mxu1  ;;  %v418_v13 = vadd.f32 %v417_v5, %v300_v11 }
 0x141   :  { %v420_v14 = vadd.f32 %v419_v6, %v304_v12 }
 0x1a5   :  { %v630_v15 = vpop.f32.mrb[0].mxu0 }
 0x1a6   :  { %v1148_v19 = vadd.f32 %v630_v15, %v418_v13  ;;  %v632_v20 = vpop.f32.mrb[1].mxu0 }
 0x1a7   :  { %v1150_v21 = vadd.f32 %v632_v20, %v420_v14 }
 0x1a8   :  { %v639_v22 = vmul.f32 %v1148_v19, %v638_v17  ;;  %vm635_vm0 = vcmp.ge.f32.partialorder %v1148_v19, 0.0 }
 0x1a9   :  { %v640_v47 = vmul.f32 %v1150_v21, %v638_v17  ;;  %vm636_vm1 = vcmp.ge.f32.partialorder %v1150_v21, 0.0 }
 0x1aa   :  { %v641_v24 = vsel %vm635_vm0, %v1148_v19, %v639_v22 }
 0x1ab   :  { %v642_v23 = vsel %vm636_vm1, %v1150_v21, %v640_v47 }
 0x1ac   :  { %783 = vmatprep.mubr.f32.mxu1 %v642_v23 }
 0x1ad   :  { %784 = vmatmul.mubr.f32.vlgmr.msra.gmra.mrb[2].mxu1 %v641_v24 }
 0x280   :  { %v785_v27 = vpop.f32.mrb[2].mxu1 }
 0x281   :  { %v786_v10 = vadd.f32 %v785_v27, %v712_v25  ;;  %v787_v29 = vpop.f32.mrb[3].mxu1 }
 0x282   :  { %v788_v30 = vadd.f32 %v787_v29, %v716_v26 }
 0x283   :  { %v794_v31 = vmul.f32 %v793_v28, %v786_v10  ;;  %vm790_vm2 = vcmp.ge.f32.partialorder %v786_v10, 0.0 }
 0x284   :  { %v795_v32 = vmul.f32 %v793_v28, %v788_v30  ;;  %vm791_vm3 = vcmp.ge.f32.partialorder %v788_v30, 0.0 }
 0x285   :  { %v796_v33 = vsel %vm790_vm2, %v786_v10, %v794_v31 }
 0x286   :  { %v797_v36 = vsel %vm791_vm3, %v788_v30, %v795_v32 }
 0x287   :  { %v800_v37 = vcombine.low %v796_v33, %v797_v36 }
 0x289   :  { %826 = vst.sshfl [vmem:[#allocation5] sm:$0x33 pattern:$0x76325410] %v800_v37 }
 0x28a   :  { %1183 = shalt.err (!%p1180_p9)
}
 0x28b   :  { %s1184_s8 = scalar_lea.hbm %s2270_s6, 64 }
 0x28c   :  { %p1185_p10 = scmp.ne.s32.totalorder %s2270_s6, %s1184_s8  ;;  %p1188_p11 = scmp.lt.u32.totalorder %s1184_s8, %s2270_s6 }
 0x28e   :  { %p1190_p12 = pnand %p1188_p11, %p1185_p10 }
 0x290   :  { %1193 = shalt.err (!%p1190_p12)
}
 0x291   :  { %819 = dma.vmem_to_hbm [thread:$0]  %s817_s0, 64, %s2270_s6, [#allocation3]  }
 0x292   :  { %1196 = dma.done.wait [#allocation3], 64  }
 0x293   :  { %1197 = vsyncadd [#allocation3], 4294967232 }
 0x294   :  { %823 = vsyncpa [#allocation3], 1 }
 0x295   :  { %824 = vsyncpa [#allocation4], 1 }

</bundles_post_ra>
